<compile_context>
chip_gen: v6e
topology: v6e:2x2x1
jax: 0.10.0
libtpu: 0.0.40
codegen_flags: <defaults>
</compile_context>

<pallas_src>
import functools

import jax
import jax.numpy as jnp
from jax import lax
from jax.experimental import pallas as pl
from jax.experimental.pallas import tpu as pltpu


# ----------------------------------------------------------------------------
# Pallas kernels
# ----------------------------------------------------------------------------
def _conv_pool_kernel(p_ref, w_ref, b_ref, o_ref, *, n_win):
    """out = max over the n_win pool-window offsets of relu(W @ P[q] + b).

    p_ref: (n_win, K, M)   patches, one slab per 2x2-pool window offset
    w_ref: (Cout, K)       conv weight as a matrix
    b_ref: (Cout, 1)       bias column (broadcast over lanes)
    o_ref: (Cout, M)       pooled, ReLU'd conv output (lane-dense M)
    """
    w = w_ref[...]
    b = b_ref[...]
    best = None
    for q in range(n_win):
        r = jnp.dot(w, p_ref[q], preferred_element_type=jnp.float32)
        r = jnp.maximum(r + b, 0.0)
        best = r if best is None else jnp.maximum(best, r)
    o_ref[...] = best.astype(o_ref.dtype)


def _tail_kernel(p_ref, w2_ref, b2_ref, w1r_ref, bf1_ref, wf2_ref, bf2_ref,
                 wf3_ref, bf3_ref, o_ref, *, n_win, n_spatial, batch):
    """conv2 + ReLU + 2x2 max-pool + fc1 + fc2 + fc3, all inside one kernel.

    p_ref : (n_win, 150, n_spatial*batch)  conv2 patches (columns ordered s-major)
    w2_ref: (16, 150), b2_ref: (16, 1)
    w1r_ref: (n_spatial, 120, 16)  fc1 weight permuted per pooled spatial pos.
    bf1_ref: (120,1)  wf2_ref: (84,120)  bf2_ref: (84,1)
    wf3_ref: (10,84)  bf3_ref: (10,1)
    o_ref : (10, batch)  logits (transposed; wrapper flips to (batch, 10))
    """
    w2 = w2_ref[...]
    b2 = b2_ref[...]

    # conv2 + ReLU + max-pool as max over the 4 window-offset matmuls.
    pooled = None
    for q in range(n_win):
        r = jnp.dot(w2, p_ref[q], preferred_element_type=jnp.float32)  # (16, S*N)
        r = jnp.maximum(r + b2, 0.0)
        pooled = r if pooled is None else jnp.maximum(pooled, r)

    # fc1: logits_h1[j, n] = sum_{s,c} fc1_w[c*25+s, j] * pooled[c, s*N + n]
    # Done as one tiny (120,16)@(16,N) matmul per pooled spatial position s,
    # which replaces the (N, 400) flatten without any in-kernel reshape.
    h1_dim = w1r_ref.shape[1]
    acc = jnp.zeros((h1_dim, batch), jnp.float32)
    for s in range(n_spatial):
        blk = pooled[:, s * batch:(s + 1) * batch]                     # (16, N)
        acc = acc + jnp.dot(w1r_ref[s], blk,
                            preferred_element_type=jnp.float32)        # (120, N)
    h1 = jnp.maximum(acc + bf1_ref[...], 0.0)                          # (120, N)

    h2 = jnp.dot(wf2_ref[...], h1, preferred_element_type=jnp.float32)
    h2 = jnp.maximum(h2 + bf2_ref[...], 0.0)                           # (84, N)

    out = jnp.dot(wf3_ref[...], h2, preferred_element_type=jnp.float32)
    out = out + bf3_ref[...]                                           # (10, N)
    o_ref[...] = out.astype(o_ref.dtype)


# ----------------------------------------------------------------------------
# pallas_call wrappers (single-tile: everything fits comfortably in VMEM)
# ----------------------------------------------------------------------------
def conv_pool_block(patches_q, w_mat, b_col):
    n_win, K, M = patches_q.shape
    cout = w_mat.shape[0]
    flops = 2 * n_win * cout * K * M
    bytes_acc = 4 * (patches_q.size + w_mat.size + b_col.size + cout * M)
    return pl.pallas_call(
        functools.partial(_conv_pool_kernel, n_win=n_win),
        out_shape=jax.ShapeDtypeStruct((cout, M), jnp.float32),
        grid=(1,),
        in_specs=[
            pl.BlockSpec((n_win, K, M), lambda i: (0, 0, 0)),
            pl.BlockSpec((cout, K), lambda i: (0, 0)),
            pl.BlockSpec((cout, 1), lambda i: (0, 0)),
        ],
        out_specs=pl.BlockSpec((cout, M), lambda i: (0, 0)),
        compiler_params=pltpu.CompilerParams(
            dimension_semantics=("arbitrary",)),
        cost_estimate=pl.CostEstimate(flops=int(flops), transcendentals=0,
                                      bytes_accessed=int(bytes_acc)),
    )(patches_q, w_mat, b_col)


def tail_block(p2, w2, b2, w1r, bf1, wf2, bf2, wf3, bf3, *, batch):
    n_win, K2, M2 = p2.shape
    c2 = w2.shape[0]
    n_spatial, h1_dim, _ = w1r.shape
    h2_dim = wf2.shape[0]
    n_cls = wf3.shape[0]
    assert M2 == n_spatial * batch
    flops = 2 * (n_win * c2 * K2 * M2 + n_spatial * h1_dim * c2 * batch +
                 h2_dim * h1_dim * batch + n_cls * h2_dim * batch)
    bytes_acc = 4 * (p2.size + w2.size + b2.size + w1r.size + bf1.size +
                     wf2.size + bf2.size + wf3.size + bf3.size + n_cls * batch)
    return pl.pallas_call(
        functools.partial(_tail_kernel, n_win=n_win, n_spatial=n_spatial,
                          batch=batch),
        out_shape=jax.ShapeDtypeStruct((n_cls, batch), jnp.float32),
        grid=(1,),
        in_specs=[
            pl.BlockSpec((n_win, K2, M2), lambda i: (0, 0, 0)),
            pl.BlockSpec((c2, K2), lambda i: (0, 0)),
            pl.BlockSpec((c2, 1), lambda i: (0, 0)),
            pl.BlockSpec((n_spatial, h1_dim, c2), lambda i: (0, 0, 0)),
            pl.BlockSpec((h1_dim, 1), lambda i: (0, 0)),
            pl.BlockSpec((h2_dim, h1_dim), lambda i: (0, 0)),
            pl.BlockSpec((h2_dim, 1), lambda i: (0, 0)),
            pl.BlockSpec((n_cls, h2_dim), lambda i: (0, 0)),
            pl.BlockSpec((n_cls, 1), lambda i: (0, 0)),
        ],
        out_specs=pl.BlockSpec((n_cls, batch), lambda i: (0, 0)),
        compiler_params=pltpu.CompilerParams(
            dimension_semantics=("arbitrary",)),
        cost_estimate=pl.CostEstimate(flops=int(flops), transcendentals=0,
                                      bytes_accessed=int(bytes_acc)),
    )(p2, w2, b2, w1r, bf1, wf2, bf2, wf3, bf3)


# ----------------------------------------------------------------------------
# Glue: pool-aware im2col (one conv_general_dilated_patches call per layer)
# ----------------------------------------------------------------------------
def _pooled_conv_patches(x, kh, kw, *, batch_major):
    """Patches for conv(valid, stride 1) fused with a subsequent 2x2/2 max-pool.

    Returns p of shape (4, C*kh*kw, N*PH*PW) with
      p[wi*2+wj, ci*kh*kw + di*kw + dj, m] = x[n, ci, 2*ph+wi+di, 2*pw+wj+dj]
    where m = n*PH*PW + ph*PW + pw   (batch_major=True)
          m = (ph*PW + pw)*N + n     (batch_major=False).
    Feature ordering (ci, di, dj) matches torch weight.reshape(Cout, Cin*kh*kw).
    """
    N, C, H, W = x.shape
    OH, OW = H - kh + 1, W - kw + 1
    assert OH % 2 == 0 and OW % 2 == 0, "2x2/2 max-pool needs even conv output"
    PH, PW = OH // 2, OW // 2
    K = C * kh * kw
    pat = lax.conv_general_dilated_patches(
        x, filter_shape=(kh, kw), window_strides=(1, 1), padding="VALID",
        dimension_numbers=("NCHW", "OIHW", "NCHW"))          # (N, K, OH, OW)
    per_q = []
    for wi in range(2):
        for wj in range(2):
            p = pat[:, :, wi:2 * PH:2, wj:2 * PW:2]          # (N, K, PH, PW)
            p = p.reshape(N, K, PH * PW)
            if batch_major:
                p = jnp.transpose(p, (1, 0, 2)).reshape(K, N * PH * PW)
            else:
                p = jnp.transpose(p, (1, 2, 0)).reshape(K, PH * PW * N)
            per_q.append(p)
    return jnp.stack(per_q, axis=0)                          # (4, K, M)


# ----------------------------------------------------------------------------
# Parameters (deterministic, PyTorch-default-style uniform init)
# ----------------------------------------------------------------------------
def init_params(key):
    def uinit(k, shape, fan_in):
        bound = 1.0 / jnp.sqrt(float(fan_in))
        return jax.random.uniform(k, shape, jnp.float32, -bound, bound)

    ks = jax.random.split(key, 10)
    p = {}
    p["conv1_w"] = uinit(ks[0], (6, 3, 5, 5), 3 * 5 * 5)
    p["conv1_b"] = uinit(ks[1], (6,), 3 * 5 * 5)
    p["conv2_w"] = uinit(ks[2], (16, 6, 5, 5), 6 * 5 * 5)
    p["conv2_b"] = uinit(ks[3], (16,), 6 * 5 * 5)
    p["fc1_w"] = uinit(ks[4], (400, 120), 400)   # stored as (in, out)
    p["fc1_b"] = uinit(ks[5], (120,), 400)
    p["fc2_w"] = uinit(ks[6], (120, 84), 120)
    p["fc2_b"] = uinit(ks[7], (84,), 120)
    p["fc3_w"] = uinit(ks[8], (84, 10), 84)
    p["fc3_b"] = uinit(ks[9], (10,), 84)
    return p


# ----------------------------------------------------------------------------
# Forward pass (mirrors ImgClfNet.forward exactly)
# ----------------------------------------------------------------------------
def img_clf_net_forward(params, x):
    # x: (N, 3, 32, 32) float32, NCHW (same as PyTorch).
    N = x.shape[0]

    # --- block 1: conv1 + ReLU + 2x2 max-pool, one Pallas kernel -------------
    p1 = _pooled_conv_patches(x, 5, 5, batch_major=True)       # (4, 75, N*196)
    w1 = params["conv1_w"].reshape(6, 3 * 5 * 5)
    b1 = params["conv1_b"].reshape(6, 1)
    y1 = conv_pool_block(p1, w1, b1)                            # (6, N*196)
    pool1 = y1.reshape(6, N, 14, 14).transpose(1, 0, 2, 3)      # (N, 6, 14, 14)

    # --- block 2: conv2 + ReLU + pool + fc1 + fc2 + fc3, one Pallas kernel ---
    p2 = _pooled_conv_patches(pool1, 5, 5, batch_major=False)   # (4, 150, 25*N)
    w2 = params["conv2_w"].reshape(16, 6 * 5 * 5)
    b2 = params["conv2_b"].reshape(16, 1)
    # fc1 weight (400,120) -> (25, 120, 16): one (120,16) slab per pooled
    # spatial position s, so the flatten index c*25+s is consumed without any
    # in-kernel reshape.
    w1r = jnp.transpose(params["fc1_w"].reshape(16, 25, 120), (1, 2, 0))
    bf1 = params["fc1_b"].reshape(120, 1)
    wf2 = params["fc2_w"].T                                     # (84, 120)
    bf2 = params["fc2_b"].reshape(84, 1)
    wf3 = params["fc3_w"].T                                     # (10, 84)
    bf3 = params["fc3_b"].reshape(10, 1)

    logits_t = tail_block(p2, w2, b2, w1r, bf1, wf2, bf2, wf3, bf3, batch=N)
    return logits_t.T                                           # (N, 10)


# ----------------------------------------------------------------------------
# Pure-JAX reference (for a loose numerical sanity check)
# ----------------------------------------------------------------------------
def _reference_forward(params, x):
    dn = ("NCHW", "OIHW", "NCHW")
    hp = lax.Precision.HIGHEST
    y = lax.conv_general_dilated(x, params["conv1_w"], (1, 1), "VALID",
                                 dimension_numbers=dn, precision=hp)
    y = jax.nn.relu(y + params["conv1_b"].reshape(1, -1, 1, 1))
    y = lax.reduce_window(y, -jnp.inf, lax.max, (1, 1, 2, 2), (1, 1, 2, 2),
                          "VALID")
    y = lax.conv_general_dilated(y, params["conv2_w"], (1, 1), "VALID",
                                 dimension_numbers=dn, precision=hp)
    y = jax.nn.relu(y + params["conv2_b"].reshape(1, -1, 1, 1))
    y = lax.reduce_window(y, -jnp.inf, lax.max, (1, 1, 2, 2), (1, 1, 2, 2),
                          "VALID")
    y = y.reshape(y.shape[0], -1)                               # (N, 400)
    y = jax.nn.relu(jnp.matmul(y, params["fc1_w"], precision=hp)
                    + params["fc1_b"])
    y = jax.nn.relu(jnp.matmul(y, params["fc2_w"], precision=hp)
                    + params["fc2_b"])
    return jnp.matmul(y, params["fc3_w"], precision=hp) + params["fc3_b"]


if __name__ == "__main__":
    key = jax.random.PRNGKey(0)
    pkey, xkey = jax.random.split(key)
    params = init_params(pkey)
    # fc1 requires 16*5*5 flatten -> input spatial must be 32x32 (CIFAR-style).
    x = jax.random.normal(xkey, (2, 3, 32, 32), jnp.float32)

    fwd = jax.jit(img_clf_net_forward)
    out = fwd(params, x)
    jax.block_until_ready(out)
    assert out.shape == (2, 10) and out.dtype == jnp.float32

    ref = _reference_forward(params, x)
    if not bool(jnp.allclose(out, ref, rtol=1e-1, atol=1e-1)):
        raise AssertionError(
            f"mismatch vs reference, max abs err = {jnp.max(jnp.abs(out - ref))}")
    print("KERNEL_OK")
</pallas_src>

<mosaic_0001>
module attributes {stable_mosaic.version = 11 : i64} {
  func.func @_conv_pool_kernel(%arg0: i32, %arg1: memref<4x75x392xf32, #tpu.memory_space<vmem>>, %arg2: memref<6x75xf32, #tpu.memory_space<vmem>>, %arg3: memref<6x1xf32, #tpu.memory_space<vmem>>, %arg4: memref<6x392xf32, #tpu.memory_space<vmem>>) attributes {dimension_semantics = [#tpu.dimension_semantics<arbitrary>], iteration_bounds = array<i64: 1>, scalar_prefetch = 0 : i64, scratch_operands = 0 : i64, tpu.core_type = #tpu.core_type<tc>, window_params = [{pipeline_mode = #tpu.pipeline_mode<synchronous>, transform_indices = @transform_0, window_bounds = array<i64: 4, 75, 392>}, {pipeline_mode = #tpu.pipeline_mode<synchronous>, transform_indices = @transform_1, window_bounds = array<i64: 6, 75>}, {pipeline_mode = #tpu.pipeline_mode<synchronous>, transform_indices = @transform_2, window_bounds = array<i64: 6, 1>}, {pipeline_mode = #tpu.pipeline_mode<synchronous>, transform_indices = @transform_3, window_bounds = array<i64: 6, 392>}]} {
    %c0 = arith.constant 0 : index
    %c0_0 = arith.constant 0 : index
    %0 = vector.load %arg2[%c0, %c0_0] : memref<6x75xf32, #tpu.memory_space<vmem>>, vector<6x75xf32>
    %c0_1 = arith.constant 0 : index
    %c0_2 = arith.constant 0 : index
    %1 = vector.load %arg3[%c0_1, %c0_2] : memref<6x1xf32, #tpu.memory_space<vmem>>, vector<6x1xf32>
    %c0_3 = arith.constant 0 : index
    %c0_4 = arith.constant 0 : index
    %c0_5 = arith.constant 0 : index
    %2 = vector.load %arg1[%c0_3, %c0_4, %c0_5] : memref<4x75x392xf32, #tpu.memory_space<vmem>>, vector<1x75x392xf32>
    %3 = vector.shape_cast %2 : vector<1x75x392xf32> to vector<75x392xf32>
    %cst = arith.constant dense<0.000000e+00> : vector<6x392xf32>
    %4 = tpu.matmul %0, %3, %cst {dimension_numbers = #tpu.dot_dimension_numbers<[1], [0], [0], [1], [0, 0, 1, 1], [], []>} : vector<6x75xf32>, vector<75x392xf32>, vector<6x392xf32> -> vector<6x392xf32>
    %5 = vector.broadcast %1 : vector<6x1xf32> to vector<6x392xf32>
    %6 = arith.addf %4, %5 : vector<6x392xf32>
    %cst_6 = arith.constant 0.000000e+00 : f32
    %7 = vector.broadcast %cst_6 : f32 to vector<6x392xf32>
    %8 = arith.maximumf %6, %7 : vector<6x392xf32>
    %c1 = arith.constant 1 : index
    %c0_7 = arith.constant 0 : index
    %c0_8 = arith.constant 0 : index
    %9 = vector.load %arg1[%c1, %c0_7, %c0_8] : memref<4x75x392xf32, #tpu.memory_space<vmem>>, vector<1x75x392xf32>
    %10 = vector.shape_cast %9 : vector<1x75x392xf32> to vector<75x392xf32>
    %cst_9 = arith.constant dense<0.000000e+00> : vector<6x392xf32>
    %11 = tpu.matmul %0, %10, %cst_9 {dimension_numbers = #tpu.dot_dimension_numbers<[1], [0], [0], [1], [0, 0, 1, 1], [], []>} : vector<6x75xf32>, vector<75x392xf32>, vector<6x392xf32> -> vector<6x392xf32>
    %12 = vector.broadcast %1 : vector<6x1xf32> to vector<6x392xf32>
    %13 = arith.addf %11, %12 : vector<6x392xf32>
    %cst_10 = arith.constant 0.000000e+00 : f32
    %14 = vector.broadcast %cst_10 : f32 to vector<6x392xf32>
    %15 = arith.maximumf %13, %14 : vector<6x392xf32>
    %16 = arith.maximumf %8, %15 : vector<6x392xf32>
    %c2 = arith.constant 2 : index
    %c0_11 = arith.constant 0 : index
    %c0_12 = arith.constant 0 : index
    %17 = vector.load %arg1[%c2, %c0_11, %c0_12] : memref<4x75x392xf32, #tpu.memory_space<vmem>>, vector<1x75x392xf32>
    %18 = vector.shape_cast %17 : vector<1x75x392xf32> to vector<75x392xf32>
    %cst_13 = arith.constant dense<0.000000e+00> : vector<6x392xf32>
    %19 = tpu.matmul %0, %18, %cst_13 {dimension_numbers = #tpu.dot_dimension_numbers<[1], [0], [0], [1], [0, 0, 1, 1], [], []>} : vector<6x75xf32>, vector<75x392xf32>, vector<6x392xf32> -> vector<6x392xf32>
    %20 = vector.broadcast %1 : vector<6x1xf32> to vector<6x392xf32>
    %21 = arith.addf %19, %20 : vector<6x392xf32>
    %cst_14 = arith.constant 0.000000e+00 : f32
    %22 = vector.broadcast %cst_14 : f32 to vector<6x392xf32>
    %23 = arith.maximumf %21, %22 : vector<6x392xf32>
    %24 = arith.maximumf %16, %23 : vector<6x392xf32>
    %c3 = arith.constant 3 : index
    %c0_15 = arith.constant 0 : index
    %c0_16 = arith.constant 0 : index
    %25 = vector.load %arg1[%c3, %c0_15, %c0_16] : memref<4x75x392xf32, #tpu.memory_space<vmem>>, vector<1x75x392xf32>
    %26 = vector.shape_cast %25 : vector<1x75x392xf32> to vector<75x392xf32>
    %cst_17 = arith.constant dense<0.000000e+00> : vector<6x392xf32>
    %27 = tpu.matmul %0, %26, %cst_17 {dimension_numbers = #tpu.dot_dimension_numbers<[1], [0], [0], [1], [0, 0, 1, 1], [], []>} : vector<6x75xf32>, vector<75x392xf32>, vector<6x392xf32> -> vector<6x392xf32>
    %28 = vector.broadcast %1 : vector<6x1xf32> to vector<6x392xf32>
    %29 = arith.addf %27, %28 : vector<6x392xf32>
    %cst_18 = arith.constant 0.000000e+00 : f32
    %30 = vector.broadcast %cst_18 : f32 to vector<6x392xf32>
    %31 = arith.maximumf %29, %30 : vector<6x392xf32>
    %32 = arith.maximumf %24, %31 : vector<6x392xf32>
    %c0_19 = arith.constant 0 : index
    %c0_20 = arith.constant 0 : index
    %33 = vector.load %arg4[%c0_19, %c0_20] : memref<6x392xf32, #tpu.memory_space<vmem>>, vector<6x392xf32>
    tpu.vector_store %arg4[%c0_19, %c0_20], %32 {strides = array<i32>} : memref<6x392xf32, #tpu.memory_space<vmem>>, vector<6x392xf32>,
    return
  }
  func.func @transform_0(%arg0: i32) -> (i32, i32, i32) {
    %c0_i32 = arith.constant 0 : i32
    %c0_i32_0 = arith.constant 0 : i32
    %c0_i32_1 = arith.constant 0 : i32
    %c0_i32_2 = arith.constant 0 : i32
    return %c0_i32, %c0_i32_0, %c0_i32_1 : i32, i32, i32
  }
  func.func @transform_1(%arg0: i32) -> (i32, i32) {
    %c0_i32 = arith.constant 0 : i32
    %c0_i32_0 = arith.constant 0 : i32
    %c0_i32_1 = arith.constant 0 : i32
    return %c0_i32, %c0_i32_0 : i32, i32
  }
  func.func @transform_2(%arg0: i32) -> (i32, i32) {
    %c0_i32 = arith.constant 0 : i32
    %c0_i32_0 = arith.constant 0 : i32
    %c0_i32_1 = arith.constant 0 : i32
    return %c0_i32, %c0_i32_0 : i32, i32
  }
  func.func @transform_3(%arg0: i32) -> (i32, i32) {
    %c0_i32 = arith.constant 0 : i32
    %c0_i32_0 = arith.constant 0 : i32
    %c0_i32_1 = arith.constant 0 : i32
    return %c0_i32, %c0_i32_0 : i32, i32
  }
}

module attributes {stable_mosaic.version = 11 : i64} {
  func.func @_tail_kernel(%arg0: i32, %arg1: memref<4x150x50xf32, #tpu.memory_space<vmem>>, %arg2: memref<16x150xf32, #tpu.memory_space<vmem>>, %arg3: memref<16x1xf32, #tpu.memory_space<vmem>>, %arg4: memref<25x120x16xf32, #tpu.memory_space<vmem>>, %arg5: memref<120x1xf32, #tpu.memory_space<vmem>>, %arg6: memref<84x120xf32, #tpu.memory_space<vmem>>, %arg7: memref<84x1xf32, #tpu.memory_space<vmem>>, %arg8: memref<10x84xf32, #tpu.memory_space<vmem>>, %arg9: memref<10x1xf32, #tpu.memory_space<vmem>>, %arg10: memref<10x2xf32, #tpu.memory_space<vmem>>) attributes {dimension_semantics = [#tpu.dimension_semantics<arbitrary>], iteration_bounds = array<i64: 1>, scalar_prefetch = 0 : i64, scratch_operands = 0 : i64, tpu.core_type = #tpu.core_type<tc>, window_params = [{pipeline_mode = #tpu.pipeline_mode<synchronous>, transform_indices = @transform_0, window_bounds = array<i64: 4, 150, 50>}, {pipeline_mode = #tpu.pipeline_mode<synchronous>, transform_indices = @transform_1, window_bounds = array<i64: 16, 150>}, {pipeline_mode = #tpu.pipeline_mode<synchronous>, transform_indices = @transform_2, window_bounds = array<i64: 16, 1>}, {pipeline_mode = #tpu.pipeline_mode<synchronous>, transform_indices = @transform_3, window_bounds = array<i64: 25, 120, 16>}, {pipeline_mode = #tpu.pipeline_mode<synchronous>, transform_indices = @transform_4, window_bounds = array<i64: 120, 1>}, {pipeline_mode = #tpu.pipeline_mode<synchronous>, transform_indices = @transform_5, window_bounds = array<i64: 84, 120>}, {pipeline_mode = #tpu.pipeline_mode<synchronous>, transform_indices = @transform_6, window_bounds = array<i64: 84, 1>}, {pipeline_mode = #tpu.pipeline_mode<synchronous>, transform_indices = @transform_7, window_bounds = array<i64: 10, 84>}, {pipeline_mode = #tpu.pipeline_mode<synchronous>, transform_indices = @transform_8, window_bounds = array<i64: 10, 1>}, {pipeline_mode = #tpu.pipeline_mode<synchronous>, transform_indices = @transform_9, window_bounds = array<i64: 10, 2>}]} {
    %c0 = arith.constant 0 : index
    %c0_0 = arith.constant 0 : index
    %0 = vector.load %arg2[%c0, %c0_0] : memref<16x150xf32, #tpu.memory_space<vmem>>, vector<16x150xf32>
    %c0_1 = arith.constant 0 : index
    %c0_2 = arith.constant 0 : index
    %1 = vector.load %arg3[%c0_1, %c0_2] : memref<16x1xf32, #tpu.memory_space<vmem>>, vector<16x1xf32>
    %c0_3 = arith.constant 0 : index
    %c0_4 = arith.constant 0 : index
    %c0_5 = arith.constant 0 : index
    %2 = vector.load %arg1[%c0_3, %c0_4, %c0_5] : memref<4x150x50xf32, #tpu.memory_space<vmem>>, vector<1x150x50xf32>
    %3 = vector.shape_cast %2 : vector<1x150x50xf32> to vector<150x50xf32>
    %cst = arith.constant dense<0.000000e+00> : vector<16x50xf32>
    %4 = tpu.matmul %0, %3, %cst {dimension_numbers = #tpu.dot_dimension_numbers<[1], [0], [0], [1], [0, 0, 1, 1], [], []>} : vector<16x150xf32>, vector<150x50xf32>, vector<16x50xf32> -> vector<16x50xf32>
    %5 = vector.broadcast %1 : vector<16x1xf32> to vector<16x50xf32>
    %6 = arith.addf %4, %5 : vector<16x50xf32>
    %cst_6 = arith.constant 0.000000e+00 : f32
    %7 = vector.broadcast %cst_6 : f32 to vector<16x50xf32>
    %8 = arith.maximumf %6, %7 : vector<16x50xf32>
    %c1 = arith.constant 1 : index
    %c0_7 = arith.constant 0 : index
    %c0_8 = arith.constant 0 : index
    %9 = vector.load %arg1[%c1, %c0_7, %c0_8] : memref<4x150x50xf32, #tpu.memory_space<vmem>>, vector<1x150x50xf32>
    %10 = vector.shape_cast %9 : vector<1x150x50xf32> to vector<150x50xf32>
    %cst_9 = arith.constant dense<0.000000e+00> : vector<16x50xf32>
    %11 = tpu.matmul %0, %10, %cst_9 {dimension_numbers = #tpu.dot_dimension_numbers<[1], [0], [0], [1], [0, 0, 1, 1], [], []>} : vector<16x150xf32>, vector<150x50xf32>, vector<16x50xf32> -> vector<16x50xf32>
    %12 = vector.broadcast %1 : vector<16x1xf32> to vector<16x50xf32>
    %13 = arith.addf %11, %12 : vector<16x50xf32>
    %cst_10 = arith.constant 0.000000e+00 : f32
    %14 = vector.broadcast %cst_10 : f32 to vector<16x50xf32>
    %15 = arith.maximumf %13, %14 : vector<16x50xf32>
    %16 = arith.maximumf %8, %15 : vector<16x50xf32>
    %c2 = arith.constant 2 : index
    %c0_11 = arith.constant 0 : index
    %c0_12 = arith.constant 0 : index
    %17 = vector.load %arg1[%c2, %c0_11, %c0_12] : memref<4x150x50xf32, #tpu.memory_space<vmem>>, vector<1x150x50xf32>
    %18 = vector.shape_cast %17 : vector<1x150x50xf32> to vector<150x50xf32>
    %cst_13 = arith.constant dense<0.000000e+00> : vector<16x50xf32>
    %19 = tpu.matmul %0, %18, %cst_13 {dimension_numbers = #tpu.dot_dimension_numbers<[1], [0], [0], [1], [0, 0, 1, 1], [], []>} : vector<16x150xf32>, vector<150x50xf32>, vector<16x50xf32> -> vector<16x50xf32>
    %20 = vector.broadcast %1 : vector<16x1xf32> to vector<16x50xf32>
    %21 = arith.addf %19, %20 : vector<16x50xf32>
    %cst_14 = arith.constant 0.000000e+00 : f32
    %22 = vector.broadcast %cst_14 : f32 to vector<16x50xf32>
    %23 = arith.maximumf %21, %22 : vector<16x50xf32>
    %24 = arith.maximumf %16, %23 : vector<16x50xf32>
    %c3 = arith.constant 3 : index
    %c0_15 = arith.constant 0 : index
    %c0_16 = arith.constant 0 : index
    %25 = vector.load %arg1[%c3, %c0_15, %c0_16] : memref<4x150x50xf32, #tpu.memory_space<vmem>>, vector<1x150x50xf32>
    %26 = vector.shape_cast %25 : vector<1x150x50xf32> to vector<150x50xf32>
    %cst_17 = arith.constant dense<0.000000e+00> : vector<16x50xf32>
    %27 = tpu.matmul %0, %26, %cst_17 {dimension_numbers = #tpu.dot_dimension_numbers<[1], [0], [0], [1], [0, 0, 1, 1], [], []>} : vector<16x150xf32>, vector<150x50xf32>, vector<16x50xf32> -> vector<16x50xf32>
    %28 = vector.broadcast %1 : vector<16x1xf32> to vector<16x50xf32>
    %29 = arith.addf %27, %28 : vector<16x50xf32>
    %cst_18 = arith.constant 0.000000e+00 : f32
    %30 = vector.broadcast %cst_18 : f32 to vector<16x50xf32>
    %31 = arith.maximumf %29, %30 : vector<16x50xf32>
    %32 = arith.maximumf %24, %31 : vector<16x50xf32>
    %cst_19 = arith.constant 0.000000e+00 : f32
    %33 = vector.broadcast %cst_19 : f32 to vector<120x2xf32>
    %34 = vector.extract_strided_slice %32 {offsets = [0, 0], sizes = [16, 2], strides = [1, 1]} : vector<16x50xf32> to vector<16x2xf32>
    %c0_20 = arith.constant 0 : index
    %c0_21 = arith.constant 0 : index
    %c0_22 = arith.constant 0 : index
    %35 = vector.load %arg4[%c0_20, %c0_21, %c0_22] : memref<25x120x16xf32, #tpu.memory_space<vmem>>, vector<1x120x16xf32>
    %36 = vector.shape_cast %35 : vector<1x120x16xf32> to vector<120x16xf32>
    %cst_23 = arith.constant dense<0.000000e+00> : vector<120x2xf32>
    %37 = tpu.matmul %36, %34, %cst_23 {dimension_numbers = #tpu.dot_dimension_numbers<[1], [0], [0], [1], [0, 0, 1, 1], [], []>} : vector<120x16xf32>, vector<16x2xf32>, vector<120x2xf32> -> vector<120x2xf32>
    %38 = arith.addf %33, %37 : vector<120x2xf32>
    %39 = vector.extract_strided_slice %32 {offsets = [0, 2], sizes = [16, 2], strides = [1, 1]} : vector<16x50xf32> to vector<16x2xf32>
    %c1_24 = arith.constant 1 : index
    %c0_25 = arith.constant 0 : index
    %c0_26 = arith.constant 0 : index
    %40 = vector.load %arg4[%c1_24, %c0_25, %c0_26] : memref<25x120x16xf32, #tpu.memory_space<vmem>>, vector<1x120x16xf32>
    %41 = vector.shape_cast %40 : vector<1x120x16xf32> to vector<120x16xf32>
    %cst_27 = arith.constant dense<0.000000e+00> : vector<120x2xf32>
    %42 = tpu.matmul %41, %39, %cst_27 {dimension_numbers = #tpu.dot_dimension_numbers<[1], [0], [0], [1], [0, 0, 1, 1], [], []>} : vector<120x16xf32>, vector<16x2xf32>, vector<120x2xf32> -> vector<120x2xf32>
    %43 = arith.addf %38, %42 : vector<120x2xf32>
    %44 = vector.extract_strided_slice %32 {offsets = [0, 4], sizes = [16, 2], strides = [1, 1]} : vector<16x50xf32> to vector<16x2xf32>
    %c2_28 = arith.constant 2 : index
    %c0_29 = arith.constant 0 : index
    %c0_30 = arith.constant 0 : index
    %45 = vector.load %arg4[%c2_28, %c0_29, %c0_30] : memref<25x120x16xf32, #tpu.memory_space<vmem>>, vector<1x120x16xf32>
    %46 = vector.shape_cast %45 : vector<1x120x16xf32> to vector<120x16xf32>
    %cst_31 = arith.constant dense<0.000000e+00> : vector<120x2xf32>
    %47 = tpu.matmul %46, %44, %cst_31 {dimension_numbers = #tpu.dot_dimension_numbers<[1], [0], [0], [1], [0, 0, 1, 1], [], []>} : vector<120x16xf32>, vector<16x2xf32>, vector<120x2xf32> -> vector<120x2xf32>
    %48 = arith.addf %43, %47 : vector<120x2xf32>
    %49 = vector.extract_strided_slice %32 {offsets = [0, 6], sizes = [16, 2], strides = [1, 1]} : vector<16x50xf32> to vector<16x2xf32>
    %c3_32 = arith.constant 3 : index
    %c0_33 = arith.constant 0 : index
    %c0_34 = arith.constant 0 : index
    %50 = vector.load %arg4[%c3_32, %c0_33, %c0_34] : memref<25x120x16xf32, #tpu.memory_space<vmem>>, vector<1x120x16xf32>
    %51 = vector.shape_cast %50 : vector<1x120x16xf32> to vector<120x16xf32>
    %cst_35 = arith.constant dense<0.000000e+00> : vector<120x2xf32>
    %52 = tpu.matmul %51, %49, %cst_35 {dimension_numbers = #tpu.dot_dimension_numbers<[1], [0], [0], [1], [0, 0, 1, 1], [], []>} : vector<120x16xf32>, vector<16x2xf32>, vector<120x2xf32> -> vector<120x2xf32>
    %53 = arith.addf %48, %52 : vector<120x2xf32>
    %54 = vector.extract_strided_slice %32 {offsets = [0, 8], sizes = [16, 2], strides = [1, 1]} : vector<16x50xf32> to vector<16x2xf32>
    %c4 = arith.constant 4 : index
    %c0_36 = arith.constant 0 : index
    %c0_37 = arith.constant 0 : index
    %55 = vector.load %arg4[%c4, %c0_36, %c0_37] : memref<25x120x16xf32, #tpu.memory_space<vmem>>, vector<1x120x16xf32>
    %56 = vector.shape_cast %55 : vector<1x120x16xf32> to vector<120x16xf32>
    %cst_38 = arith.constant dense<0.000000e+00> : vector<120x2xf32>
    %57 = tpu.matmul %56, %54, %cst_38 {dimension_numbers = #tpu.dot_dimension_numbers<[1], [0], [0], [1], [0, 0, 1, 1], [], []>} : vector<120x16xf32>, vector<16x2xf32>, vector<120x2xf32> -> vector<120x2xf32>
    %58 = arith.addf %53, %57 : vector<120x2xf32>
    %59 = vector.extract_strided_slice %32 {offsets = [0, 10], sizes = [16, 2], strides = [1, 1]} : vector<16x50xf32> to vector<16x2xf32>
    %c5 = arith.constant 5 : index
    %c0_39 = arith.constant 0 : index
    %c0_40 = arith.constant 0 : index
    %60 = vector.load %arg4[%c5, %c0_39, %c0_40] : memref<25x120x16xf32, #tpu.memory_space<vmem>>, vector<1x120x16xf32>
    %61 = vector.shape_cast %60 : vector<1x120x16xf32> to vector<120x16xf32>
    %cst_41 = arith.constant dense<0.000000e+00> : vector<120x2xf32>
    %62 = tpu.matmul %61, %59, %cst_41 {dimension_numbers = #tpu.dot_dimension_numbers<[1], [0], [0], [1], [0, 0, 1, 1], [], []>} : vector<120x16xf32>, vector<16x2xf32>, vector<120x2xf32> -> vector<120x2xf32>
    %63 = arith.addf %58, %62 : vector<120x2xf32>
    %64 = vector.extract_strided_slice %32 {offsets = [0, 12], sizes = [16, 2], strides = [1, 1]} : vector<16x50xf32> to vector<16x2xf32>
    %c6 = arith.constant 6 : index
    %c0_42 = arith.constant 0 : index
    %c0_43 = arith.constant 0 : index
    %65 = vector.load %arg4[%c6, %c0_42, %c0_43] : memref<25x120x16xf32, #tpu.memory_space<vmem>>, vector<1x120x16xf32>
    %66 = vector.shape_cast %65 : vector<1x120x16xf32> to vector<120x16xf32>
    %cst_44 = arith.constant dense<0.000000e+00> : vector<120x2xf32>
    %67 = tpu.matmul %66, %64, %cst_44 {dimension_numbers = #tpu.dot_dimension_numbers<[1], [0], [0], [1], [0, 0, 1, 1], [], []>} : vector<120x16xf32>, vector<16x2xf32>, vector<120x2xf32> -> vector<120x2xf32>
    %68 = arith.addf %63, %67 : vector<120x2xf32>
    %69 = vector.extract_strided_slice %32 {offsets = [0, 14], sizes = [16, 2], strides = [1, 1]} : vector<16x50xf32> to vector<16x2xf32>
    %c7 = arith.constant 7 : index
    %c0_45 = arith.constant 0 : index
    %c0_46 = arith.constant 0 : index
    %70 = vector.load %arg4[%c7, %c0_45, %c0_46] : memref<25x120x16xf32, #tpu.memory_space<vmem>>, vector<1x120x16xf32>
    %71 = vector.shape_cast %70 : vector<1x120x16xf32> to vector<120x16xf32>
    %cst_47 = arith.constant dense<0.000000e+00> : vector<120x2xf32>
    %72 = tpu.matmul %71, %69, %cst_47 {dimension_numbers = #tpu.dot_dimension_numbers<[1], [0], [0], [1], [0, 0, 1, 1], [], []>} : vector<120x16xf32>, vector<16x2xf32>, vector<120x2xf32> -> vector<120x2xf32>
    %73 = arith.addf %68, %72 : vector<120x2xf32>
    %74 = vector.extract_strided_slice %32 {offsets = [0, 16], sizes = [16, 2], strides = [1, 1]} : vector<16x50xf32> to vector<16x2xf32>
    %c8 = arith.constant 8 : index
    %c0_48 = arith.constant 0 : index
    %c0_49 = arith.constant 0 : index
    %75 = vector.load %arg4[%c8, %c0_48, %c0_49] : memref<25x120x16xf32, #tpu.memory_space<vmem>>, vector<1x120x16xf32>
    %76 = vector.shape_cast %75 : vector<1x120x16xf32> to vector<120x16xf32>
    %cst_50 = arith.constant dense<0.000000e+00> : vector<120x2xf32>
    %77 = tpu.matmul %76, %74, %cst_50 {dimension_numbers = #tpu.dot_dimension_numbers<[1], [0], [0], [1], [0, 0, 1, 1], [], []>} : vector<120x16xf32>, vector<16x2xf32>, vector<120x2xf32> -> vector<120x2xf32>
    %78 = arith.addf %73, %77 : vector<120x2xf32>
    %79 = vector.extract_strided_slice %32 {offsets = [0, 18], sizes = [16, 2], strides = [1, 1]} : vector<16x50xf32> to vector<16x2xf32>
    %c9 = arith.constant 9 : index
    %c0_51 = arith.constant 0 : index
    %c0_52 = arith.constant 0 : index
    %80 = vector.load %arg4[%c9, %c0_51, %c0_52] : memref<25x120x16xf32, #tpu.memory_space<vmem>>, vector<1x120x16xf32>
    %81 = vector.shape_cast %80 : vector<1x120x16xf32> to vector<120x16xf32>
    %cst_53 = arith.constant dense<0.000000e+00> : vector<120x2xf32>
    %82 = tpu.matmul %81, %79, %cst_53 {dimension_numbers = #tpu.dot_dimension_numbers<[1], [0], [0], [1], [0, 0, 1, 1], [], []>} : vector<120x16xf32>, vector<16x2xf32>, vector<120x2xf32> -> vector<120x2xf32>
    %83 = arith.addf %78, %82 : vector<120x2xf32>
    %84 = vector.extract_strided_slice %32 {offsets = [0, 20], sizes = [16, 2], strides = [1, 1]} : vector<16x50xf32> to vector<16x2xf32>
    %c10 = arith.constant 10 : index
    %c0_54 = arith.constant 0 : index
    %c0_55 = arith.constant 0 : index
    %85 = vector.load %arg4[%c10, %c0_54, %c0_55] : memref<25x120x16xf32, #tpu.memory_space<vmem>>, vector<1x120x16xf32>
    %86 = vector.shape_cast %85 : vector<1x120x16xf32> to vector<120x16xf32>
    %cst_56 = arith.constant dense<0.000000e+00> : vector<120x2xf32>
    %87 = tpu.matmul %86, %84, %cst_56 {dimension_numbers = #tpu.dot_dimension_numbers<[1], [0], [0], [1], [0, 0, 1, 1], [], []>} : vector<120x16xf32>, vector<16x2xf32>, vector<120x2xf32> -> vector<120x2xf32>
    %88 = arith.addf %83, %87 : vector<120x2xf32>
    %89 = vector.extract_strided_slice %32 {offsets = [0, 22], sizes = [16, 2], strides = [1, 1]} : vector<16x50xf32> to vector<16x2xf32>
    %c11 = arith.constant 11 : index
    %c0_57 = arith.constant 0 : index
    %c0_58 = arith.constant 0 : index
    %90 = vector.load %arg4[%c11, %c0_57, %c0_58] : memref<25x120x16xf32, #tpu.memory_space<vmem>>, vector<1x120x16xf32>
    %91 = vector.shape_cast %90 : vector<1x120x16xf32> to vector<120x16xf32>
    %cst_59 = arith.constant dense<0.000000e+00> : vector<120x2xf32>
    %92 = tpu.matmul %91, %89, %cst_59 {dimension_numbers = #tpu.dot_dimension_numbers<[1], [0], [0], [1], [0, 0, 1, 1], [], []>} : vector<120x16xf32>, vector<16x2xf32>, vector<120x2xf32> -> vector<120x2xf32>
    %93 = arith.addf %88, %92 : vector<120x2xf32>
    %94 = vector.extract_strided_slice %32 {offsets = [0, 24], sizes = [16, 2], strides = [1, 1]} : vector<16x50xf32> to vector<16x2xf32>
    %c12 = arith.constant 12 : index
    %c0_60 = arith.constant 0 : index
    %c0_61 = arith.constant 0 : index
    %95 = vector.load %arg4[%c12, %c0_60, %c0_61] : memref<25x120x16xf32, #tpu.memory_space<vmem>>, vector<1x120x16xf32>
    %96 = vector.shape_cast %95 : vector<1x120x16xf32> to vector<120x16xf32>
    %cst_62 = arith.constant dense<0.000000e+00> : vector<120x2xf32>
    %97 = tpu.matmul %96, %94, %cst_62 {dimension_numbers = #tpu.dot_dimension_numbers<[1], [0], [0], [1], [0, 0, 1, 1], [], []>} : vector<120x16xf32>, vector<16x2xf32>, vector<120x2xf32> -> vector<120x2xf32>
    %98 = arith.addf %93, %97 : vector<120x2xf32>
    %99 = vector.extract_strided_slice %32 {offsets = [0, 26], sizes = [16, 2], strides = [1, 1]} : vector<16x50xf32> to vector<16x2xf32>
    %c13 = arith.constant 13 : index
    %c0_63 = arith.constant 0 : index
    %c0_64 = arith.constant 0 : index
    %100 = vector.load %arg4[%c13, %c0_63, %c0_64] : memref<25x120x16xf32, #tpu.memory_space<vmem>>, vector<1x120x16xf32>
    %101 = vector.shape_cast %100 : vector<1x120x16xf32> to vector<120x16xf32>
    %cst_65 = arith.constant dense<0.000000e+00> : vector<120x2xf32>
    %102 = tpu.matmul %101, %99, %cst_65 {dimension_numbers = #tpu.dot_dimension_numbers<[1], [0], [0], [1], [0, 0, 1, 1], [], []>} : vector<120x16xf32>, vector<16x2xf32>, vector<120x2xf32> -> vector<120x2xf32>
    %103 = arith.addf %98, %102 : vector<120x2xf32>
    %104 = vector.extract_strided_slice %32 {offsets = [0, 28], sizes = [16, 2], strides = [1, 1]} : vector<16x50xf32> to vector<16x2xf32>
    %c14 = arith.constant 14 : index
    %c0_66 = arith.constant 0 : index
    %c0_67 = arith.constant 0 : index
    %105 = vector.load %arg4[%c14, %c0_66, %c0_67] : memref<25x120x16xf32, #tpu.memory_space<vmem>>, vector<1x120x16xf32>
    %106 = vector.shape_cast %105 : vector<1x120x16xf32> to vector<120x16xf32>
    %cst_68 = arith.constant dense<0.000000e+00> : vector<120x2xf32>
    %107 = tpu.matmul %106, %104, %cst_68 {dimension_numbers = #tpu.dot_dimension_numbers<[1], [0], [0], [1], [0, 0, 1, 1], [], []>} : vector<120x16xf32>, vector<16x2xf32>, vector<120x2xf32> -> vector<120x2xf32>
    %108 = arith.addf %103, %107 : vector<120x2xf32>
    %109 = vector.extract_strided_slice %32 {offsets = [0, 30], sizes = [16, 2], strides = [1, 1]} : vector<16x50xf32> to vector<16x2xf32>
    %c15 = arith.constant 15 : index
    %c0_69 = arith.constant 0 : index
    %c0_70 = arith.constant 0 : index
    %110 = vector.load %arg4[%c15, %c0_69, %c0_70] : memref<25x120x16xf32, #tpu.memory_space<vmem>>, vector<1x120x16xf32>
    %111 = vector.shape_cast %110 : vector<1x120x16xf32> to vector<120x16xf32>
    %cst_71 = arith.constant dense<0.000000e+00> : vector<120x2xf32>
    %112 = tpu.matmul %111, %109, %cst_71 {dimension_numbers = #tpu.dot_dimension_numbers<[1], [0], [0], [1], [0, 0, 1, 1], [], []>} : vector<120x16xf32>, vector<16x2xf32>, vector<120x2xf32> -> vector<120x2xf32>
    %113 = arith.addf %108, %112 : vector<120x2xf32>
    %114 = vector.extract_strided_slice %32 {offsets = [0, 32], sizes = [16, 2], strides = [1, 1]} : vector<16x50xf32> to vector<16x2xf32>
    %c16 = arith.constant 16 : index
    %c0_72 = arith.constant 0 : index
    %c0_73 = arith.constant 0 : index
    %115 = vector.load %arg4[%c16, %c0_72, %c0_73] : memref<25x120x16xf32, #tpu.memory_space<vmem>>, vector<1x120x16xf32>
    %116 = vector.shape_cast %115 : vector<1x120x16xf32> to vector<120x16xf32>
    %cst_74 = arith.constant dense<0.000000e+00> : vector<120x2xf32>
    %117 = tpu.matmul %116, %114, %cst_74 {dimension_numbers = #tpu.dot_dimension_numbers<[1], [0], [0], [1], [0, 0, 1, 1], [], []>} : vector<120x16xf32>, vector<16x2xf32>, vector<120x2xf32> -> vector<120x2xf32>
    %118 = arith.addf %113, %117 : vector<120x2xf32>
    %119 = vector.extract_strided_slice %32 {offsets = [0, 34], sizes = [16, 2], strides = [1, 1]} : vector<16x50xf32> to vector<16x2xf32>
    %c17 = arith.constant 17 : index
    %c0_75 = arith.constant 0 : index
    %c0_76 = arith.constant 0 : index
    %120 = vector.load %arg4[%c17, %c0_75, %c0_76] : memref<25x120x16xf32, #tpu.memory_space<vmem>>, vector<1x120x16xf32>
    %121 = vector.shape_cast %120 : vector<1x120x16xf32> to vector<120x16xf32>
    %cst_77 = arith.constant dense<0.000000e+00> : vector<120x2xf32>
    %122 = tpu.matmul %121, %119, %cst_77 {dimension_numbers = #tpu.dot_dimension_numbers<[1], [0], [0], [1], [0, 0, 1, 1], [], []>} : vector<120x16xf32>, vector<16x2xf32>, vector<120x2xf32> -> vector<120x2xf32>
    %123 = arith.addf %118, %122 : vector<120x2xf32>
    %124 = vector.extract_strided_slice %32 {offsets = [0, 36], sizes = [16, 2], strides = [1, 1]} : vector<16x50xf32> to vector<16x2xf32>
    %c18 = arith.constant 18 : index
    %c0_78 = arith.constant 0 : index
    %c0_79 = arith.constant 0 : index
    %125 = vector.load %arg4[%c18, %c0_78, %c0_79] : memref<25x120x16xf32, #tpu.memory_space<vmem>>, vector<1x120x16xf32>
    %126 = vector.shape_cast %125 : vector<1x120x16xf32> to vector<120x16xf32>
    %cst_80 = arith.constant dense<0.000000e+00> : vector<120x2xf32>
    %127 = tpu.matmul %126, %124, %cst_80 {dimension_numbers = #tpu.dot_dimension_numbers<[1], [0], [0], [1], [0, 0, 1, 1], [], []>} : vector<120x16xf32>, vector<16x2xf32>, vector<120x2xf32> -> vector<120x2xf32>
    %128 = arith.addf %123, %127 : vector<120x2xf32>
    %129 = vector.extract_strided_slice %32 {offsets = [0, 38], sizes = [16, 2], strides = [1, 1]} : vector<16x50xf32> to vector<16x2xf32>
    %c19 = arith.constant 19 : index
    %c0_81 = arith.constant 0 : index
    %c0_82 = arith.constant 0 : index
    %130 = vector.load %arg4[%c19, %c0_81, %c0_82] : memref<25x120x16xf32, #tpu.memory_space<vmem>>, vector<1x120x16xf32>
    %131 = vector.shape_cast %130 : vector<1x120x16xf32> to vector<120x16xf32>
    %cst_83 = arith.constant dense<0.000000e+00> : vector<120x2xf32>
    %132 = tpu.matmul %131, %129, %cst_83 {dimension_numbers = #tpu.dot_dimension_numbers<[1], [0], [0], [1], [0, 0, 1, 1], [], []>} : vector<120x16xf32>, vector<16x2xf32>, vector<120x2xf32> -> vector<120x2xf32>
    %133 = arith.addf %128, %132 : vector<120x2xf32>
    %134 = vector.extract_strided_slice %32 {offsets = [0, 40], sizes = [16, 2], strides = [1, 1]} : vector<16x50xf32> to vector<16x2xf32>
    %c20 = arith.constant 20 : index
    %c0_84 = arith.constant 0 : index
    %c0_85 = arith.constant 0 : index
    %135 = vector.load %arg4[%c20, %c0_84, %c0_85] : memref<25x120x16xf32, #tpu.memory_space<vmem>>, vector<1x120x16xf32>
    %136 = vector.shape_cast %135 : vector<1x120x16xf32> to vector<120x16xf32>
    %cst_86 = arith.constant dense<0.000000e+00> : vector<120x2xf32>
    %137 = tpu.matmul %136, %134, %cst_86 {dimension_numbers = #tpu.dot_dimension_numbers<[1], [0], [0], [1], [0, 0, 1, 1], [], []>} : vector<120x16xf32>, vector<16x2xf32>, vector<120x2xf32> -> vector<120x2xf32>
    %138 = arith.addf %133, %137 : vector<120x2xf32>
    %139 = vector.extract_strided_slice %32 {offsets = [0, 42], sizes = [16, 2], strides = [1, 1]} : vector<16x50xf32> to vector<16x2xf32>
    %c21 = arith.constant 21 : index
    %c0_87 = arith.constant 0 : index
    %c0_88 = arith.constant 0 : index
    %140 = vector.load %arg4[%c21, %c0_87, %c0_88] : memref<25x120x16xf32, #tpu.memory_space<vmem>>, vector<1x120x16xf32>
    %141 = vector.shape_cast %140 : vector<1x120x16xf32> to vector<120x16xf32>
    %cst_89 = arith.constant dense<0.000000e+00> : vector<120x2xf32>
    %142 = tpu.matmul %141, %139, %cst_89 {dimension_numbers = #tpu.dot_dimension_numbers<[1], [0], [0], [1], [0, 0, 1, 1], [], []>} : vector<120x16xf32>, vector<16x2xf32>, vector<120x2xf32> -> vector<120x2xf32>
    %143 = arith.addf %138, %142 : vector<120x2xf32>
    %144 = vector.extract_strided_slice %32 {offsets = [0, 44], sizes = [16, 2], strides = [1, 1]} : vector<16x50xf32> to vector<16x2xf32>
    %c22 = arith.constant 22 : index
    %c0_90 = arith.constant 0 : index
    %c0_91 = arith.constant 0 : index
    %145 = vector.load %arg4[%c22, %c0_90, %c0_91] : memref<25x120x16xf32, #tpu.memory_space<vmem>>, vector<1x120x16xf32>
    %146 = vector.shape_cast %145 : vector<1x120x16xf32> to vector<120x16xf32>
    %cst_92 = arith.constant dense<0.000000e+00> : vector<120x2xf32>
    %147 = tpu.matmul %146, %144, %cst_92 {dimension_numbers = #tpu.dot_dimension_numbers<[1], [0], [0], [1], [0, 0, 1, 1], [], []>} : vector<120x16xf32>, vector<16x2xf32>, vector<120x2xf32> -> vector<120x2xf32>
    %148 = arith.addf %143, %147 : vector<120x2xf32>
    %149 = vector.extract_strided_slice %32 {offsets = [0, 46], sizes = [16, 2], strides = [1, 1]} : vector<16x50xf32> to vector<16x2xf32>
    %c23 = arith.constant 23 : index
    %c0_93 = arith.constant 0 : index
    %c0_94 = arith.constant 0 : index
    %150 = vector.load %arg4[%c23, %c0_93, %c0_94] : memref<25x120x16xf32, #tpu.memory_space<vmem>>, vector<1x120x16xf32>
    %151 = vector.shape_cast %150 : vector<1x120x16xf32> to vector<120x16xf32>
    %cst_95 = arith.constant dense<0.000000e+00> : vector<120x2xf32>
    %152 = tpu.matmul %151, %149, %cst_95 {dimension_numbers = #tpu.dot_dimension_numbers<[1], [0], [0], [1], [0, 0, 1, 1], [], []>} : vector<120x16xf32>, vector<16x2xf32>, vector<120x2xf32> -> vector<120x2xf32>
    %153 = arith.addf %148, %152 : vector<120x2xf32>
    %154 = vector.extract_strided_slice %32 {offsets = [0, 48], sizes = [16, 2], strides = [1, 1]} : vector<16x50xf32> to vector<16x2xf32>
    %c24 = arith.constant 24 : index
    %c0_96 = arith.constant 0 : index
    %c0_97 = arith.constant 0 : index
    %155 = vector.load %arg4[%c24, %c0_96, %c0_97] : memref<25x120x16xf32, #tpu.memory_space<vmem>>, vector<1x120x16xf32>
    %156 = vector.shape_cast %155 : vector<1x120x16xf32> to vector<120x16xf32>
    %cst_98 = arith.constant dense<0.000000e+00> : vector<120x2xf32>
    %157 = tpu.matmul %156, %154, %cst_98 {dimension_numbers = #tpu.dot_dimension_numbers<[1], [0], [0], [1], [0, 0, 1, 1], [], []>} : vector<120x16xf32>, vector<16x2xf32>, vector<120x2xf32> -> vector<120x2xf32>
    %158 = arith.addf %153, %157 : vector<120x2xf32>
    %c0_99 = arith.constant 0 : index
    %c0_100 = arith.constant 0 : index
    %159 = vector.load %arg5[%c0_99, %c0_100] : memref<120x1xf32, #tpu.memory_space<vmem>>, vector<120x1xf32>
    %160 = vector.broadcast %159 : vector<120x1xf32> to vector<120x2xf32>
    %161 = arith.addf %158, %160 : vector<120x2xf32>
    %cst_101 = arith.constant 0.000000e+00 : f32
    %162 = vector.broadcast %cst_101 : f32 to vector<120x2xf32>
    %163 = arith.maximumf %161, %162 : vector<120x2xf32>
    %c0_102 = arith.constant 0 : index
    %c0_103 = arith.constant 0 : index
    %164 = vector.load %arg6[%c0_102, %c0_103] : memref<84x120xf32, #tpu.memory_space<vmem>>, vector<84x120xf32>
    %cst_104 = arith.constant dense<0.000000e+00> : vector<84x2xf32>
    %165 = tpu.matmul %164, %163, %cst_104 {dimension_numbers = #tpu.dot_dimension_numbers<[1], [0], [0], [1], [0, 0, 1, 1], [], []>} : vector<84x120xf32>, vector<120x2xf32>, vector<84x2xf32> -> vector<84x2xf32>
    %c0_105 = arith.constant 0 : index
    %c0_106 = arith.constant 0 : index
    %166 = vector.load %arg7[%c0_105, %c0_106] : memref<84x1xf32, #tpu.memory_space<vmem>>, vector<84x1xf32>
    %167 = vector.broadcast %166 : vector<84x1xf32> to vector<84x2xf32>
    %168 = arith.addf %165, %167 : vector<84x2xf32>
    %cst_107 = arith.constant 0.000000e+00 : f32
    %169 = vector.broadcast %cst_107 : f32 to vector<84x2xf32>
    %170 = arith.maximumf %168, %169 : vector<84x2xf32>
    %c0_108 = arith.constant 0 : index
    %c0_109 = arith.constant 0 : index
    %171 = vector.load %arg8[%c0_108, %c0_109] : memref<10x84xf32, #tpu.memory_space<vmem>>, vector<10x84xf32>
    %cst_110 = arith.constant dense<0.000000e+00> : vector<10x2xf32>
    %172 = tpu.matmul %171, %170, %cst_110 {dimension_numbers = #tpu.dot_dimension_numbers<[1], [0], [0], [1], [0, 0, 1, 1], [], []>} : vector<10x84xf32>, vector<84x2xf32>, vector<10x2xf32> -> vector<10x2xf32>
    %c0_111 = arith.constant 0 : index
    %c0_112 = arith.constant 0 : index
    %173 = vector.load %arg9[%c0_111, %c0_112] : memref<10x1xf32, #tpu.memory_space<vmem>>, vector<10x1xf32>
    %174 = vector.broadcast %173 : vector<10x1xf32> to vector<10x2xf32>
    %175 = arith.addf %172, %174 : vector<10x2xf32>
    %c0_113 = arith.constant 0 : index
    %c0_114 = arith.constant 0 : index
    %176 = vector.load %arg10[%c0_113, %c0_114] : memref<10x2xf32, #tpu.memory_space<vmem>>, vector<10x2xf32>
    tpu.vector_store %arg10[%c0_113, %c0_114], %175 {strides = array<i32>} : memref<10x2xf32, #tpu.memory_space<vmem>>, vector<10x2xf32>,
    return
  }
  func.func @transform_0(%arg0: i32) -> (i32, i32, i32) {
    %c0_i32 = arith.constant 0 : i32
    %c0_i32_0 = arith.constant 0 : i32
    %c0_i32_1 = arith.constant 0 : i32
    %c0_i32_2 = arith.constant 0 : i32
    return %c0_i32, %c0_i32_0, %c0_i32_1 : i32, i32, i32
  }
  func.func @transform_1(%arg0: i32) -> (i32, i32) {
    %c0_i32 = arith.constant 0 : i32
    %c0_i32_0 = arith.constant 0 : i32
    %c0_i32_1 = arith.constant 0 : i32
    return %c0_i32, %c0_i32_0 : i32, i32
  }
  func.func @transform_2(%arg0: i32) -> (i32, i32) {
    %c0_i32 = arith.constant 0 : i32
    %c0_i32_0 = arith.constant 0 : i32
    %c0_i32_1 = arith.constant 0 : i32
    return %c0_i32, %c0_i32_0 : i32, i32
  }
  func.func @transform_3(%arg0: i32) -> (i32, i32, i32) {
    %c0_i32 = arith.constant 0 : i32
    %c0_i32_0 = arith.constant 0 : i32
    %c0_i32_1 = arith.constant 0 : i32
    %c0_i32_2 = arith.constant 0 : i32
    return %c0_i32, %c0_i32_0, %c0_i32_1 : i32, i32, i32
  }
  func.func @transform_4(%arg0: i32) -> (i32, i32) {
    %c0_i32 = arith.constant 0 : i32
    %c0_i32_0 = arith.constant 0 : i32
    %c0_i32_1 = arith.constant 0 : i32
    return %c0_i32, %c0_i32_0 : i32, i32
  }
  func.func @transform_5(%arg0: i32) -> (i32, i32) {
    %c0_i32 = arith.constant 0 : i32
    %c0_i32_0 = arith.constant 0 : i32
    %c0_i32_1 = arith.constant 0 : i32
    return %c0_i32, %c0_i32_0 : i32, i32
  }
  func.func @transform_6(%arg0: i32) -> (i32, i32) {
    %c0_i32 = arith.constant 0 : i32
    %c0_i32_0 = arith.constant 0 : i32
    %c0_i32_1 = arith.constant 0 : i32
    return %c0_i32, %c0_i32_0 : i32, i32
  }
  func.func @transform_7(%arg0: i32) -> (i32, i32) {
    %c0_i32 = arith.constant 0 : i32
    %c0_i32_0 = arith.constant 0 : i32
    %c0_i32_1 = arith.constant 0 : i32
    return %c0_i32, %c0_i32_0 : i32, i32
  }
  func.func @transform_8(%arg0: i32) -> (i32, i32) {
    %c0_i32 = arith.constant 0 : i32
    %c0_i32_0 = arith.constant 0 : i32
    %c0_i32_1 = arith.constant 0 : i32
    return %c0_i32, %c0_i32_0 : i32, i32
  }
  func.func @transform_9(%arg0: i32) -> (i32, i32) {
    %c0_i32 = arith.constant 0 : i32
    %c0_i32_0 = arith.constant 0 : i32
    %c0_i32_1 = arith.constant 0 : i32
    return %c0_i32, %c0_i32_0 : i32, i32
  }
}

</mosaic_0001>

<bundles_post_ra>
// kernel: img_clf_net_forward.2
= control target key start
LH: loop header
LB: loop body
LE: loop exit
PB: predicated region body
PF: predicated region fallthrough
CT: control target
= control target key end

     0   :  { %vm65_vm0 = vcmask 1042432   ;;  %v989_v3 = vmov 0.0   ;;  %vm61_vm1 = vcmask 613376   ;;  %vm836_vm2 = vcmask 62464   ;;  %s1551_s0 = inlined_call_operand.vmem [shape: f32[4,75,392], index: 0, kind: input, shape index: {}]   ;;  %s1552_s1 = inlined_call_operand.vmem [shape: f32[6,75], index: 1, kind: input, shape index: {}]   ;;  %s1553_s2 = inlined_call_operand.vmem [shape: f32[6,1], index: 2, kind: input, shape index: {}]   ;;  %s1554_s3 = inlined_call_operand.vmem [shape: f32[6,392], index: 3, kind: output, shape index: {}]  }
   0x1   :  { %v53_v0 = vld [vmem:[%s1551_s0 + $0x128] sm:$0x7]  ;;  %v55_v1 = vld [vmem:[%s1551_s0 + $0x138] sm:$0x7]  ;;  %v52_v2 = vld [vmem:[%s1551_s0 + $0x120] sm:$0x7]  ;;  %142 = vmatprep.mubr.f32.mxu0 %v989_v3  ;;  %213 = vmatprep.mubr.f32.mxu1 %v989_v3 }
   0x2   :  { %842 = vmatprep.subr.msk.mxu0 %vm65_vm0, %v53_v0  ;;  %845 = vmatprep.subr.msk.mxu1 %vm65_vm0, %v55_v1  ;;  %v54_v4 = vld [vmem:[%s1551_s0 + $0x130] sm:$0x7]  ;;  %v49_v5 = vld [vmem:[%s1551_s0 + $0x108] sm:$0xff]  ;;  %v51_v6 = vld [vmem:[%s1551_s0 + $0x118] sm:$0xff] }
   0x3   :  { %843 = vmatpush1.msk.msra.mxu0 %vm65_vm0, %v52_v2  ;;  %846 = vmatpush1.msk.msra.mxu1 %vm65_vm0, %v54_v4  ;;  %v48_v7 = vld [vmem:[%s1551_s0 + $0x100] sm:$0xff]  ;;  %v50_v8 = vld [vmem:[%s1551_s0 + $0x110] sm:$0xff]  ;;  %v45_v9 = vld [vmem:[%s1551_s0 + $0xe8] sm:$0xff] }
   0x4   :  { %92 = vmatprep.subr.mxu0 %v49_v5  ;;  %163 = vmatprep.subr.mxu1 %v51_v6  ;;  %v47_v10 = vld [vmem:[%s1551_s0 + $0xf8] sm:$0xff]  ;;  %v44_v11 = vld [vmem:[%s1551_s0 + $0xe0] sm:$0xff]  ;;  %v46_v12 = vld [vmem:[%s1551_s0 + $0xf0] sm:$0xff] }
   0x5   :  { %93 = vmatpush1.msra.mxu0 %v48_v7  ;;  %164 = vmatpush1.msra.mxu1 %v50_v8  ;;  %v41_v13 = vld [vmem:[%s1551_s0 + $0xc8] sm:$0xff]  ;;  %v43_v14 = vld [vmem:[%s1551_s0 + $0xd8] sm:$0xff]  ;;  %v40_v15 = vld [vmem:[%s1551_s0 + $0xc0] sm:$0xff] }
   0x6   :  { %94 = vmatprep.subr.mxu0 %v45_v9  ;;  %165 = vmatprep.subr.mxu1 %v47_v10  ;;  %v42_v16 = vld [vmem:[%s1551_s0 + $0xd0] sm:$0xff]  ;;  %v37_v17 = vld [vmem:[%s1551_s0 + $0xa8] sm:$0xff]  ;;  %v39_v18 = vld [vmem:[%s1551_s0 + $0xb8] sm:$0xff] }
   0x7   :  { %95 = vmatpush1.msra.mxu0 %v44_v11  ;;  %166 = vmatpush1.msra.mxu1 %v46_v12  ;;  %v36_v19 = vld [vmem:[%s1551_s0 + $0xa0] sm:$0xff]  ;;  %v38_v20 = vld [vmem:[%s1551_s0 + $0xb0] sm:$0xff]  ;;  %v33_v21 = vld [vmem:[%s1551_s0 + $0x88] sm:$0xff] }
   0x8   :  { %96 = vmatprep.subr.mxu0 %v41_v13  ;;  %167 = vmatprep.subr.mxu1 %v43_v14  ;;  %v35_v22 = vld [vmem:[%s1551_s0 + $0x98] sm:$0xff]  ;;  %v32_v23 = vld [vmem:[%s1551_s0 + $0x80] sm:$0xff]  ;;  %v34_v24 = vld [vmem:[%s1551_s0 + $0x90] sm:$0xff] }
   0x9   :  { %97 = vmatpush1.msra.mxu0 %v40_v15  ;;  %168 = vmatpush1.msra.mxu1 %v42_v16  ;;  %v29_v25 = vld [vmem:[%s1551_s0 + $0x68] sm:$0xff]  ;;  %v31_v26 = vld [vmem:[%s1551_s0 + $0x78] sm:$0xff]  ;;  %v28_v27 = vld [vmem:[%s1551_s0 + $0x60] sm:$0xff] }
   0xa   :  { %98 = vmatprep.subr.mxu0 %v37_v17  ;;  %169 = vmatprep.subr.mxu1 %v39_v18  ;;  %v30_v28 = vld [vmem:[%s1551_s0 + $0x70] sm:$0xff]  ;;  %v25_v29 = vld [vmem:[%s1551_s0 + $0x48] sm:$0xff]  ;;  %v27_v30 = vld [vmem:[%s1551_s0 + $0x58] sm:$0xff] }
   0xb   :  { %99 = vmatpush1.msra.mxu0 %v36_v19  ;;  %170 = vmatpush1.msra.mxu1 %v38_v20  ;;  %v24_v31 = vld [vmem:[%s1551_s0 + $0x40] sm:$0xff]  ;;  %v26_v32 = vld [vmem:[%s1551_s0 + $0x50] sm:$0xff]  ;;  %v21_v33 = vld [vmem:[%s1551_s0 + $0x28] sm:$0xff] }
   0xc   :  { %100 = vmatprep.subr.mxu0 %v33_v21  ;;  %171 = vmatprep.subr.mxu1 %v35_v22  ;;  %v23_v34 = vld [vmem:[%s1551_s0 + $0x38] sm:$0xff]  ;;  %v20_v35 = vld [vmem:[%s1551_s0 + $0x20] sm:$0xff]  ;;  %v22_v36 = vld [vmem:[%s1551_s0 + $0x30] sm:$0xff] }
   0xd   :  { %101 = vmatpush1.msra.mxu0 %v32_v23  ;;  %172 = vmatpush1.msra.mxu1 %v34_v24  ;;  %v17_v37 = vld [vmem:[%s1551_s0 + $0x8] sm:$0xff]  ;;  %v19_v38 = vld [vmem:[%s1551_s0 + $0x18] sm:$0xff]  ;;  %v16_v39 = vld [vmem:[%s1551_s0] sm:$0xff] }
   0xe   :  { %102 = vmatprep.subr.mxu0 %v29_v25  ;;  %173 = vmatprep.subr.mxu1 %v31_v26  ;;  %v18_v40 = vld [vmem:[%s1551_s0 + $0x10] sm:$0xff]  ;;  %v1140_v41 = vld [vmem:[%s1552_s1] sm:$0x3f]  ;;  %v885_v42 = vld [vmem:[%s1551_s0 + $0x268] sm:$0x7] }
   0xf   :  { %103 = vmatpush1.msra.mxu0 %v28_v27  ;;  %174 = vmatpush1.msra.mxu1 %v30_v28  ;;  %v887_v43 = vld [vmem:[%s1551_s0 + $0x278] sm:$0x7]  ;;  %v884_v44 = vld [vmem:[%s1551_s0 + $0x260] sm:$0x7]  ;;  %v886_v45 = vld [vmem:[%s1551_s0 + $0x270] sm:$0x7] }
  0x10   :  { %104 = vmatprep.subr.mxu0 %v25_v29  ;;  %175 = vmatprep.subr.mxu1 %v27_v30  ;;  %v881_v46 = vld [vmem:[%s1551_s0 + $0x248] sm:$0xff]  ;;  %v883_v47 = vld [vmem:[%s1551_s0 + $0x258] sm:$0xff]  ;;  %v880_v48 = vld [vmem:[%s1551_s0 + $0x240] sm:$0xff] }
  0x11   :  { %105 = vmatpush1.msra.mxu0 %v24_v31  ;;  %176 = vmatpush1.msra.mxu1 %v26_v32  ;;  %v882_v49 = vld [vmem:[%s1551_s0 + $0x250] sm:$0xff]  ;;  %v877_v50 = vld [vmem:[%s1551_s0 + $0x228] sm:$0xff]  ;;  %v879_v51 = vld [vmem:[%s1551_s0 + $0x238] sm:$0xff] }
  0x12   :  { %106 = vmatprep.subr.mxu0 %v21_v33  ;;  %177 = vmatprep.subr.mxu1 %v23_v34  ;;  %v876_v52 = vld [vmem:[%s1551_s0 + $0x220] sm:$0xff]  ;;  %v878_v53 = vld [vmem:[%s1551_s0 + $0x230] sm:$0xff]  ;;  %v873_v54 = vld [vmem:[%s1551_s0 + $0x208] sm:$0xff] }
  0x13   :  { %107 = vmatpush1.msra.mxu0 %v20_v35  ;;  %178 = vmatpush1.msra.mxu1 %v22_v36  ;;  %v875_v55 = vld [vmem:[%s1551_s0 + $0x218] sm:$0xff]  ;;  %v872_v56 = vld [vmem:[%s1551_s0 + $0x200] sm:$0xff]  ;;  %v874_v57 = vld [vmem:[%s1551_s0 + $0x210] sm:$0xff] }
  0x14   :  { %108 = vmatprep.subr.mxu0 %v17_v37  ;;  %179 = vmatprep.subr.mxu1 %v19_v38  ;;  %v869_v58 = vld [vmem:[%s1551_s0 + $0x1e8] sm:$0xff]  ;;  %v871_v59 = vld [vmem:[%s1551_s0 + $0x1f8] sm:$0xff]  ;;  %v868_v60 = vld [vmem:[%s1551_s0 + $0x1e0] sm:$0xff] }
  0x15   :  { %109 = vmatpush1.msra.mxu0 %v16_v39  ;;  %180 = vmatpush1.msra.mxu1 %v18_v40  ;;  %v870_v61 = vld [vmem:[%s1551_s0 + $0x1f0] sm:$0xff]  ;;  %v865_v62 = vld [vmem:[%s1551_s0 + $0x1c8] sm:$0xff]  ;;  %v867_v63 = vld [vmem:[%s1551_s0 + $0x1d8] sm:$0xff] }
  0x16   :  { %844 = vmatmul.mubr.msk.f32.vlgmr.msra.gmra.mxu0 %vm61_vm1, %v1140_v41  ;;  %847 = vmatmul.mubr.msk.f32.vlgmr.msra.gmra.mxu1 %vm61_vm1, %v1140_v41  ;;  %v864_v0 = vld [vmem:[%s1551_s0 + $0x1c0] sm:$0xff]  ;;  %v866_v1 = vld [vmem:[%s1551_s0 + $0x1d0] sm:$0xff]  ;;  %v861_v2 = vld [vmem:[%s1551_s0 + $0x1a8] sm:$0xff] }
  0x17   :  { %888 = vmatprep.subr.msk.mxu0 %vm65_vm0, %v885_v42  ;;  %891 = vmatprep.subr.msk.mxu1 %vm65_vm0, %v887_v43  ;;  %v863_v4 = vld [vmem:[%s1551_s0 + $0x1b8] sm:$0xff]  ;;  %v860_v5 = vld [vmem:[%s1551_s0 + $0x1a0] sm:$0xff]  ;;  %v862_v6 = vld [vmem:[%s1551_s0 + $0x1b0] sm:$0xff] }
  0x18   :  { %889 = vmatpush1.msk.msra.mxu0 %vm65_vm0, %v884_v44  ;;  %892 = vmatpush1.msk.msra.mxu1 %vm65_vm0, %v886_v45  ;;  %v857_v7 = vld [vmem:[%s1551_s0 + $0x188] sm:$0xff]  ;;  %v859_v8 = vld [vmem:[%s1551_s0 + $0x198] sm:$0xff]  ;;  %v856_v9 = vld [vmem:[%s1551_s0 + $0x180] sm:$0xff] }
  0x19   :  { %291 = vmatprep.subr.mxu0 %v881_v46  ;;  %362 = vmatprep.subr.mxu1 %v883_v47  ;;  %v858_v10 = vld [vmem:[%s1551_s0 + $0x190] sm:$0xff]  ;;  %v853_v11 = vld [vmem:[%s1551_s0 + $0x168] sm:$0xff]  ;;  %v855_v12 = vld [vmem:[%s1551_s0 + $0x178] sm:$0xff] }
  0x1a   :  { %292 = vmatpush1.msra.mxu0 %v880_v48  ;;  %363 = vmatpush1.msra.mxu1 %v882_v49  ;;  %v852_v13 = vld [vmem:[%s1551_s0 + $0x160] sm:$0xff]  ;;  %v854_v14 = vld [vmem:[%s1551_s0 + $0x170] sm:$0xff]  ;;  %v849_v15 = vld [vmem:[%s1551_s0 + $0x148] sm:$0xff] }
  0x1b   :  { %293 = vmatprep.subr.mxu0 %v877_v50  ;;  %364 = vmatprep.subr.mxu1 %v879_v51  ;;  %v851_v16 = vld [vmem:[%s1551_s0 + $0x158] sm:$0xff]  ;;  %v848_v17 = vld [vmem:[%s1551_s0 + $0x140] sm:$0xff]  ;;  %v850_v18 = vld [vmem:[%s1551_s0 + $0x150] sm:$0xff] }
  0x1c   :  { %294 = vmatpush1.msra.mxu0 %v876_v52  ;;  %365 = vmatpush1.msra.mxu1 %v878_v53  ;;  %v931_v19 = vld [vmem:[%s1551_s0 + $0x3a8] sm:$0x7]  ;;  %v933_v20 = vld [vmem:[%s1551_s0 + $0x3b8] sm:$0x7]  ;;  %v930_v21 = vld [vmem:[%s1551_s0 + $0x3a0] sm:$0x7] }
  0x1d   :  { %295 = vmatprep.subr.mxu0 %v873_v54  ;;  %366 = vmatprep.subr.mxu1 %v875_v55  ;;  %v932_v22 = vld [vmem:[%s1551_s0 + $0x3b0] sm:$0x7]  ;;  %v927_v23 = vld [vmem:[%s1551_s0 + $0x388] sm:$0xff]  ;;  %v929_v24 = vld [vmem:[%s1551_s0 + $0x398] sm:$0xff] }
  0x1e   :  { %296 = vmatpush1.msra.mxu0 %v872_v56  ;;  %367 = vmatpush1.msra.mxu1 %v874_v57  ;;  %v926_v25 = vld [vmem:[%s1551_s0 + $0x380] sm:$0xff]  ;;  %v928_v26 = vld [vmem:[%s1551_s0 + $0x390] sm:$0xff]  ;;  %v923_v27 = vld [vmem:[%s1551_s0 + $0x368] sm:$0xff] }
  0x1f   :  { %297 = vmatprep.subr.mxu0 %v869_v58  ;;  %368 = vmatprep.subr.mxu1 %v871_v59  ;;  %v925_v28 = vld [vmem:[%s1551_s0 + $0x378] sm:$0xff]  ;;  %v922_v29 = vld [vmem:[%s1551_s0 + $0x360] sm:$0xff]  ;;  %v924_v30 = vld [vmem:[%s1551_s0 + $0x370] sm:$0xff] }
  0x20   :  { %298 = vmatpush1.msra.mxu0 %v868_v60  ;;  %369 = vmatpush1.msra.mxu1 %v870_v61  ;;  %v919_v31 = vld [vmem:[%s1551_s0 + $0x348] sm:$0xff]  ;;  %v921_v32 = vld [vmem:[%s1551_s0 + $0x358] sm:$0xff]  ;;  %v918_v33 = vld [vmem:[%s1551_s0 + $0x340] sm:$0xff] }
  0x21   :  { %299 = vmatprep.subr.mxu0 %v865_v62  ;;  %370 = vmatprep.subr.mxu1 %v867_v63  ;;  %v920_v34 = vld [vmem:[%s1551_s0 + $0x350] sm:$0xff]  ;;  %v915_v35 = vld [vmem:[%s1551_s0 + $0x328] sm:$0xff]  ;;  %v917_v36 = vld [vmem:[%s1551_s0 + $0x338] sm:$0xff] }
  0x22   :  { %300 = vmatpush1.msra.mxu0 %v864_v0  ;;  %371 = vmatpush1.msra.mxu1 %v866_v1  ;;  %v914_v37 = vld [vmem:[%s1551_s0 + $0x320] sm:$0xff]  ;;  %v916_v38 = vld [vmem:[%s1551_s0 + $0x330] sm:$0xff]  ;;  %v911_v39 = vld [vmem:[%s1551_s0 + $0x308] sm:$0xff] }
  0x23   :  { %301 = vmatprep.subr.mxu0 %v861_v2  ;;  %372 = vmatprep.subr.mxu1 %v863_v4  ;;  %v913_v40 = vld [vmem:[%s1551_s0 + $0x318] sm:$0xff]  ;;  %v910_v42 = vld [vmem:[%s1551_s0 + $0x300] sm:$0xff]  ;;  %v912_v43 = vld [vmem:[%s1551_s0 + $0x310] sm:$0xff] }
  0x24   :  { %302 = vmatpush1.msra.mxu0 %v860_v5  ;;  %373 = vmatpush1.msra.mxu1 %v862_v6  ;;  %v907_v44 = vld [vmem:[%s1551_s0 + $0x2e8] sm:$0xff]  ;;  %v909_v45 = vld [vmem:[%s1551_s0 + $0x2f8] sm:$0xff]  ;;  %v906_v46 = vld [vmem:[%s1551_s0 + $0x2e0] sm:$0xff] }
  0x25   :  { %303 = vmatprep.subr.mxu0 %v857_v7  ;;  %374 = vmatprep.subr.mxu1 %v859_v8  ;;  %v908_v47 = vld [vmem:[%s1551_s0 + $0x2f0] sm:$0xff]  ;;  %v903_v48 = vld [vmem:[%s1551_s0 + $0x2c8] sm:$0xff]  ;;  %v905_v49 = vld [vmem:[%s1551_s0 + $0x2d8] sm:$0xff] }
  0x26   :  { %304 = vmatpush1.msra.mxu0 %v856_v9  ;;  %375 = vmatpush1.msra.mxu1 %v858_v10  ;;  %v902_v50 = vld [vmem:[%s1551_s0 + $0x2c0] sm:$0xff]  ;;  %v904_v51 = vld [vmem:[%s1551_s0 + $0x2d0] sm:$0xff]  ;;  %v899_v52 = vld [vmem:[%s1551_s0 + $0x2a8] sm:$0xff] }
  0x27   :  { %305 = vmatprep.subr.mxu0 %v853_v11  ;;  %376 = vmatprep.subr.mxu1 %v855_v12  ;;  %v901_v53 = vld [vmem:[%s1551_s0 + $0x2b8] sm:$0xff]  ;;  %v898_v54 = vld [vmem:[%s1551_s0 + $0x2a0] sm:$0xff]  ;;  %v900_v55 = vld [vmem:[%s1551_s0 + $0x2b0] sm:$0xff] }
  0x28   :  { %306 = vmatpush1.msra.mxu0 %v852_v13  ;;  %377 = vmatpush1.msra.mxu1 %v854_v14  ;;  %v895_v56 = vld [vmem:[%s1551_s0 + $0x288] sm:$0xff]  ;;  %v897_v57 = vld [vmem:[%s1551_s0 + $0x298] sm:$0xff]  ;;  %v894_v58 = vld [vmem:[%s1551_s0 + $0x280] sm:$0xff] }
  0x29   :  { %307 = vmatprep.subr.mxu0 %v849_v15  ;;  %378 = vmatprep.subr.mxu1 %v851_v16  ;;  %v896_v59 = vld [vmem:[%s1551_s0 + $0x290] sm:$0xff]  ;;  %v977_v60 = vld [vmem:[%s1551_s0 + $0x4e8] sm:$0x7]  ;;  %v979_v61 = vld [vmem:[%s1551_s0 + $0x4f8] sm:$0x7] }
  0x2a   :  { %308 = vmatpush1.msra.mxu0 %v848_v17  ;;  %341 = vmatprep.mubr.f32.mxu0 %v989_v3  ;;  %v976_v62 = vld [vmem:[%s1551_s0 + $0x4e0] sm:$0x7]  ;;  %v978_v63 = vld [vmem:[%s1551_s0 + $0x4f0] sm:$0x7]  ;;  %v973_v0 = vld [vmem:[%s1551_s0 + $0x4c8] sm:$0xff] }
  0x2b   :  { %379 = vmatpush1.msra.mxu1 %v850_v18  ;;  %412 = vmatprep.mubr.f32.mxu1 %v989_v3  ;;  %v975_v1 = vld [vmem:[%s1551_s0 + $0x4d8] sm:$0xff]  ;;  %v972_v2 = vld [vmem:[%s1551_s0 + $0x4c0] sm:$0xff]  ;;  %v974_v4 = vld [vmem:[%s1551_s0 + $0x4d0] sm:$0xff] }
  0x2c   :  { %890 = vmatmul.mubr.msk.f32.vlgmr.msra.gmra.mxu0 %vm61_vm1, %v1140_v41  ;;  %893 = vmatmul.mubr.msk.f32.vlgmr.msra.gmra.mxu1 %vm61_vm1, %v1140_v41  ;;  %v969_v5 = vld [vmem:[%s1551_s0 + $0x4a8] sm:$0xff]  ;;  %v971_v6 = vld [vmem:[%s1551_s0 + $0x4b8] sm:$0xff]  ;;  %v968_v7 = vld [vmem:[%s1551_s0 + $0x4a0] sm:$0xff] }
  0x2d   :  { %934 = vmatprep.subr.msk.mxu0 %vm65_vm0, %v931_v19  ;;  %937 = vmatprep.subr.msk.mxu1 %vm65_vm0, %v933_v20  ;;  %v970_v8 = vld [vmem:[%s1551_s0 + $0x4b0] sm:$0xff]  ;;  %v965_v9 = vld [vmem:[%s1551_s0 + $0x488] sm:$0xff]  ;;  %v967_v10 = vld [vmem:[%s1551_s0 + $0x498] sm:$0xff] }
  0x2e   :  { %935 = vmatpush1.msk.msra.mxu0 %vm65_vm0, %v930_v21  ;;  %938 = vmatpush1.msk.msra.mxu1 %vm65_vm0, %v932_v22  ;;  %v964_v11 = vld [vmem:[%s1551_s0 + $0x480] sm:$0xff]  ;;  %v966_v12 = vld [vmem:[%s1551_s0 + $0x490] sm:$0xff]  ;;  %v961_v13 = vld [vmem:[%s1551_s0 + $0x468] sm:$0xff] }
  0x2f   :  { %494 = vmatprep.subr.mxu0 %v927_v23  ;;  %565 = vmatprep.subr.mxu1 %v929_v24  ;;  %v963_v14 = vld [vmem:[%s1551_s0 + $0x478] sm:$0xff]  ;;  %v960_v15 = vld [vmem:[%s1551_s0 + $0x460] sm:$0xff]  ;;  %v962_v16 = vld [vmem:[%s1551_s0 + $0x470] sm:$0xff] }
  0x30   :  { %495 = vmatpush1.msra.mxu0 %v926_v25  ;;  %566 = vmatpush1.msra.mxu1 %v928_v26  ;;  %v957_v17 = vld [vmem:[%s1551_s0 + $0x448] sm:$0xff]  ;;  %v959_v18 = vld [vmem:[%s1551_s0 + $0x458] sm:$0xff]  ;;  %v956_v19 = vld [vmem:[%s1551_s0 + $0x440] sm:$0xff] }
  0x31   :  { %496 = vmatprep.subr.mxu0 %v923_v27  ;;  %567 = vmatprep.subr.mxu1 %v925_v28  ;;  %v958_v20 = vld [vmem:[%s1551_s0 + $0x450] sm:$0xff]  ;;  %v953_v21 = vld [vmem:[%s1551_s0 + $0x428] sm:$0xff]  ;;  %v955_v22 = vld [vmem:[%s1551_s0 + $0x438] sm:$0xff] }
  0x32   :  { %497 = vmatpush1.msra.mxu0 %v922_v29  ;;  %568 = vmatpush1.msra.mxu1 %v924_v30  ;;  %v952_v23 = vld [vmem:[%s1551_s0 + $0x420] sm:$0xff]  ;;  %v954_v24 = vld [vmem:[%s1551_s0 + $0x430] sm:$0xff]  ;;  %v949_v25 = vld [vmem:[%s1551_s0 + $0x408] sm:$0xff] }
  0x33   :  { %498 = vmatprep.subr.mxu0 %v919_v31  ;;  %569 = vmatprep.subr.mxu1 %v921_v32  ;;  %v951_v26 = vld [vmem:[%s1551_s0 + $0x418] sm:$0xff]  ;;  %v948_v27 = vld [vmem:[%s1551_s0 + $0x400] sm:$0xff]  ;;  %v950_v28 = vld [vmem:[%s1551_s0 + $0x410] sm:$0xff] }
  0x34   :  { %499 = vmatpush1.msra.mxu0 %v918_v33  ;;  %570 = vmatpush1.msra.mxu1 %v920_v34  ;;  %v945_v29 = vld [vmem:[%s1551_s0 + $0x3e8] sm:$0xff]  ;;  %v947_v30 = vld [vmem:[%s1551_s0 + $0x3f8] sm:$0xff]  ;;  %v944_v31 = vld [vmem:[%s1551_s0 + $0x3e0] sm:$0xff] }
  0x35   :  { %500 = vmatprep.subr.mxu0 %v915_v35  ;;  %571 = vmatprep.subr.mxu1 %v917_v36  ;;  %v946_v32 = vld [vmem:[%s1551_s0 + $0x3f0] sm:$0xff]  ;;  %v941_v33 = vld [vmem:[%s1551_s0 + $0x3c8] sm:$0xff]  ;;  %v943_v34 = vld [vmem:[%s1551_s0 + $0x3d8] sm:$0xff] }
  0x36   :  { %501 = vmatpush1.msra.mxu0 %v914_v37  ;;  %572 = vmatpush1.msra.mxu1 %v916_v38  ;;  %v940_v35 = vld [vmem:[%s1551_s0 + $0x3c0] sm:$0xff]  ;;  %v942_v36 = vld [vmem:[%s1551_s0 + $0x3d0] sm:$0xff]  ;;  %v990_v38 = vmov 0  }
  0x37   :  { %502 = vmatprep.subr.mxu0 %v911_v39  ;;  %573 = vmatprep.subr.mxu1 %v913_v40  ;;  %v15_v37 = vld [vmem:[%s1553_s2] sm:$0x3f] }
  0x38   :  { %503 = vmatpush1.msra.mxu0 %v910_v42  ;;  %574 = vmatpush1.msra.mxu1 %v912_v43 }
  0x39   :  { %504 = vmatprep.subr.mxu0 %v907_v44  ;;  %575 = vmatprep.subr.mxu1 %v909_v45 }
  0x3a   :  { %505 = vmatpush1.msra.mxu0 %v906_v46  ;;  %576 = vmatpush1.msra.mxu1 %v908_v47 }
  0x3b   :  { %506 = vmatprep.subr.mxu0 %v903_v48  ;;  %577 = vmatprep.subr.mxu1 %v905_v49 }
  0x3c   :  { %507 = vmatpush1.msra.mxu0 %v902_v50  ;;  %578 = vmatpush1.msra.mxu1 %v904_v51 }
  0x3d   :  { %508 = vmatprep.subr.mxu0 %v899_v52  ;;  %579 = vmatprep.subr.mxu1 %v901_v53 }
  0x3e   :  { %509 = vmatpush1.msra.mxu0 %v898_v54  ;;  %580 = vmatpush1.msra.mxu1 %v900_v55 }
  0x3f   :  { %510 = vmatprep.subr.mxu0 %v895_v56  ;;  %581 = vmatprep.subr.mxu1 %v897_v57 }
  0x40   :  { %511 = vmatpush1.msra.mxu0 %v894_v58  ;;  %544 = vmatprep.mubr.f32.mxu0 %v989_v3 }
  0x41   :  { %582 = vmatpush1.msra.mxu1 %v896_v59  ;;  %615 = vmatprep.mubr.f32.mxu1 %v989_v3 }
  0x42   :  { %936 = vmatmul.mubr.msk.f32.vlgmr.msra.gmra.mxu0 %vm61_vm1, %v1140_v41  ;;  %939 = vmatmul.mubr.msk.f32.vlgmr.msra.gmra.mxu1 %vm61_vm1, %v1140_v41 }
  0x43   :  { %980 = vmatprep.subr.msk.mxu0 %vm65_vm0, %v977_v60  ;;  %983 = vmatprep.subr.msk.mxu1 %vm65_vm0, %v979_v61 }
  0x44   :  { %981 = vmatpush1.msk.msra.mxu0 %vm65_vm0, %v976_v62  ;;  %984 = vmatpush1.msk.msra.mxu1 %vm65_vm0, %v978_v63 }
  0x45   :  { %697 = vmatprep.subr.mxu0 %v973_v0  ;;  %768 = vmatprep.subr.mxu1 %v975_v1 }
  0x46   :  { %698 = vmatpush1.msra.mxu0 %v972_v2  ;;  %769 = vmatpush1.msra.mxu1 %v974_v4 }
  0x47   :  { %699 = vmatprep.subr.mxu0 %v969_v5  ;;  %770 = vmatprep.subr.mxu1 %v971_v6 }
  0x48   :  { %700 = vmatpush1.msra.mxu0 %v968_v7  ;;  %771 = vmatpush1.msra.mxu1 %v970_v8 }
  0x49   :  { %701 = vmatprep.subr.mxu0 %v965_v9  ;;  %772 = vmatprep.subr.mxu1 %v967_v10 }
  0x4a   :  { %702 = vmatpush1.msra.mxu0 %v964_v11  ;;  %773 = vmatpush1.msra.mxu1 %v966_v12 }
  0x4b   :  { %703 = vmatprep.subr.mxu0 %v961_v13  ;;  %774 = vmatprep.subr.mxu1 %v963_v14 }
  0x4c   :  { %704 = vmatpush1.msra.mxu0 %v960_v15  ;;  %775 = vmatpush1.msra.mxu1 %v962_v16 }
  0x4d   :  { %705 = vmatprep.subr.mxu0 %v957_v17  ;;  %776 = vmatprep.subr.mxu1 %v959_v18 }
  0x4e   :  { %706 = vmatpush1.msra.mxu0 %v956_v19  ;;  %777 = vmatpush1.msra.mxu1 %v958_v20 }
  0x4f   :  { %707 = vmatprep.subr.mxu0 %v953_v21  ;;  %778 = vmatprep.subr.mxu1 %v955_v22 }
  0x50   :  { %708 = vmatpush1.msra.mxu0 %v952_v23  ;;  %779 = vmatpush1.msra.mxu1 %v954_v24 }
  0x51   :  { %709 = vmatprep.subr.mxu0 %v949_v25  ;;  %780 = vmatprep.subr.mxu1 %v951_v26 }
  0x52   :  { %710 = vmatpush1.msra.mxu0 %v948_v27  ;;  %781 = vmatpush1.msra.mxu1 %v950_v28 }
  0x53   :  { %711 = vmatprep.subr.mxu0 %v945_v29  ;;  %782 = vmatprep.subr.mxu1 %v947_v30 }
  0x54   :  { %712 = vmatpush1.msra.mxu0 %v944_v31  ;;  %783 = vmatpush1.msra.mxu1 %v946_v32 }
  0x55   :  { %713 = vmatprep.subr.mxu0 %v941_v33  ;;  %784 = vmatprep.subr.mxu1 %v943_v34 }
  0x56   :  { %714 = vmatpush1.msra.mxu0 %v940_v35  ;;  %747 = vmatprep.mubr.f32.mxu0 %v989_v3 }
  0x57   :  { %785 = vmatpush1.msra.mxu1 %v942_v36  ;;  %818 = vmatprep.mubr.f32.mxu1 %v989_v3 }
  0x58   :  { %982 = vmatmul.mubr.msk.f32.vlgmr.msra.gmra.mxu0 %vm61_vm1, %v1140_v41  ;;  %985 = vmatmul.mubr.msk.f32.vlgmr.msra.gmra.mxu1 %vm61_vm1, %v1140_v41 }
  0x59   :  { %988 = vset.pattern.permute.xlu0 %v990_v38 }
  0x5a   :  { %58 = vperm.xlu0 %988, %v15_v37  }
  0xd5   :  { %v59_v49 = vpop.permute.xlu0 %58 }
  0xd6   :  { %v144_v39 = vpop.f32.mrf.mxu0  ;;  %v215_v40 = vpop.f32.mrf.mxu1 }
  0xd7   :  { %v145_v52 = vadd.f32 %v144_v39, %v59_v49  ;;  %v216_v53 = vadd.f32 %v215_v40, %v59_v49 }
  0xd8   :  { %v146_v42 = vpop.f32.mrf.mxu0  ;;  %v217_v43 = vpop.f32.mrf.mxu1 }
  0xd9   :  { %v147_v59 = vadd.f32 %v146_v42, %v59_v49  ;;  %v218_v60 = vadd.f32 %v217_v43, %v59_v49  ;;  %v220_v1 = vmax.f32 %v145_v52, 0.0  ;;  %v222_v2 = vmax.f32 %v216_v53, 0.0 }
  0xdb   :  { %v221_v8 = vmax.f32 %v147_v59, 0.0  ;;  %v223_v9 = vmax.f32 %v218_v60, 0.0 }
  0xec   :  { %v343_v44 = vpop.f32.mrf.mxu0  ;;  %v414_v45 = vpop.f32.mrf.mxu1 }
  0xed   :  { %v344_v50 = vadd.f32 %v343_v44, %v59_v49  ;;  %v415_v51 = vadd.f32 %v414_v45, %v59_v49 }
  0xee   :  { %v345_v3 = vpop.f32.mrf.mxu0  ;;  %v416_v46 = vpop.f32.mrf.mxu1 }
  0xef   :  { %v346_v55 = vadd.f32 %v345_v3, %v59_v49  ;;  %v417_v56 = vadd.f32 %v416_v46, %v59_v49  ;;  %v419_v61 = vmax.f32 %v344_v50, 0.0  ;;  %v421_v62 = vmax.f32 %v415_v51, 0.0 }
  0xf1   :  { %v420_v4 = vmax.f32 %v346_v55, 0.0  ;;  %v422_v5 = vmax.f32 %v417_v56, 0.0  ;;  %v423_v10 = vmax.f32 %v220_v1, %v419_v61  ;;  %v425_v11 = vmax.f32 %v222_v2, %v421_v62 }
  0xf3   :  { %v424_v18 = vmax.f32 %v221_v8, %v420_v4  ;;  %v426_v19 = vmax.f32 %v223_v9, %v422_v5 }
 0x102   :  { %v546_v47 = vpop.f32.mrf.mxu0  ;;  %v617_v48 = vpop.f32.mrf.mxu1 }
 0x103   :  { %v547_v57 = vadd.f32 %v546_v47, %v59_v49  ;;  %v618_v58 = vadd.f32 %v617_v48, %v59_v49 }
 0x104   :  { %v548_v54 = vpop.f32.mrf.mxu0  ;;  %v619_v41 = vpop.f32.mrf.mxu1 }
 0x105   :  { %v549_v63 = vadd.f32 %v548_v54, %v59_v49  ;;  %v620_v0 = vadd.f32 %v619_v41, %v59_v49  ;;  %v622_v6 = vmax.f32 %v547_v57, 0.0  ;;  %v624_v7 = vmax.f32 %v618_v58, 0.0 }
 0x107   :  { %v623_v12 = vmax.f32 %v549_v63, 0.0  ;;  %v625_v13 = vmax.f32 %v620_v0, 0.0  ;;  %v626_v20 = vmax.f32 %v423_v10, %v622_v6  ;;  %v628_v21 = vmax.f32 %v425_v11, %v624_v7 }
 0x109   :  { %v627_v28 = vmax.f32 %v424_v18, %v623_v12  ;;  %v629_v29 = vmax.f32 %v426_v19, %v625_v13 }
 0x118   :  { %v749_v14 = vpop.f32.mrf.mxu0  ;;  %v820_v15 = vpop.f32.mrf.mxu1 }
 0x119   :  { %v750_v16 = vadd.f32 %v749_v14, %v59_v49  ;;  %v821_v17 = vadd.f32 %v820_v15, %v59_v49 }
 0x11a   :  { %v751_v22 = vpop.f32.mrf.mxu0  ;;  %v822_v23 = vpop.f32.mrf.mxu1 }
 0x11b   :  { %v825_v24 = vmax.f32 %v750_v16, 0.0  ;;  %v827_v25 = vmax.f32 %v821_v17, 0.0  ;;  %v752_v26 = vadd.f32 %v751_v22, %v59_v49  ;;  %v823_v27 = vadd.f32 %v822_v23, %v59_v49 }
 0x11d   :  { %v829_v30 = vmax.f32 %v626_v20, %v825_v24  ;;  %v831_v31 = vmax.f32 %v628_v21, %v827_v25  ;;  %v826_v32 = vmax.f32 %v752_v26, 0.0  ;;  %v828_v33 = vmax.f32 %v823_v27, 0.0 }
 0x11f   :  { %833 = vst [vmem:[%s1554_s3] sm:$0x3f] %v829_v30  ;;  %835 = vst [vmem:[%s1554_s3 + $0x10] sm:$0x3f] %v831_v31  ;;  %v830_v34 = vmax.f32 %v627_v28, %v826_v32  ;;  %v832_v35 = vmax.f32 %v629_v29, %v828_v33 }
 0x121   :  { %834 = vst [vmem:[%s1554_s3 + $0x8] sm:$0x3f] %v830_v34  ;;  %837 = vst.msk [vmem:[%s1554_s3 + $0x18] sm:$0x3f] %vm836_vm2, %v832_v35 }

// kernel: img_clf_net_forward.3
= control target key start
LH: loop header
LB: loop body
LE: loop exit
PB: predicated region body
PF: predicated region fallthrough
CT: control target
= control target key end

     0   :  { %v9075_v0 = vmov 0.0   ;;  %vm74_vm0 = vcmask 1045504   ;;  %vm67_vm1 = vcmask 179200   ;;  %vm9077_vm2 = vmmov 0   ;;  %s9079_s24 = smov 126   ;;  %s9080_s25 = smov 122   ;;  %s12585_s0 = inlined_call_operand.vmem [shape: f32[4,150,50], index: 0, kind: input, shape index: {}]   ;;  %s12586_s1 = inlined_call_operand.vmem [shape: f32[16,150], index: 1, kind: input, shape index: {}]   ;;  %s12587_s2 = inlined_call_operand.vmem [shape: f32[16,1], index: 2, kind: input, shape index: {}]   ;;  %s12588_s4 = inlined_call_operand.vmem [shape: f32[120,1], index: 4, kind: input, shape index: {}]   ;;  %s12589_s3 = inlined_call_operand.vmem [shape: f32[25,120,16], index: 3, kind: input, shape index: {}]   ;;  %s12590_s6 = inlined_call_operand.vmem [shape: f32[84,1], index: 6, kind: input, shape index: {}]   ;;  %s12591_s8 = inlined_call_operand.vmem [shape: f32[10,1], index: 8, kind: input, shape index: {}]   ;;  %s12592_s5 = inlined_call_operand.vmem [shape: f32[84,120], index: 5, kind: input, shape index: {}]   ;;  %s12593_s7 = inlined_call_operand.vmem [shape: f32[10,84], index: 7, kind: input, shape index: {}]   ;;  %s12594_s9 = inlined_call_operand.vmem [shape: f32[10,2], index: 9, kind: output, shape index: {}]  }
   0x1   :  { %78 = vmatprep.subr.mxu0 %v9075_v0  ;;  %178 = vmatprep.subr.mxu1 %v9075_v0  ;;  %v53_v1 = vld [vmem:[%s12585_s0 + $0x78] sm:$0xff]  ;;  %v6465_v2 = vld [vmem:[%s12585_s0 + $0x110] sm:$0xff]  ;;  %v6464_v4 = vld [vmem:[%s12585_s0 + $0x108] sm:$0xff]  ;;  %s9081_s26 = smov 120   ;;  %s9082_s27 = smov 118   ;;  %vm500_vm3 = vcmask 130048  }
   0x2   :  { %v52_v3 = vld [vmem:[%s12585_s0 + $0x70] sm:$0xff]  ;;  %79 = vmatpush1.msra.mxu0 %v53_v1  ;;  %179 = vmatpush1.msra.mxu1 %v6465_v2  ;;  %v51_v5 = vld [vmem:[%s12585_s0 + $0x68] sm:$0xff]  ;;  %v6463_v6 = vld [vmem:[%s12585_s0 + $0x100] sm:$0xff]  ;;  %s9083_s28 = smov 116   ;;  %s9084_s29 = smov 114   ;;  %vm6174_vm4 = vcmask 982016  }
   0x3   :  { %80 = vmatprep.subr.mxu0 %v9075_v0  ;;  %180 = vmatprep.subr.mxu1 %v9075_v0  ;;  %v50_v7 = vld [vmem:[%s12585_s0 + $0x60] sm:$0xff]  ;;  %v6462_v8 = vld [vmem:[%s12585_s0 + $0xf8] sm:$0xff]  ;;  %v6461_v10 = vld [vmem:[%s12585_s0 + $0xf0] sm:$0xff]  ;;  %s9085_s30 = smov 112   ;;  %s9086_s10 = smov 110   ;;  %vm6353_vm5 = vcmask 687104  }
   0x4   :  { %81 = vmatpush1.msra.mxu0 %v52_v3  ;;  %181 = vmatpush1.msra.mxu1 %v6464_v4  ;;  %v49_v9 = vld [vmem:[%s12585_s0 + $0x58] sm:$0xff]  ;;  %v48_v11 = vld [vmem:[%s12585_s0 + $0x50] sm:$0xff]  ;;  %v6460_v12 = vld [vmem:[%s12585_s0 + $0xe8] sm:$0xff]  ;;  %s9087_s11 = smov 108   ;;  %s9088_s12 = smov 106   ;;  %vm6360_vm6 = vcmask 1043456  }
   0x5   :  { %82 = vmatprep.subr.mxu0 %v9075_v0  ;;  %182 = vmatprep.subr.mxu1 %v9075_v0  ;;  %v47_v13 = vld [vmem:[%s12585_s0 + $0x48] sm:$0xff]  ;;  %v6459_v14 = vld [vmem:[%s12585_s0 + $0xe0] sm:$0xff]  ;;  %v6458_v16 = vld [vmem:[%s12585_s0 + $0xd8] sm:$0xff]  ;;  %s9089_s13 = smov 104   ;;  %s9091_s14 = smov 100   ;;  %vm6441_vm7 = vcmask 9216  }
   0x6   :  { %83 = vmatpush1.msra.mxu0 %v51_v5  ;;  %183 = vmatpush1.msra.mxu1 %v6463_v6  ;;  %v46_v15 = vld [vmem:[%s12585_s0 + $0x40] sm:$0xff]  ;;  %v45_v17 = vld [vmem:[%s12585_s0 + $0x38] sm:$0xff]  ;;  %v6457_v18 = vld [vmem:[%s12585_s0 + $0xd0] sm:$0xff]  ;;  %s9092_s15 = smov 98   ;;  %s9093_s16 = smov 96   ;;  %vm6439_vm8 = vcmask 15360  }
   0x7   :  { %84 = vmatprep.subr.mxu0 %v9075_v0  ;;  %184 = vmatprep.subr.mxu1 %v9075_v0  ;;  %v44_v19 = vld [vmem:[%s12585_s0 + $0x30] sm:$0xff]  ;;  %v6456_v20 = vld [vmem:[%s12585_s0 + $0xc8] sm:$0xff]  ;;  %v6455_v22 = vld [vmem:[%s12585_s0 + $0xc0] sm:$0xff]  ;;  %s9094_s17 = smov 94   ;;  %s9095_s18 = smov 92  }
   0x8   :  { %85 = vmatpush1.msra.mxu0 %v50_v7  ;;  %185 = vmatpush1.msra.mxu1 %v6462_v8  ;;  %v43_v21 = vld [vmem:[%s12585_s0 + $0x28] sm:$0xff]  ;;  %v42_v23 = vld [vmem:[%s12585_s0 + $0x20] sm:$0xff]  ;;  %v6454_v24 = vld [vmem:[%s12585_s0 + $0xb8] sm:$0xff]  ;;  %s9096_s19 = smov 90   ;;  %s9097_s20 = smov 88  }
   0x9   :  { %86 = vmatprep.subr.mxu0 %v9075_v0  ;;  %186 = vmatprep.subr.mxu1 %v9075_v0  ;;  %v41_v25 = vld [vmem:[%s12585_s0 + $0x18] sm:$0xff]  ;;  %v6453_v26 = vld [vmem:[%s12585_s0 + $0xb0] sm:$0xff]  ;;  %v6452_v28 = vld [vmem:[%s12585_s0 + $0xa8] sm:$0xff]  ;;  %s9098_s21 = smov 86   ;;  %s9099_s22 = smov 84  }
   0xa   :  { %87 = vmatpush1.msra.mxu0 %v49_v9  ;;  %187 = vmatpush1.msra.mxu1 %v6461_v10  ;;  %v40_v27 = vld [vmem:[%s12585_s0 + $0x10] sm:$0xff]  ;;  %v39_v29 = vld [vmem:[%s12585_s0 + $0x8] sm:$0xff]  ;;  %v6451_v30 = vld [vmem:[%s12585_s0 + $0xa0] sm:$0xff]  ;;  %s9101_s23 = smov 80  }
   0xb   :  { %88 = vmatprep.subr.mxu0 %v9075_v0  ;;  %188 = vmatprep.subr.mxu1 %v9075_v0  ;;  %v38_v31 = vld [vmem:[%s12585_s0] sm:$0xff]  ;;  %v6450_v32 = vld [vmem:[%s12585_s0 + $0x98] sm:$0xff]  ;;  %v56_v33 = vld [vmem:[%s12585_s0 + $0x90] sm:$0x3f] }
   0xc   :  { %89 = vmatpush1.msra.mxu0 %v48_v11  ;;  %189 = vmatpush1.msra.mxu1 %v6460_v12  ;;  %v6468_v34 = vld [vmem:[%s12585_s0 + $0x128] sm:$0x3f]  ;;  %v6467_v36 = vld [vmem:[%s12585_s0 + $0x120] sm:$0xff]  ;;  %v6466_v39 = vld [vmem:[%s12585_s0 + $0x118] sm:$0xff] }
   0xd   :  { %90 = vmatprep.subr.mxu0 %v9075_v0  ;;  %190 = vmatprep.subr.mxu1 %v9075_v0  ;;  %v55_v35 = vld [vmem:[%s12585_s0 + $0x88] sm:$0xff]  ;;  %v54_v37 = vld [vmem:[%s12585_s0 + $0x80] sm:$0xff]  ;;  %v6508_v44 = vld [vmem:[%s12585_s0 + $0x238] sm:$0xff] }
   0xe   :  { %91 = vmatpush1.msra.mxu0 %v47_v13  ;;  %191 = vmatpush1.msra.mxu1 %v6459_v14  ;;  %v9304_v38 = vld [vmem:[%s12586_s1 + $0x8] sm:$0xff]  ;;  %v9312_v40 = vld [vmem:[%s12586_s1] sm:$0xff]  ;;  %v6485_v45 = vld [vmem:[%s12585_s0 + $0x198] sm:$0xff] }
   0xf   :  { %92 = vmatprep.subr.mxu0 %v9075_v0  ;;  %192 = vmatprep.subr.mxu1 %v9075_v0  ;;  %v6487_v41 = vld [vmem:[%s12585_s0 + $0x1a8] sm:$0xff]  ;;  %v6509_v42 = vld [vmem:[%s12585_s0 + $0x240] sm:$0xff]  ;;  %v6507_v46 = vld [vmem:[%s12585_s0 + $0x230] sm:$0xff] }
  0x10   :  { %93 = vmatpush1.msra.mxu0 %v46_v15  ;;  %193 = vmatpush1.msra.mxu1 %v6458_v16  ;;  %v6486_v43 = vld [vmem:[%s12585_s0 + $0x1a0] sm:$0xff]  ;;  %v6484_v47 = vld [vmem:[%s12585_s0 + $0x190] sm:$0xff]  ;;  %v6506_v48 = vld [vmem:[%s12585_s0 + $0x228] sm:$0xff] }
  0x11   :  { %94 = vmatprep.subr.mxu0 %v9075_v0  ;;  %194 = vmatprep.subr.mxu1 %v9075_v0  ;;  %v6483_v49 = vld [vmem:[%s12585_s0 + $0x188] sm:$0xff]  ;;  %v6505_v50 = vld [vmem:[%s12585_s0 + $0x220] sm:$0xff]  ;;  %v6504_v52 = vld [vmem:[%s12585_s0 + $0x218] sm:$0xff] }
  0x12   :  { %95 = vmatpush1.msra.mxu0 %v45_v17  ;;  %195 = vmatpush1.msra.mxu1 %v6457_v18  ;;  %v6482_v51 = vld [vmem:[%s12585_s0 + $0x180] sm:$0xff]  ;;  %v6481_v53 = vld [vmem:[%s12585_s0 + $0x178] sm:$0xff]  ;;  %v6503_v54 = vld [vmem:[%s12585_s0 + $0x210] sm:$0xff] }
  0x13   :  { %96 = vmatprep.subr.mxu0 %v9075_v0  ;;  %196 = vmatprep.subr.mxu1 %v9075_v0  ;;  %v6480_v55 = vld [vmem:[%s12585_s0 + $0x170] sm:$0xff]  ;;  %v6502_v56 = vld [vmem:[%s12585_s0 + $0x208] sm:$0xff]  ;;  %v6501_v58 = vld [vmem:[%s12585_s0 + $0x200] sm:$0xff] }
  0x14   :  { %97 = vmatpush1.msra.mxu0 %v44_v19  ;;  %197 = vmatpush1.msra.mxu1 %v6456_v20  ;;  %v6479_v57 = vld [vmem:[%s12585_s0 + $0x168] sm:$0xff]  ;;  %v6478_v59 = vld [vmem:[%s12585_s0 + $0x160] sm:$0xff]  ;;  %v6500_v60 = vld [vmem:[%s12585_s0 + $0x1f8] sm:$0xff]  ;;  %v9076_v19 = vmov 0  }
  0x15   :  { %98 = vmatprep.subr.mxu0 %v9075_v0  ;;  %198 = vmatprep.subr.mxu1 %v9075_v0  ;;  %v6477_v61 = vld [vmem:[%s12585_s0 + $0x158] sm:$0xff]  ;;  %v6499_v62 = vld [vmem:[%s12585_s0 + $0x1f0] sm:$0xff]  ;;  %v6498_v1 = vld [vmem:[%s12585_s0 + $0x1e8] sm:$0xff] }
  0x16   :  { %99 = vmatpush1.msra.mxu0 %v43_v21  ;;  %199 = vmatpush1.msra.mxu1 %v6455_v22  ;;  %v6476_v63 = vld [vmem:[%s12585_s0 + $0x150] sm:$0xff]  ;;  %v6475_v2 = vld [vmem:[%s12585_s0 + $0x148] sm:$0xff]  ;;  %v6497_v3 = vld [vmem:[%s12585_s0 + $0x1e0] sm:$0xff] }
  0x17   :  { %100 = vmatprep.subr.mxu0 %v9075_v0  ;;  %200 = vmatprep.subr.mxu1 %v9075_v0  ;;  %v6474_v4 = vld [vmem:[%s12585_s0 + $0x140] sm:$0xff]  ;;  %v6496_v5 = vld [vmem:[%s12585_s0 + $0x1d8] sm:$0xff]  ;;  %v6495_v7 = vld [vmem:[%s12585_s0 + $0x1d0] sm:$0xff] }
  0x18   :  { %101 = vmatpush1.msra.mxu0 %v42_v23  ;;  %201 = vmatpush1.msra.mxu1 %v6454_v24  ;;  %v6473_v6 = vld [vmem:[%s12585_s0 + $0x138] sm:$0xff]  ;;  %v6472_v9 = vld [vmem:[%s12585_s0 + $0x130] sm:$0xff]  ;;  %v6494_v10 = vld [vmem:[%s12585_s0 + $0x1c8] sm:$0xff] }
  0x19   :  { %102 = vmatprep.subr.mxu0 %v9075_v0  ;;  %202 = vmatprep.subr.mxu1 %v9075_v0  ;;  %v35_v8 = vld [vmem:[%s12586_s1 + $0x18] sm:$0xff]  ;;  %v34_v11 = vld [vmem:[%s12586_s1 + $0x10] sm:$0xff]  ;;  %v6490_v12 = vld [vmem:[%s12585_s0 + $0x1c0] sm:$0x3f]  ;;  %s9090_s1 = smov 102  }
  0x1a   :  { %103 = vmatpush1.msra.mxu0 %v41_v25  ;;  %203 = vmatpush1.msra.mxu1 %v6453_v26  ;;  %v6512_v13 = vld [vmem:[%s12585_s0 + $0x258] sm:$0x3f]  ;;  %v6511_v15 = vld [vmem:[%s12585_s0 + $0x250] sm:$0xff]  ;;  %v6510_v17 = vld [vmem:[%s12585_s0 + $0x248] sm:$0xff] }
  0x1b   :  { %104 = vmatprep.subr.mxu0 %v9075_v0  ;;  %204 = vmatprep.subr.mxu1 %v9075_v0  ;;  %v6489_v14 = vld [vmem:[%s12585_s0 + $0x1b8] sm:$0xff]  ;;  %v6488_v16 = vld [vmem:[%s12585_s0 + $0x1b0] sm:$0xff]  ;;  %v37_v18 = vld [vmem:[%s12587_s2 + $0x8] sm:$0xff]  ;;  %s9100_s0 = smov 82  }
  0x1c   :  { %105 = vmatpush1.msra.mxu0 %v40_v27  ;;  %205 = vmatpush1.msra.mxu1 %v6452_v28  ;;  %v36_v20 = vld [vmem:[%s12587_s2] sm:$0xff]  ;;  %s9078_s2 = smov 124  }
  0x1d   :  { %106 = vmatprep.subr.mxu0 %v9075_v0  ;;  %206 = vmatprep.subr.mxu1 %v9075_v0 }
  0x1e   :  { %107 = vmatpush1.msra.mxu0 %v39_v29  ;;  %207 = vmatpush1.msra.mxu1 %v6451_v30 }
  0x1f   :  { %108 = vmatprep.subr.mxu0 %v9075_v0  ;;  %208 = vmatprep.subr.mxu1 %v9075_v0 }
  0x20   :  { %109 = vmatpush1.msra.mxu0 %v38_v31  ;;  %209 = vmatpush1.msra.mxu1 %v6450_v32 }
  0x21   :  { %136 = vmatprep.subr.mxu0 %v9075_v0  ;;  %236 = vmatprep.subr.mxu1 %v9075_v0 }
  0x22   :  { %6447 = vmatpush2.msk.msra.mxu0 %vm74_vm0, %v56_v33  ;;  %6469 = vmatpush2.msk.msra.mxu1 %vm74_vm0, %v6468_v34 }
  0x23   :  { %138 = vmatprep.subr.mxu0 %v9075_v0  ;;  %238 = vmatprep.subr.mxu1 %v9075_v0 }
  0x24   :  { %139 = vmatpush2.msra.mxu0 %v55_v35  ;;  %239 = vmatpush2.msra.mxu1 %v6467_v36 }
  0x25   :  { %140 = vmatprep.subr.mxu0 %v9075_v0  ;;  %240 = vmatprep.subr.mxu1 %v9075_v0 }
  0x26   :  { %141 = vmatpush2.msra.mxu0 %v54_v37  ;;  %6448 = vmatprep.mubr.msk.f32.mxu0 %vm67_vm1, %v9304_v38 }
  0x27   :  { %241 = vmatpush2.msra.mxu1 %v6466_v39  ;;  %143 = vmatmul.mubr.f32.vlgmr.msra.gmra.mxu0 %v9312_v40 }
  0x28   :  { %6470 = vmatprep.mubr.msk.f32.mxu1 %vm67_vm1, %v9304_v38  ;;  %280 = vmatprep.subr.mxu0 %v9075_v0 }
  0x29   :  { %382 = vmatprep.subr.mxu1 %v9075_v0  ;;  %243 = vmatmul.mubr.f32.vlgmr.msra.gmra.mxu1 %v9312_v40 }
  0x2a   :  { %281 = vmatpush1.msra.mxu0 %v6487_v41  ;;  %383 = vmatpush1.msra.mxu1 %v6509_v42 }
  0x2b   :  { %282 = vmatprep.subr.mxu0 %v9075_v0  ;;  %384 = vmatprep.subr.mxu1 %v9075_v0 }
  0x2c   :  { %283 = vmatpush1.msra.mxu0 %v6486_v43  ;;  %385 = vmatpush1.msra.mxu1 %v6508_v44 }
  0x2d   :  { %284 = vmatprep.subr.mxu0 %v9075_v0  ;;  %386 = vmatprep.subr.mxu1 %v9075_v0 }
  0x2e   :  { %285 = vmatpush1.msra.mxu0 %v6485_v45  ;;  %387 = vmatpush1.msra.mxu1 %v6507_v46 }
  0x2f   :  { %286 = vmatprep.subr.mxu0 %v9075_v0  ;;  %388 = vmatprep.subr.mxu1 %v9075_v0 }
  0x30   :  { %287 = vmatpush1.msra.mxu0 %v6484_v47  ;;  %389 = vmatpush1.msra.mxu1 %v6506_v48 }
  0x31   :  { %288 = vmatprep.subr.mxu0 %v9075_v0  ;;  %390 = vmatprep.subr.mxu1 %v9075_v0 }
  0x32   :  { %289 = vmatpush1.msra.mxu0 %v6483_v49  ;;  %391 = vmatpush1.msra.mxu1 %v6505_v50 }
  0x33   :  { %290 = vmatprep.subr.mxu0 %v9075_v0  ;;  %392 = vmatprep.subr.mxu1 %v9075_v0 }
  0x34   :  { %291 = vmatpush1.msra.mxu0 %v6482_v51  ;;  %393 = vmatpush1.msra.mxu1 %v6504_v52 }
  0x35   :  { %292 = vmatprep.subr.mxu0 %v9075_v0  ;;  %394 = vmatprep.subr.mxu1 %v9075_v0 }
  0x36   :  { %293 = vmatpush1.msra.mxu0 %v6481_v53  ;;  %395 = vmatpush1.msra.mxu1 %v6503_v54 }
  0x37   :  { %294 = vmatprep.subr.mxu0 %v9075_v0  ;;  %396 = vmatprep.subr.mxu1 %v9075_v0 }
  0x38   :  { %295 = vmatpush1.msra.mxu0 %v6480_v55  ;;  %397 = vmatpush1.msra.mxu1 %v6502_v56 }
  0x39   :  { %296 = vmatprep.subr.mxu0 %v9075_v0  ;;  %398 = vmatprep.subr.mxu1 %v9075_v0 }
  0x3a   :  { %297 = vmatpush1.msra.mxu0 %v6479_v57  ;;  %399 = vmatpush1.msra.mxu1 %v6501_v58 }
  0x3b   :  { %298 = vmatprep.subr.mxu0 %v9075_v0  ;;  %400 = vmatprep.subr.mxu1 %v9075_v0 }
  0x3c   :  { %299 = vmatpush1.msra.mxu0 %v6478_v59  ;;  %401 = vmatpush1.msra.mxu1 %v6500_v60 }
  0x3d   :  { %300 = vmatprep.subr.mxu0 %v9075_v0  ;;  %402 = vmatprep.subr.mxu1 %v9075_v0 }
  0x3e   :  { %301 = vmatpush1.msra.mxu0 %v6477_v61  ;;  %403 = vmatpush1.msra.mxu1 %v6499_v62  ;;  %v5991_v61 = vld [vmem:[%s12588_s4 + $0x70] sm:$0xff]  ;;  %v5989_v62 = vld [vmem:[%s12588_s4 + $0x60] sm:$0xff] }
  0x3f   :  { %302 = vmatprep.subr.mxu0 %v9075_v0  ;;  %404 = vmatprep.subr.mxu1 %v9075_v0 }
  0x40   :  { %303 = vmatpush1.msra.mxu0 %v6476_v63  ;;  %405 = vmatpush1.msra.mxu1 %v6498_v1  ;;  %v5987_v63 = vld [vmem:[%s12588_s4 + $0x50] sm:$0xff]  ;;  %v5985_v1 = vld [vmem:[%s12588_s4 + $0x40] sm:$0xff] }
  0x41   :  { %304 = vmatprep.subr.mxu0 %v9075_v0  ;;  %406 = vmatprep.subr.mxu1 %v9075_v0 }
  0x42   :  { %305 = vmatpush1.msra.mxu0 %v6475_v2  ;;  %407 = vmatpush1.msra.mxu1 %v6497_v3  ;;  %v5983_v2 = vld [vmem:[%s12588_s4 + $0x30] sm:$0xff]  ;;  %v5981_v3 = vld [vmem:[%s12588_s4 + $0x20] sm:$0xff] }
  0x43   :  { %306 = vmatprep.subr.mxu0 %v9075_v0  ;;  %408 = vmatprep.subr.mxu1 %v9075_v0 }
  0x44   :  { %307 = vmatpush1.msra.mxu0 %v6474_v4  ;;  %409 = vmatpush1.msra.mxu1 %v6496_v5  ;;  %v5979_v4 = vld [vmem:[%s12588_s4 + $0x10] sm:$0xff] }
  0x45   :  { %308 = vmatprep.subr.mxu0 %v9075_v0  ;;  %410 = vmatprep.subr.mxu1 %v9075_v0 }
  0x46   :  { %309 = vmatpush1.msra.mxu0 %v6473_v6  ;;  %411 = vmatpush1.msra.mxu1 %v6495_v7  ;;  %v5977_v6 = vld [vmem:[%s12588_s4] sm:$0xff]  ;;  %v6516_v7 = vld [vmem:[%s12589_s3 + $0x78] sm:$0xff] }
  0x47   :  { %310 = vmatprep.subr.mxu0 %v9075_v0  ;;  %412 = vmatprep.subr.mxu1 %v9075_v0 }
  0x48   :  { %6449 = vmatprep.mubr.msk.f32.mxu0 %vm67_vm1, %v35_v8  ;;  %311 = vmatpush1.msra.mxu0 %v6472_v9  ;;  %v6530_v9 = vld [vmem:[%s12589_s3 + $0xe8] sm:$0xff] }
  0x49   :  { %413 = vmatpush1.msra.mxu1 %v6494_v10  ;;  %148 = vmatmul.mubr.f32.gmra.mxu0 %v34_v11 }
  0x4a   :  { %338 = vmatprep.subr.mxu0 %v9075_v0  ;;  %440 = vmatprep.subr.mxu1 %v9075_v0 }
  0x4b   :  { %6471 = vmatprep.mubr.msk.f32.mxu1 %vm67_vm1, %v35_v8  ;;  %6491 = vmatpush2.msk.msra.mxu0 %vm74_vm0, %v6490_v12  ;;  %v6117_v12 = vld [vmem:[%s12590_s6 + $0x48] sm:$0xff] }
  0x4c   :  { %6513 = vmatpush2.msk.msra.mxu1 %vm74_vm0, %v6512_v13  ;;  %340 = vmatprep.subr.mxu0 %v9075_v0  ;;  %v6517_v13 = vld [vmem:[%s12589_s3 + $0x80] sm:$0xff] }
  0x4d   :  { %248 = vmatmul.mubr.f32.gmra.mxu1 %v34_v11  ;;  %442 = vmatprep.subr.mxu1 %v9075_v0 }
  0x4e   :  { %341 = vmatpush2.msra.mxu0 %v6489_v14  ;;  %443 = vmatpush2.msra.mxu1 %v6511_v15  ;;  %v461_v14 = vld [vmem:[%s12589_s3] sm:$0xff]  ;;  %v6115_v15 = vld [vmem:[%s12590_s6 + $0x38] sm:$0xff] }
  0x4f   :  { %342 = vmatprep.subr.mxu0 %v9075_v0  ;;  %444 = vmatprep.subr.mxu1 %v9075_v0 }
  0x50   :  { %343 = vmatpush2.msra.mxu0 %v6488_v16  ;;  %6492 = vmatprep.mubr.msk.f32.mxu0 %vm67_vm1, %v9304_v38 }
  0x51   :  { %445 = vmatpush2.msra.mxu1 %v6510_v17  ;;  %6514 = vmatprep.mubr.msk.f32.mxu1 %vm67_vm1, %v9304_v38 }
  0x52   :  { %345 = vmatmul.mubr.f32.vlgmr.msra.gmra.mxu0 %v9312_v40  ;;  %447 = vmatmul.mubr.f32.vlgmr.msra.gmra.mxu1 %v9312_v40 }
  0x53   :  { %6493 = vmatprep.mubr.msk.f32.mxu0 %vm67_vm1, %v35_v8  ;;  %6515 = vmatprep.mubr.msk.f32.mxu1 %vm67_vm1, %v35_v8 }
  0x54   :  { %9073 = vset.pattern.permute.xlu0 %v9076_v19  ;;  %7729 = vmatprep.subr.mxu0 %v9075_v0 }
  0x55   :  { %64 = vperm.xlu0 %9073, %v37_v18   ;;  %9042 = vmatprep.subr.mxu1 %v9075_v0  ;;  %v6518_v18 = vld [vmem:[%s12589_s3 + $0x88] sm:$0xff] }
  0x56   :  { %350 = vmatmul.mubr.f32.gmra.mxu0 %v34_v11  ;;  %452 = vmatmul.mubr.f32.gmra.mxu1 %v34_v11 }
  0x57   :  { %9074 = vset.pattern.permute.xlu1 %v9076_v19  ;;  %7733 = vmatprep.mubr.msk.f32.mxu0 %vm9077_vm2, %v9075_v0  ;;  %v462_v19 = vld [vmem:[%s12589_s3 + $0x8] sm:$0xff] }
  0x58   :  { %7775 = vmatprep.mubr.msk.f32.mxu1 %vm9077_vm2, %v9075_v0 }
  0x59   :  { %59 = vperm.xlu0 %9073, %v36_v20   ;;  %v6113_v20 = vld [vmem:[%s12590_s6 + $0x28] sm:$0xff] }
  0xd0   :  { %v65_v26 = vpop.permute.xlu0 %64 }
  0xd4   :  { %v60_v30 = vpop.permute.xlu0 %59 }
  0xe7   :  { %v144_v21 = vpop.f32.mrf.mxu0 }
  0xe8   :  { %v145_v35 = vadd.f32 %v144_v21, %v60_v30  ;;  %v6519_v21 = vld [vmem:[%s12589_s3 + $0x90] sm:$0xff] }
  0xe9   :  { %v244_v22 = vpop.f32.mrf.mxu1  ;;  %v146_v23 = vpop.f32.mrf.mxu0 }
  0xea   :  { %v245_v36 = vadd.f32 %v244_v22, %v60_v30  ;;  %v153_v44 = vmax.f32 %v145_v35, 0.0  ;;  %v463_v22 = vld [vmem:[%s12589_s3 + $0x10] sm:$0xff]  ;;  %v6111_v23 = vld [vmem:[%s12590_s6 + $0x18] sm:$0xff] }
  0xeb   :  { %v246_v24 = vpop.f32.mrf.mxu1  ;;  %v468_v35 = vld [vmem:[%s12589_s3 + $0x38] sm:$0xff] }
  0xec   :  { %v253_v45 = vmax.f32 %v245_v36, 0.0  ;;  %v6520_v24 = vld [vmem:[%s12589_s3 + $0x98] sm:$0xff]  ;;  %v6525_v36 = vld [vmem:[%s12589_s3 + $0xc0] sm:$0xff] }
  0xee   :  { %v255_v54 = vmax.f32 %v153_v44, %v253_v45  ;;  %v6529_v44 = vld [vmem:[%s12589_s3 + $0xe0] sm:$0xff] }
  0xef   :  { %v473_v45 = vld [vmem:[%s12589_s3 + $0x60] sm:$0xff] }
 0x109   :  { %v149_v25 = vpop.f32.mrf.mxu0 }
 0x10a   :  { %v150_v31 = vadd.f32 %v149_v25, %v65_v26  ;;  %v464_v25 = vld [vmem:[%s12589_s3 + $0x18] sm:$0xff] }
 0x10b   :  { %v151_v27 = vpop.f32.mrf.mxu0 }
 0x10c   :  { %v154_v39 = vmax.f32 %v150_v31, 0.0  ;;  %v6521_v27 = vld [vmem:[%s12589_s3 + $0xa0] sm:$0xff]  ;;  %v466_v31 = vld [vmem:[%s12589_s3 + $0x28] sm:$0xff] }
 0x10d   :  { %v249_v28 = vpop.f32.mrf.mxu1 }
 0x10e   :  { %v250_v32 = vadd.f32 %v249_v28, %v65_v26  ;;  %v465_v28 = vld [vmem:[%s12589_s3 + $0x20] sm:$0xff] }
 0x10f   :  { %v251_v29 = vpop.f32.mrf.mxu1 }
 0x110   :  { %v254_v40 = vmax.f32 %v250_v32, 0.0  ;;  %v6341_v29 = vld [vmem:[%s12591_s8] sm:$0xff]  ;;  %v6523_v32 = vld [vmem:[%s12589_s3 + $0xb0] sm:$0xff] }
 0x112   :  { %v346_v33 = vpop.f32.mrf.mxu0  ;;  %v448_v34 = vpop.f32.mrf.mxu1  ;;  %v256_v50 = vmax.f32 %v154_v39, %v254_v40  ;;  %v470_v39 = vld [vmem:[%s12589_s3 + $0x48] sm:$0xff]  ;;  %v6527_v40 = vld [vmem:[%s12589_s3 + $0xd0] sm:$0xff] }
 0x113   :  { %v347_v41 = vadd.f32 %v346_v33, %v60_v30  ;;  %v449_v52 = vadd.f32 %v448_v34, %v60_v30  ;;  %v6522_v30 = vld [vmem:[%s12589_s3 + $0xa8] sm:$0xff]  ;;  %v467_v33 = vld [vmem:[%s12589_s3 + $0x30] sm:$0xff]  ;;  %v6524_v34 = vld [vmem:[%s12589_s3 + $0xb8] sm:$0xff] }
 0x114   :  { %v348_v37 = vpop.f32.mrf.mxu0  ;;  %v450_v38 = vpop.f32.mrf.mxu1 }
 0x115   :  { %v355_v51 = vmax.f32 %v347_v41, 0.0  ;;  %v457_v58 = vmax.f32 %v449_v52, 0.0  ;;  %v469_v37 = vld [vmem:[%s12589_s3 + $0x40] sm:$0xff]  ;;  %v6526_v38 = vld [vmem:[%s12589_s3 + $0xc8] sm:$0xff]  ;;  %v471_v41 = vld [vmem:[%s12589_s3 + $0x50] sm:$0xff] }
 0x116   :  { %v351_v42 = vpop.f32.mrf.mxu0  ;;  %v453_v43 = vpop.f32.mrf.mxu1  ;;  %v6563_v52 = vld [vmem:[%s12589_s3 + $0x100] sm:$0xff] }
 0x117   :  { %v352_v46 = vadd.f32 %v351_v42, %v65_v26  ;;  %v454_v47 = vadd.f32 %v453_v43, %v65_v26  ;;  %v357_v57 = vmax.f32 %v255_v54, %v355_v51  ;;  %v6109_v26 = vld [vmem:[%s12590_s6 + $0x8] sm:$0xff]  ;;  %v6528_v42 = vld [vmem:[%s12589_s3 + $0xd8] sm:$0xff]  ;;  %v475_v51 = vld [vmem:[%s12589_s3 + $0x70] sm:$0xff] }
 0x118   :  { %v353_v48 = vpop.f32.mrf.mxu0  ;;  %v455_v49 = vpop.f32.mrf.mxu1  ;;  %v472_v43 = vld [vmem:[%s12589_s3 + $0x58] sm:$0xff] }
 0x119   :  { %v356_v53 = vmax.f32 %v352_v46, 0.0  ;;  %v458_v56 = vmax.f32 %v454_v47, 0.0  ;;  %v9508_v60 = vmax.f32 %v357_v57, %v457_v58  ;;  %v6561_v46 = vld [vmem:[%s12589_s3 + $0xf0] sm:$0xff]  ;;  %v474_v47 = vld [vmem:[%s12589_s3 + $0x68] sm:$0xff]  ;;  %v6562_v49 = vld [vmem:[%s12589_s3 + $0xf8] sm:$0xff] }
 0x11a   :  { %v6565_v58 = vld [vmem:[%s12589_s3 + $0x110] sm:$0xff] }
 0x11b   :  { %v358_v55 = vmax.f32 %v256_v50, %v356_v53  ;;  %v6591_v53 = vld [vmem:[%s12589_s3 + $0x168] sm:$0xff] }
 0x11d   :  { %v9504_v59 = vmax.f32 %v358_v55, %v458_v56  ;;  %v6564_v55 = vld [vmem:[%s12589_s3 + $0x108] sm:$0xff]  ;;  %v6592_v56 = vld [vmem:[%s12589_s3 + $0x170] sm:$0xff] }
 0x11f   :  { %889 = vrot.lane.b32.xlu0 %v9504_v59, %s9078_s2  ;;  %496 = vrot.lane.b32.xlu1 %v9504_v59, %s9079_s24 }
 0x123   :  { %1111 = vrot.lane.b32.xlu0 %v9504_v59, %s9080_s25  ;;  %494 = vrot.lane.b32.xlu1 %v9508_v60, %s9079_s24 }
 0x127   :  { %1333 = vrot.lane.b32.xlu0 %v9504_v59, %s9081_s26  ;;  %887 = vrot.lane.b32.xlu1 %v9508_v60, %s9078_s2 }
 0x12b   :  { %1555 = vrot.lane.b32.xlu0 %v9504_v59, %s9082_s27  ;;  %1109 = vrot.lane.b32.xlu1 %v9508_v60, %s9080_s25 }
 0x12f   :  { %1777 = vrot.lane.b32.xlu0 %v9504_v59, %s9083_s28  ;;  %1331 = vrot.lane.b32.xlu1 %v9508_v60, %s9081_s26 }
 0x133   :  { %1999 = vrot.lane.b32.xlu0 %v9504_v59, %s9084_s29  ;;  %1553 = vrot.lane.b32.xlu1 %v9508_v60, %s9082_s27 }
 0x137   :  { %2221 = vrot.lane.b32.xlu0 %v9504_v59, %s9085_s30  ;;  %1775 = vrot.lane.b32.xlu1 %v9508_v60, %s9083_s28 }
 0x13b   :  { %2443 = vrot.lane.b32.xlu0 %v9504_v59, %s9086_s10  ;;  %1997 = vrot.lane.b32.xlu1 %v9508_v60, %s9084_s29 }
 0x13f   :  { %2665 = vrot.lane.b32.xlu0 %v9504_v59, %s9087_s11  ;;  %2219 = vrot.lane.b32.xlu1 %v9508_v60, %s9085_s30 }
 0x143   :  { %2887 = vrot.lane.b32.xlu0 %v9504_v59, %s9088_s12  ;;  %2441 = vrot.lane.b32.xlu1 %v9508_v60, %s9086_s10 }
 0x147   :  { %3109 = vrot.lane.b32.xlu0 %v9504_v59, %s9089_s13  ;;  %2663 = vrot.lane.b32.xlu1 %v9508_v60, %s9087_s11 }
 0x14b   :  { %3331 = vrot.lane.b32.xlu0 %v9504_v59, %s9090_s1  ;;  %2885 = vrot.lane.b32.xlu1 %v9508_v60, %s9088_s12 }
 0x14f   :  { %3553 = vrot.lane.b32.xlu0 %v9504_v59, %s9091_s14  ;;  %3107 = vrot.lane.b32.xlu1 %v9508_v60, %s9089_s13 }
 0x153   :  { %3775 = vrot.lane.b32.xlu0 %v9504_v59, %s9092_s15  ;;  %3329 = vrot.lane.b32.xlu1 %v9508_v60, %s9090_s1 }
 0x157   :  { %3997 = vrot.lane.b32.xlu0 %v9504_v59, %s9093_s16  ;;  %3551 = vrot.lane.b32.xlu1 %v9508_v60, %s9091_s14 }
 0x15b   :  { %4219 = vrot.lane.b32.xlu0 %v9504_v59, %s9094_s17  ;;  %3773 = vrot.lane.b32.xlu1 %v9508_v60, %s9092_s15 }
 0x15f   :  { %4441 = vrot.lane.b32.xlu0 %v9504_v59, %s9095_s18  ;;  %3995 = vrot.lane.b32.xlu1 %v9508_v60, %s9093_s16 }
 0x163   :  { %4663 = vrot.lane.b32.xlu0 %v9504_v59, %s9096_s19  ;;  %4217 = vrot.lane.b32.xlu1 %v9508_v60, %s9094_s17 }
 0x167   :  { %4885 = vrot.lane.b32.xlu0 %v9504_v59, %s9097_s20  ;;  %4439 = vrot.lane.b32.xlu1 %v9508_v60, %s9095_s18 }
 0x16b   :  { %5107 = vrot.lane.b32.xlu0 %v9504_v59, %s9098_s21  ;;  %4661 = vrot.lane.b32.xlu1 %v9508_v60, %s9096_s19 }
 0x16f   :  { %5329 = vrot.lane.b32.xlu0 %v9504_v59, %s9099_s22  ;;  %4883 = vrot.lane.b32.xlu1 %v9508_v60, %s9097_s20 }
 0x173   :  { %5551 = vrot.lane.b32.xlu0 %v9504_v59, %s9100_s0  ;;  %5105 = vrot.lane.b32.xlu1 %v9508_v60, %s9098_s21 }
 0x177   :  { %5773 = vrot.lane.b32.xlu0 %v9504_v59, %s9101_s23  ;;  %5327 = vrot.lane.b32.xlu1 %v9508_v60, %s9099_s22 }
 0x17b   :  { %6064 = vperm.xlu0 %9073, %v5991_v61   ;;  %5549 = vrot.lane.b32.xlu1 %v9508_v60, %s9100_s0  ;;  %v6594_v61 = vld [vmem:[%s12589_s3 + $0x180] sm:$0xff] }
 0x17f   :  { %6054 = vperm.xlu0 %9073, %v5989_v62   ;;  %5771 = vrot.lane.b32.xlu1 %v9508_v60, %s9101_s23  ;;  %v6567_v62 = vld [vmem:[%s12589_s3 + $0x120] sm:$0xff] }
 0x183   :  { %6044 = vperm.xlu0 %9073, %v5987_v63   ;;  %v6595_v63 = vld [vmem:[%s12589_s3 + $0x188] sm:$0xff] }
 0x187   :  { %6034 = vperm.xlu0 %9073, %v5985_v1   ;;  %v6568_v1 = vld [vmem:[%s12589_s3 + $0x128] sm:$0xff] }
 0x18b   :  { %6024 = vperm.xlu0 %9073, %v5983_v2   ;;  %v6596_v2 = vld [vmem:[%s12589_s3 + $0x190] sm:$0xff] }
 0x18f   :  { %6014 = vperm.xlu0 %9073, %v5981_v3   ;;  %v6569_v3 = vld [vmem:[%s12589_s3 + $0x130] sm:$0xff] }
 0x191   :  { %v497_v5 = vpop.permute.xlu1 %496  ;;  %v890_v10 = vpop.permute.xlu0 %889 }
 0x192   :  { %7730 = vmatpush3.msra.mxu0 %v497_v5  ;;  %9044 = vmatpush3.msra.mxu1 %v497_v5  ;;  %v6570_v5 = vld [vmem:[%s12589_s3 + $0x138] sm:$0xff] }
 0x193   :  { %6004 = vperm.xlu0 %9073, %v5979_v4   ;;  %7731 = vmatprep.subr.mxu0 %v9075_v0  ;;  %v6597_v4 = vld [vmem:[%s12589_s3 + $0x198] sm:$0xff] }
 0x194   :  { %9043 = vmatprep.subr.mxu1 %v9075_v0 }
 0x195   :  { %v495_v8 = vpop.permute.xlu1 %494  ;;  %v1112_v16 = vpop.permute.xlu0 %1111 }
 0x196   :  { %7732 = vmatpush3.msra.mxu0 %v495_v8  ;;  %9045 = vmatpush3.msra.mxu1 %v495_v8  ;;  %v6599_v8 = vld [vmem:[%s12589_s3 + $0x1a8] sm:$0xff] }
 0x197   :  { %5994 = vperm.xlu0 %9073, %v5977_v6   ;;  %7734 = vmatmul.mubr.msk.f32.vlgmr.msra.gmra.mxu0 %vm500_vm3, %v6516_v7  ;;  %v6598_v6 = vld [vmem:[%s12589_s3 + $0x1a0] sm:$0xff] }
 0x198   :  { %7776 = vmatmul.mubr.msk.f32.vlgmr.msra.gmra.mxu1 %vm500_vm3, %v6530_v9  ;;  %7778 = vmatprep.subr.mxu1 %v9075_v0  ;;  %v6571_v7 = vld [vmem:[%s12589_s3 + $0x140] sm:$0xff]  ;;  %v6572_v9 = vld [vmem:[%s12589_s3 + $0x148] sm:$0xff] }
 0x199   :  { %7827 = vmatprep.subr.mxu0 %v9075_v0  ;;  %7779 = vmatpush3.msra.mxu1 %v9504_v59  ;;  %v888_v11 = vpop.permute.xlu1 %887  ;;  %v1334_v48 = vpop.permute.xlu0 %1333  ;;  %v6593_v59 = vld [vmem:[%s12589_s3 + $0x178] sm:$0xff] }
 0x19a   :  { %7828 = vmatpush3.msra.mxu0 %v890_v10  ;;  %7780 = vmatprep.subr.mxu1 %v9075_v0  ;;  %v6600_v10 = vld [vmem:[%s12589_s3 + $0x1b0] sm:$0xff] }
 0x19b   :  { %7829 = vmatprep.subr.mxu0 %v9075_v0  ;;  %7736 = vmatprep.mubr.msk.f32.mxu0 %vm9077_vm2, %v9075_v0 }
 0x19c   :  { %7781 = vmatpush3.msra.mxu1 %v9508_v60  ;;  %7782 = vmatprep.mubr.msk.f32.mxu1 %vm9077_vm2, %v9075_v0  ;;  %v6566_v60 = vld [vmem:[%s12589_s3 + $0x118] sm:$0xff] }
 0x19d   :  { %7830 = vmatpush3.msra.mxu0 %v888_v11  ;;  %6166 = vperm.xlu0 %9073, %v6117_v12   ;;  %v1110_v17 = vpop.permute.xlu1 %1109  ;;  %v1556_v54 = vpop.permute.xlu0 %1555  ;;  %v6573_v11 = vld [vmem:[%s12589_s3 + $0x150] sm:$0xff]  ;;  %v6601_v12 = vld [vmem:[%s12589_s3 + $0x1b8] sm:$0xff] }
 0x19e   :  { %7737 = vmatmul.mubr.msk.f32.gmra.mxu0 %vm500_vm3, %v6517_v13  ;;  %7783 = vmatmul.mubr.msk.f32.vlgmr.msra.gmra.mxu1 %vm500_vm3, %v461_v14  ;;  %v6574_v13 = vld [vmem:[%s12589_s3 + $0x158] sm:$0xff]  ;;  %v6602_v14 = vld [vmem:[%s12589_s3 + $0x1c0] sm:$0xff] }
 0x19f   :  { %7876 = vmatprep.subr.mxu1 %v9075_v0  ;;  %7739 = vmatprep.mubr.msk.f32.mxu0 %vm9077_vm2, %v9075_v0 }
 0x1a0   :  { %7877 = vmatpush3.msra.mxu1 %v1112_v16  ;;  %7785 = vmatprep.mubr.msk.f32.mxu1 %vm9077_vm2, %v9075_v0  ;;  %v6603_v16 = vld [vmem:[%s12589_s3 + $0x1c8] sm:$0xff] }
 0x1a1   :  { %7878 = vmatprep.subr.mxu1 %v9075_v0  ;;  %6156 = vperm.xlu0 %9073, %v6115_v15   ;;  %v1332_v50 = vpop.permute.xlu1 %1331  ;;  %v6575_v15 = vld [vmem:[%s12589_s3 + $0x160] sm:$0xff] }
 0x1a2   :  { %7879 = vmatpush3.msra.mxu1 %v1110_v17  ;;  %7740 = vmatmul.mubr.msk.f32.gmra.mxu0 %vm500_vm3, %v6518_v18  ;;  %v6621_v17 = vld [vmem:[%s12589_s3 + $0x1e0] sm:$0xff]  ;;  %v6604_v18 = vld [vmem:[%s12589_s3 + $0x1d0] sm:$0xff] }
 0x1a3   :  { %7786 = vmatmul.mubr.msk.f32.gmra.mxu1 %vm500_vm3, %v462_v19  ;;  %7742 = vmatprep.mubr.msk.f32.mxu0 %vm9077_vm2, %v9075_v0  ;;  %v1778_v19 = vpop.permute.xlu0 %1777 }
 0x1a4   :  { %7788 = vmatprep.mubr.msk.f32.mxu1 %vm9077_vm2, %v9075_v0  ;;  %7925 = vmatprep.subr.mxu0 %v9075_v0 }
 0x1a5   :  { %6146 = vperm.xlu0 %9073, %v6113_v20   ;;  %7974 = vmatprep.subr.mxu1 %v9075_v0  ;;  %v1554_v57 = vpop.permute.xlu1 %1553  ;;  %v6622_v20 = vld [vmem:[%s12589_s3 + $0x1e8] sm:$0xff] }
 0x1a6   :  { %7743 = vmatmul.mubr.msk.f32.gmra.mxu0 %vm500_vm3, %v6519_v21 }
 0x1a7   :  { %7789 = vmatmul.mubr.msk.f32.gmra.mxu1 %vm500_vm3, %v463_v22  ;;  %7745 = vmatprep.mubr.msk.f32.mxu0 %vm9077_vm2, %v9075_v0  ;;  %v6605_v22 = vld [vmem:[%s12589_s3 + $0x1d8] sm:$0xff] }
 0x1a8   :  { %7791 = vmatprep.mubr.msk.f32.mxu1 %vm9077_vm2, %v9075_v0 }
 0x1a9   :  { %6136 = vperm.xlu0 %9073, %v6111_v23   ;;  %v1776_v21 = vpop.permute.xlu1 %1775  ;;  %v6623_v23 = vld [vmem:[%s12589_s3 + $0x1f0] sm:$0xff] }
 0x1aa   :  { %7746 = vmatmul.mubr.msk.f32.gmra.mxu0 %vm500_vm3, %v6520_v24  ;;  %v6651_v24 = vld [vmem:[%s12589_s3 + $0x258] sm:$0xff] }
 0x1ab   :  { %7792 = vmatmul.mubr.msk.f32.gmra.mxu1 %vm500_vm3, %v464_v25  ;;  %7748 = vmatprep.mubr.msk.f32.mxu0 %vm9077_vm2, %v9075_v0  ;;  %v2000_v25 = vpop.permute.xlu0 %1999 }
 0x1ac   :  { %7794 = vmatprep.mubr.msk.f32.mxu1 %vm9077_vm2, %v9075_v0 }
 0x1ad   :  { %6126 = vperm.xlu0 %9073, %v6109_v26   ;;  %v6624_v26 = vld [vmem:[%s12589_s3 + $0x1f8] sm:$0xff] }
 0x1ae   :  { %7749 = vmatmul.mubr.msk.f32.gmra.mxu0 %vm500_vm3, %v6521_v27  ;;  %v6652_v27 = vld [vmem:[%s12589_s3 + $0x260] sm:$0xff] }
 0x1af   :  { %7795 = vmatmul.mubr.msk.f32.gmra.mxu1 %vm500_vm3, %v465_v28  ;;  %7751 = vmatprep.mubr.msk.f32.mxu0 %vm9077_vm2, %v9075_v0  ;;  %v1998_v28 = vpop.permute.xlu1 %1997 }
 0x1b0   :  { %7797 = vmatprep.mubr.msk.f32.mxu1 %vm9077_vm2, %v9075_v0 }
 0x1b1   :  { %6345 = vperm.xlu0 %9073, %v6341_v29   ;;  %v6625_v29 = vld [vmem:[%s12589_s3 + $0x200] sm:$0xff] }
 0x1b2   :  { %7752 = vmatmul.mubr.msk.f32.gmra.mxu0 %vm500_vm3, %v6522_v30  ;;  %v6653_v30 = vld [vmem:[%s12589_s3 + $0x268] sm:$0xff] }
 0x1b3   :  { %7798 = vmatmul.mubr.msk.f32.gmra.mxu1 %vm500_vm3, %v466_v31  ;;  %7754 = vmatprep.mubr.msk.f32.mxu0 %vm9077_vm2, %v9075_v0  ;;  %v6626_v31 = vld [vmem:[%s12589_s3 + $0x208] sm:$0xff] }
 0x1b4   :  { %7800 = vmatprep.mubr.msk.f32.mxu1 %vm9077_vm2, %v9075_v0 }
 0x1b6   :  { %7755 = vmatmul.mubr.msk.f32.gmra.mxu0 %vm500_vm3, %v6523_v32  ;;  %v6654_v32 = vld [vmem:[%s12589_s3 + $0x270] sm:$0xff] }
 0x1b7   :  { %7801 = vmatmul.mubr.msk.f32.gmra.mxu1 %vm500_vm3, %v467_v33  ;;  %7757 = vmatprep.mubr.msk.f32.mxu0 %vm9077_vm2, %v9075_v0  ;;  %v6627_v33 = vld [vmem:[%s12589_s3 + $0x210] sm:$0xff] }
 0x1b8   :  { %7803 = vmatprep.mubr.msk.f32.mxu1 %vm9077_vm2, %v9075_v0 }
 0x1ba   :  { %7758 = vmatmul.mubr.msk.f32.gmra.mxu0 %vm500_vm3, %v6524_v34  ;;  %v6655_v34 = vld [vmem:[%s12589_s3 + $0x278] sm:$0xff] }
 0x1bb   :  { %7804 = vmatmul.mubr.msk.f32.gmra.mxu1 %vm500_vm3, %v468_v35  ;;  %7760 = vmatprep.mubr.msk.f32.mxu0 %vm9077_vm2, %v9075_v0  ;;  %v6628_v35 = vld [vmem:[%s12589_s3 + $0x218] sm:$0xff] }
 0x1bc   :  { %7806 = vmatprep.mubr.msk.f32.mxu1 %vm9077_vm2, %v9075_v0 }
 0x1be   :  { %7761 = vmatmul.mubr.msk.f32.gmra.mxu0 %vm500_vm3, %v6525_v36  ;;  %v6656_v36 = vld [vmem:[%s12589_s3 + $0x280] sm:$0xff] }
 0x1bf   :  { %7807 = vmatmul.mubr.msk.f32.gmra.mxu1 %vm500_vm3, %v469_v37  ;;  %7763 = vmatprep.mubr.msk.f32.mxu0 %vm9077_vm2, %v9075_v0  ;;  %v6629_v37 = vld [vmem:[%s12589_s3 + $0x220] sm:$0xff] }
 0x1c0   :  { %7809 = vmatprep.mubr.msk.f32.mxu1 %vm9077_vm2, %v9075_v0 }
 0x1c2   :  { %7764 = vmatmul.mubr.msk.f32.gmra.mxu0 %vm500_vm3, %v6526_v38  ;;  %v6657_v38 = vld [vmem:[%s12589_s3 + $0x288] sm:$0xff] }
 0x1c3   :  { %7810 = vmatmul.mubr.msk.f32.gmra.mxu1 %vm500_vm3, %v470_v39  ;;  %7766 = vmatprep.mubr.msk.f32.mxu0 %vm9077_vm2, %v9075_v0  ;;  %v6630_v39 = vld [vmem:[%s12589_s3 + $0x228] sm:$0xff] }
 0x1c4   :  { %7812 = vmatprep.mubr.msk.f32.mxu1 %vm9077_vm2, %v9075_v0 }
 0x1c6   :  { %7767 = vmatmul.mubr.msk.f32.gmra.mxu0 %vm500_vm3, %v6527_v40  ;;  %v6658_v40 = vld [vmem:[%s12589_s3 + $0x290] sm:$0xff] }
 0x1c7   :  { %7813 = vmatmul.mubr.msk.f32.gmra.mxu1 %vm500_vm3, %v471_v41  ;;  %7769 = vmatprep.mubr.msk.f32.mxu0 %vm9077_vm2, %v9075_v0  ;;  %v6631_v41 = vld [vmem:[%s12589_s3 + $0x230] sm:$0xff] }
 0x1c8   :  { %7815 = vmatprep.mubr.msk.f32.mxu1 %vm9077_vm2, %v9075_v0 }
 0x1ca   :  { %7770 = vmatmul.mubr.msk.f32.gmra.mxu0 %vm500_vm3, %v6528_v42  ;;  %v6659_v42 = vld [vmem:[%s12589_s3 + $0x298] sm:$0xff] }
 0x1cb   :  { %7816 = vmatmul.mubr.msk.f32.gmra.mxu1 %vm500_vm3, %v472_v43  ;;  %7772 = vmatprep.mubr.msk.f32.mxu0 %vm9077_vm2, %v9075_v0  ;;  %v6632_v43 = vld [vmem:[%s12589_s3 + $0x238] sm:$0xff] }
 0x1cc   :  { %7818 = vmatprep.mubr.msk.f32.mxu1 %vm9077_vm2, %v9075_v0 }
 0x1ce   :  { %7773 = vmatmul.mubr.msk.f32.gmra.mxu0 %vm500_vm3, %v6529_v44  ;;  %v6660_v44 = vld [vmem:[%s12589_s3 + $0x2a0] sm:$0xff] }
 0x1cf   :  { %7819 = vmatmul.mubr.msk.f32.gmra.mxu1 %vm500_vm3, %v473_v45  ;;  %7831 = vmatprep.mubr.msk.f32.mxu0 %vm9077_vm2, %v9075_v0  ;;  %v6633_v45 = vld [vmem:[%s12589_s3 + $0x240] sm:$0xff] }
 0x1d0   :  { %7821 = vmatprep.mubr.msk.f32.mxu1 %vm9077_vm2, %v9075_v0 }
 0x1d2   :  { %7832 = vmatmul.mubr.msk.f32.vlgmr.msra.gmra.mxu0 %vm500_vm3, %v6561_v46  ;;  %v6661_v46 = vld [vmem:[%s12589_s3 + $0x2a8] sm:$0xff] }
 0x1d3   :  { %7822 = vmatmul.mubr.msk.f32.gmra.mxu1 %vm500_vm3, %v474_v47  ;;  %7926 = vmatpush3.msra.mxu0 %v1334_v48  ;;  %v6634_v47 = vld [vmem:[%s12589_s3 + $0x248] sm:$0xff]  ;;  %v6662_v48 = vld [vmem:[%s12589_s3 + $0x2b0] sm:$0xff] }
 0x1d4   :  { %7927 = vmatprep.subr.mxu0 %v9075_v0  ;;  %7824 = vmatprep.mubr.msk.f32.mxu1 %vm9077_vm2, %v9075_v0 }
 0x1d5   :  { %7928 = vmatpush3.msra.mxu0 %v1332_v50  ;;  %7834 = vmatprep.mubr.msk.f32.mxu0 %vm9077_vm2, %v9075_v0  ;;  %v6663_v50 = vld [vmem:[%s12589_s3 + $0x2b8] sm:$0xff] }
 0x1d6   :  { %7835 = vmatmul.mubr.msk.f32.gmra.mxu0 %vm500_vm3, %v6562_v49  ;;  %8023 = vmatprep.subr.mxu0 %v9075_v0  ;;  %v6635_v49 = vld [vmem:[%s12589_s3 + $0x250] sm:$0xff] }
 0x1d7   :  { %7825 = vmatmul.mubr.msk.f32.gmra.mxu1 %vm500_vm3, %v475_v51  ;;  %7837 = vmatprep.mubr.msk.f32.mxu0 %vm9077_vm2, %v9075_v0  ;;  %v6681_v51 = vld [vmem:[%s12589_s3 + $0x2d0] sm:$0xff] }
 0x1d8   :  { %7880 = vmatprep.mubr.msk.f32.mxu1 %vm9077_vm2, %v9075_v0 }
 0x1da   :  { %7838 = vmatmul.mubr.msk.f32.gmra.mxu0 %vm500_vm3, %v6563_v52  ;;  %v6664_v52 = vld [vmem:[%s12589_s3 + $0x2c0] sm:$0xff] }
 0x1db   :  { %7881 = vmatmul.mubr.msk.f32.vlgmr.msra.gmra.mxu1 %vm500_vm3, %v6591_v53  ;;  %7840 = vmatprep.mubr.msk.f32.mxu0 %vm9077_vm2, %v9075_v0  ;;  %v2222_v53 = vpop.permute.xlu0 %2221 }
 0x1dc   :  { %7975 = vmatpush3.msra.mxu1 %v1556_v54  ;;  %7883 = vmatprep.mubr.msk.f32.mxu1 %vm9077_vm2, %v9075_v0  ;;  %v6682_v54 = vld [vmem:[%s12589_s3 + $0x2d8] sm:$0xff] }
 0x1dd   :  { %7976 = vmatprep.subr.mxu1 %v9075_v0 }
 0x1de   :  { %7977 = vmatpush3.msra.mxu1 %v1554_v57  ;;  %7841 = vmatmul.mubr.msk.f32.gmra.mxu0 %vm500_vm3, %v6564_v55  ;;  %v2220_v55 = vpop.permute.xlu1 %2219  ;;  %v6683_v57 = vld [vmem:[%s12589_s3 + $0x2e0] sm:$0xff] }
 0x1df   :  { %7884 = vmatmul.mubr.msk.f32.gmra.mxu1 %vm500_vm3, %v6592_v56  ;;  %7843 = vmatprep.mubr.msk.f32.mxu0 %vm9077_vm2, %v9075_v0  ;;  %v6665_v56 = vld [vmem:[%s12589_s3 + $0x2c8] sm:$0xff] }
 0x1e0   :  { %7886 = vmatprep.mubr.msk.f32.mxu1 %vm9077_vm2, %v9075_v0  ;;  %8072 = vmatprep.subr.mxu1 %v9075_v0 }
 0x1e2   :  { %7844 = vmatmul.mubr.msk.f32.gmra.mxu0 %vm500_vm3, %v6565_v58  ;;  %v6711_v58 = vld [vmem:[%s12589_s3 + $0x348] sm:$0xff] }
 0x1e3   :  { %7887 = vmatmul.mubr.msk.f32.gmra.mxu1 %vm500_vm3, %v6593_v59  ;;  %7846 = vmatprep.mubr.msk.f32.mxu0 %vm9077_vm2, %v9075_v0  ;;  %v2444_v59 = vpop.permute.xlu0 %2443 }
 0x1e4   :  { %7889 = vmatprep.mubr.msk.f32.mxu1 %vm9077_vm2, %v9075_v0 }
 0x1e6   :  { %7847 = vmatmul.mubr.msk.f32.gmra.mxu0 %vm500_vm3, %v6566_v60  ;;  %v6684_v60 = vld [vmem:[%s12589_s3 + $0x2e8] sm:$0xff] }
 0x1e7   :  { %7890 = vmatmul.mubr.msk.f32.gmra.mxu1 %vm500_vm3, %v6594_v61  ;;  %7849 = vmatprep.mubr.msk.f32.mxu0 %vm9077_vm2, %v9075_v0  ;;  %v6712_v61 = vld [vmem:[%s12589_s3 + $0x350] sm:$0xff] }
 0x1e8   :  { %7892 = vmatprep.mubr.msk.f32.mxu1 %vm9077_vm2, %v9075_v0 }
 0x1ea   :  { %7850 = vmatmul.mubr.msk.f32.gmra.mxu0 %vm500_vm3, %v6567_v62  ;;  %v2442_v62 = vpop.permute.xlu1 %2441 }
 0x1eb   :  { %7893 = vmatmul.mubr.msk.f32.gmra.mxu1 %vm500_vm3, %v6595_v63  ;;  %7852 = vmatprep.mubr.msk.f32.mxu0 %vm9077_vm2, %v9075_v0 }
 0x1ec   :  { %7895 = vmatprep.mubr.msk.f32.mxu1 %vm9077_vm2, %v9075_v0 }
 0x1ee   :  { %7853 = vmatmul.mubr.msk.f32.gmra.mxu0 %vm500_vm3, %v6568_v1  ;;  %v6685_v1 = vld [vmem:[%s12589_s3 + $0x2f0] sm:$0xff] }
 0x1ef   :  { %7896 = vmatmul.mubr.msk.f32.gmra.mxu1 %vm500_vm3, %v6596_v2  ;;  %7855 = vmatprep.mubr.msk.f32.mxu0 %vm9077_vm2, %v9075_v0 }
 0x1f0   :  { %7898 = vmatprep.mubr.msk.f32.mxu1 %vm9077_vm2, %v9075_v0 }
 0x1f2   :  { %7856 = vmatmul.mubr.msk.f32.gmra.mxu0 %vm500_vm3, %v6569_v3  ;;  %v6713_v3 = vld [vmem:[%s12589_s3 + $0x358] sm:$0xff] }
 0x1f3   :  { %7899 = vmatmul.mubr.msk.f32.gmra.mxu1 %vm500_vm3, %v6597_v4  ;;  %7858 = vmatprep.mubr.msk.f32.mxu0 %vm9077_vm2, %v9075_v0 }
 0x1f4   :  { %7901 = vmatprep.mubr.msk.f32.mxu1 %vm9077_vm2, %v9075_v0 }
 0x1f6   :  { %7859 = vmatmul.mubr.msk.f32.gmra.mxu0 %vm500_vm3, %v6570_v5 }
 0x1f7   :  { %7902 = vmatmul.mubr.msk.f32.gmra.mxu1 %vm500_vm3, %v6598_v6  ;;  %7861 = vmatprep.mubr.msk.f32.mxu0 %vm9077_vm2, %v9075_v0  ;;  %v6686_v6 = vld [vmem:[%s12589_s3 + $0x2f8] sm:$0xff] }
 0x1f8   :  { %7904 = vmatprep.mubr.msk.f32.mxu1 %vm9077_vm2, %v9075_v0 }
 0x1fa   :  { %7862 = vmatmul.mubr.msk.f32.gmra.mxu0 %vm500_vm3, %v6571_v7  ;;  %v6714_v7 = vld [vmem:[%s12589_s3 + $0x360] sm:$0xff] }
 0x1fb   :  { %7905 = vmatmul.mubr.msk.f32.gmra.mxu1 %vm500_vm3, %v6599_v8  ;;  %7864 = vmatprep.mubr.msk.f32.mxu0 %vm9077_vm2, %v9075_v0 }
 0x1fc   :  { %7907 = vmatprep.mubr.msk.f32.mxu1 %vm9077_vm2, %v9075_v0 }
 0x1fe   :  { %7865 = vmatmul.mubr.msk.f32.gmra.mxu0 %vm500_vm3, %v6572_v9 }
 0x1ff   :  { %7908 = vmatmul.mubr.msk.f32.gmra.mxu1 %vm500_vm3, %v6600_v10  ;;  %7867 = vmatprep.mubr.msk.f32.mxu0 %vm9077_vm2, %v9075_v0 }
 0x200   :  { %7910 = vmatprep.mubr.msk.f32.mxu1 %vm9077_vm2, %v9075_v0 }
 0x202   :  { %7868 = vmatmul.mubr.msk.f32.gmra.mxu0 %vm500_vm3, %v6573_v11  ;;  %v6687_v11 = vld [vmem:[%s12589_s3 + $0x300] sm:$0xff] }
 0x203   :  { %7911 = vmatmul.mubr.msk.f32.gmra.mxu1 %vm500_vm3, %v6601_v12  ;;  %7870 = vmatprep.mubr.msk.f32.mxu0 %vm9077_vm2, %v9075_v0 }
 0x204   :  { %7913 = vmatprep.mubr.msk.f32.mxu1 %vm9077_vm2, %v9075_v0 }
 0x206   :  { %7871 = vmatmul.mubr.msk.f32.gmra.mxu0 %vm500_vm3, %v6574_v13 }
 0x207   :  { %7914 = vmatmul.mubr.msk.f32.gmra.mxu1 %vm500_vm3, %v6602_v14  ;;  %7873 = vmatprep.mubr.msk.f32.mxu0 %vm9077_vm2, %v9075_v0  ;;  %v6715_v14 = vld [vmem:[%s12589_s3 + $0x368] sm:$0xff] }
 0x208   :  { %7916 = vmatprep.mubr.msk.f32.mxu1 %vm9077_vm2, %v9075_v0 }
 0x20a   :  { %7874 = vmatmul.mubr.msk.f32.gmra.mxu0 %vm500_vm3, %v6575_v15 }
 0x20b   :  { %7917 = vmatmul.mubr.msk.f32.gmra.mxu1 %vm500_vm3, %v6603_v16  ;;  %7929 = vmatprep.mubr.msk.f32.mxu0 %vm9077_vm2, %v9075_v0 }
 0x20c   :  { %7919 = vmatprep.mubr.msk.f32.mxu1 %vm9077_vm2, %v9075_v0 }
 0x20e   :  { %7930 = vmatmul.mubr.msk.f32.vlgmr.msra.gmra.mxu0 %vm500_vm3, %v6621_v17  ;;  %v6688_v17 = vld [vmem:[%s12589_s3 + $0x308] sm:$0xff] }
 0x20f   :  { %7920 = vmatmul.mubr.msk.f32.gmra.mxu1 %vm500_vm3, %v6604_v18  ;;  %8024 = vmatpush3.msra.mxu0 %v1778_v19 }
 0x210   :  { %8025 = vmatprep.subr.mxu0 %v9075_v0  ;;  %7922 = vmatprep.mubr.msk.f32.mxu1 %vm9077_vm2, %v9075_v0 }
 0x211   :  { %8026 = vmatpush3.msra.mxu0 %v1776_v21  ;;  %7932 = vmatprep.mubr.msk.f32.mxu0 %vm9077_vm2, %v9075_v0 }
 0x212   :  { %7933 = vmatmul.mubr.msk.f32.gmra.mxu0 %vm500_vm3, %v6622_v20  ;;  %8121 = vmatprep.subr.mxu0 %v9075_v0  ;;  %v6716_v20 = vld [vmem:[%s12589_s3 + $0x370] sm:$0xff] }
 0x213   :  { %7923 = vmatmul.mubr.msk.f32.gmra.mxu1 %vm500_vm3, %v6605_v22  ;;  %7935 = vmatprep.mubr.msk.f32.mxu0 %vm9077_vm2, %v9075_v0 }
 0x214   :  { %7978 = vmatprep.mubr.msk.f32.mxu1 %vm9077_vm2, %v9075_v0 }
 0x216   :  { %7936 = vmatmul.mubr.msk.f32.gmra.mxu0 %vm500_vm3, %v6623_v23 }
 0x217   :  { %7979 = vmatmul.mubr.msk.f32.vlgmr.msra.gmra.mxu1 %vm500_vm3, %v6651_v24  ;;  %7938 = vmatprep.mubr.msk.f32.mxu0 %vm9077_vm2, %v9075_v0  ;;  %v6689_v24 = vld [vmem:[%s12589_s3 + $0x310] sm:$0xff] }
 0x218   :  { %8073 = vmatpush3.msra.mxu1 %v2000_v25  ;;  %7981 = vmatprep.mubr.msk.f32.mxu1 %vm9077_vm2, %v9075_v0 }
 0x219   :  { %8074 = vmatprep.subr.mxu1 %v9075_v0 }
 0x21a   :  { %8075 = vmatpush3.msra.mxu1 %v1998_v28  ;;  %7939 = vmatmul.mubr.msk.f32.gmra.mxu0 %vm500_vm3, %v6624_v26 }
 0x21b   :  { %7982 = vmatmul.mubr.msk.f32.gmra.mxu1 %vm500_vm3, %v6652_v27  ;;  %7941 = vmatprep.mubr.msk.f32.mxu0 %vm9077_vm2, %v9075_v0  ;;  %v6717_v27 = vld [vmem:[%s12589_s3 + $0x378] sm:$0xff] }
 0x21c   :  { %7984 = vmatprep.mubr.msk.f32.mxu1 %vm9077_vm2, %v9075_v0  ;;  %8170 = vmatprep.subr.mxu1 %v9075_v0 }
 0x21e   :  { %7942 = vmatmul.mubr.msk.f32.gmra.mxu0 %vm500_vm3, %v6625_v29 }
 0x21f   :  { %7985 = vmatmul.mubr.msk.f32.gmra.mxu1 %vm500_vm3, %v6653_v30  ;;  %7944 = vmatprep.mubr.msk.f32.mxu0 %vm9077_vm2, %v9075_v0 }
 0x220   :  { %7987 = vmatprep.mubr.msk.f32.mxu1 %vm9077_vm2, %v9075_v0 }
 0x222   :  { %7945 = vmatmul.mubr.msk.f32.gmra.mxu0 %vm500_vm3, %v6626_v31  ;;  %v6690_v31 = vld [vmem:[%s12589_s3 + $0x318] sm:$0xff] }
 0x223   :  { %7988 = vmatmul.mubr.msk.f32.gmra.mxu1 %vm500_vm3, %v6654_v32  ;;  %7947 = vmatprep.mubr.msk.f32.mxu0 %vm9077_vm2, %v9075_v0 }
 0x224   :  { %7990 = vmatprep.mubr.msk.f32.mxu1 %vm9077_vm2, %v9075_v0 }
 0x226   :  { %7948 = vmatmul.mubr.msk.f32.gmra.mxu0 %vm500_vm3, %v6627_v33 }
 0x227   :  { %7991 = vmatmul.mubr.msk.f32.gmra.mxu1 %vm500_vm3, %v6655_v34  ;;  %7950 = vmatprep.mubr.msk.f32.mxu0 %vm9077_vm2, %v9075_v0  ;;  %v6718_v34 = vld [vmem:[%s12589_s3 + $0x380] sm:$0xff] }
 0x228   :  { %7993 = vmatprep.mubr.msk.f32.mxu1 %vm9077_vm2, %v9075_v0 }
 0x22a   :  { %7951 = vmatmul.mubr.msk.f32.gmra.mxu0 %vm500_vm3, %v6628_v35 }
 0x22b   :  { %7994 = vmatmul.mubr.msk.f32.gmra.mxu1 %vm500_vm3, %v6656_v36  ;;  %7953 = vmatprep.mubr.msk.f32.mxu0 %vm9077_vm2, %v9075_v0 }
 0x22c   :  { %7996 = vmatprep.mubr.msk.f32.mxu1 %vm9077_vm2, %v9075_v0 }
 0x22e   :  { %7954 = vmatmul.mubr.msk.f32.gmra.mxu0 %vm500_vm3, %v6629_v37 }
 0x22f   :  { %7997 = vmatmul.mubr.msk.f32.gmra.mxu1 %vm500_vm3, %v6657_v38  ;;  %7956 = vmatprep.mubr.msk.f32.mxu0 %vm9077_vm2, %v9075_v0  ;;  %v6691_v38 = vld [vmem:[%s12589_s3 + $0x320] sm:$0xff] }
 0x230   :  { %7999 = vmatprep.mubr.msk.f32.mxu1 %vm9077_vm2, %v9075_v0 }
 0x232   :  { %7957 = vmatmul.mubr.msk.f32.gmra.mxu0 %vm500_vm3, %v6630_v39 }
 0x233   :  { %8000 = vmatmul.mubr.msk.f32.gmra.mxu1 %vm500_vm3, %v6658_v40  ;;  %7959 = vmatprep.mubr.msk.f32.mxu0 %vm9077_vm2, %v9075_v0 }
 0x234   :  { %8002 = vmatprep.mubr.msk.f32.mxu1 %vm9077_vm2, %v9075_v0 }
 0x236   :  { %7960 = vmatmul.mubr.msk.f32.gmra.mxu0 %vm500_vm3, %v6631_v41  ;;  %v6719_v41 = vld [vmem:[%s12589_s3 + $0x388] sm:$0xff] }
 0x237   :  { %8003 = vmatmul.mubr.msk.f32.gmra.mxu1 %vm500_vm3, %v6659_v42  ;;  %7962 = vmatprep.mubr.msk.f32.mxu0 %vm9077_vm2, %v9075_v0 }
 0x238   :  { %8005 = vmatprep.mubr.msk.f32.mxu1 %vm9077_vm2, %v9075_v0 }
 0x23a   :  { %7963 = vmatmul.mubr.msk.f32.gmra.mxu0 %vm500_vm3, %v6632_v43 }
 0x23b   :  { %8006 = vmatmul.mubr.msk.f32.gmra.mxu1 %vm500_vm3, %v6660_v44  ;;  %7965 = vmatprep.mubr.msk.f32.mxu0 %vm9077_vm2, %v9075_v0 }
 0x23c   :  { %8008 = vmatprep.mubr.msk.f32.mxu1 %vm9077_vm2, %v9075_v0 }
 0x23e   :  { %7966 = vmatmul.mubr.msk.f32.gmra.mxu0 %vm500_vm3, %v6633_v45  ;;  %v6692_v45 = vld [vmem:[%s12589_s3 + $0x328] sm:$0xff] }
 0x23f   :  { %8009 = vmatmul.mubr.msk.f32.gmra.mxu1 %vm500_vm3, %v6661_v46  ;;  %7968 = vmatprep.mubr.msk.f32.mxu0 %vm9077_vm2, %v9075_v0 }
 0x240   :  { %8011 = vmatprep.mubr.msk.f32.mxu1 %vm9077_vm2, %v9075_v0 }
 0x242   :  { %7969 = vmatmul.mubr.msk.f32.gmra.mxu0 %vm500_vm3, %v6634_v47 }
 0x243   :  { %8012 = vmatmul.mubr.msk.f32.gmra.mxu1 %vm500_vm3, %v6662_v48  ;;  %7971 = vmatprep.mubr.msk.f32.mxu0 %vm9077_vm2, %v9075_v0  ;;  %v6720_v48 = vld [vmem:[%s12589_s3 + $0x390] sm:$0xff] }
 0x244   :  { %8014 = vmatprep.mubr.msk.f32.mxu1 %vm9077_vm2, %v9075_v0 }
 0x246   :  { %7972 = vmatmul.mubr.msk.f32.gmra.mxu0 %vm500_vm3, %v6635_v49 }
 0x247   :  { %8015 = vmatmul.mubr.msk.f32.gmra.mxu1 %vm500_vm3, %v6663_v50  ;;  %8027 = vmatprep.mubr.msk.f32.mxu0 %vm9077_vm2, %v9075_v0 }
 0x248   :  { %8017 = vmatprep.mubr.msk.f32.mxu1 %vm9077_vm2, %v9075_v0 }
 0x24a   :  { %8028 = vmatmul.mubr.msk.f32.vlgmr.msra.gmra.mxu0 %vm500_vm3, %v6681_v51 }
 0x24b   :  { %8018 = vmatmul.mubr.msk.f32.gmra.mxu1 %vm500_vm3, %v6664_v52  ;;  %8122 = vmatpush3.msra.mxu0 %v2222_v53  ;;  %v6693_v52 = vld [vmem:[%s12589_s3 + $0x330] sm:$0xff] }
 0x24c   :  { %8123 = vmatprep.subr.mxu0 %v9075_v0  ;;  %8020 = vmatprep.mubr.msk.f32.mxu1 %vm9077_vm2, %v9075_v0 }
 0x24d   :  { %8124 = vmatpush3.msra.mxu0 %v2220_v55  ;;  %8030 = vmatprep.mubr.msk.f32.mxu0 %vm9077_vm2, %v9075_v0  ;;  %v6721_v55 = vld [vmem:[%s12589_s3 + $0x398] sm:$0xff] }
 0x24e   :  { %8031 = vmatmul.mubr.msk.f32.gmra.mxu0 %vm500_vm3, %v6682_v54  ;;  %8219 = vmatprep.subr.mxu0 %v9075_v0 }
 0x24f   :  { %8021 = vmatmul.mubr.msk.f32.gmra.mxu1 %vm500_vm3, %v6665_v56  ;;  %8033 = vmatprep.mubr.msk.f32.mxu0 %vm9077_vm2, %v9075_v0 }
 0x250   :  { %8076 = vmatprep.mubr.msk.f32.mxu1 %vm9077_vm2, %v9075_v0 }
 0x252   :  { %8034 = vmatmul.mubr.msk.f32.gmra.mxu0 %vm500_vm3, %v6683_v57 }
 0x253   :  { %8077 = vmatmul.mubr.msk.f32.vlgmr.msra.gmra.mxu1 %vm500_vm3, %v6711_v58  ;;  %8036 = vmatprep.mubr.msk.f32.mxu0 %vm9077_vm2, %v9075_v0 }
 0x254   :  { %8171 = vmatpush3.msra.mxu1 %v2444_v59  ;;  %8079 = vmatprep.mubr.msk.f32.mxu1 %vm9077_vm2, %v9075_v0  ;;  %v6694_v59 = vld [vmem:[%s12589_s3 + $0x338] sm:$0xff] }
 0x255   :  { %8172 = vmatprep.subr.mxu1 %v9075_v0 }
 0x256   :  { %8173 = vmatpush3.msra.mxu1 %v2442_v62  ;;  %8037 = vmatmul.mubr.msk.f32.gmra.mxu0 %vm500_vm3, %v6684_v60  ;;  %v6722_v62 = vld [vmem:[%s12589_s3 + $0x3a0] sm:$0xff] }
 0x257   :  { %8080 = vmatmul.mubr.msk.f32.gmra.mxu1 %vm500_vm3, %v6712_v61  ;;  %8039 = vmatprep.mubr.msk.f32.mxu0 %vm9077_vm2, %v9075_v0  ;;  %v612_v63 = vpop.f32.mrf.mxu0 }
 0x258   :  { %8082 = vmatprep.mubr.msk.f32.mxu1 %vm9077_vm2, %v9075_v0  ;;  %v10200_v2 = vpop.f32.mrf.mxu1  ;;  %8268 = vmatprep.subr.mxu1 %v9075_v0 }
 0x259   :  { %v7735_v4 = vpop.f32.mrf.mxu0 }
 0x25a   :  { %8040 = vmatmul.mubr.msk.f32.gmra.mxu0 %vm500_vm3, %v6685_v1  ;;  %v7777_v5 = vpop.f32.mrf.mxu1  ;;  %v6695_v4 = vld [vmem:[%s12589_s3 + $0x340] sm:$0xff] }
 0x25b   :  { %8083 = vmatmul.mubr.msk.f32.gmra.mxu1 %vm500_vm3, %v6713_v3  ;;  %8042 = vmatprep.mubr.msk.f32.mxu0 %vm9077_vm2, %v9075_v0 }
 0x25c   :  { %8085 = vmatprep.mubr.msk.f32.mxu1 %vm9077_vm2, %v9075_v0 }
 0x25e   :  { %v617_v8 = vpop.f32.mrf.mxu0  ;;  %v797_v9 = vpop.f32.mrf.mxu1  ;;  %8043 = vmatmul.mubr.msk.f32.gmra.mxu0 %vm500_vm3, %v6686_v6 }
 0x25f   :  { %v10219_v10 = vadd.f32 %v797_v9, %v612_v63  ;;  %8086 = vmatmul.mubr.msk.f32.gmra.mxu1 %vm500_vm3, %v6714_v7  ;;  %8045 = vmatprep.mubr.msk.f32.mxu0 %vm9077_vm2, %v9075_v0  ;;  %v6723_v7 = vld [vmem:[%s12589_s3 + $0x3a8] sm:$0xff] }
 0x260   :  { %v7738_v12 = vpop.f32.mrf.mxu0  ;;  %v7784_v13 = vpop.f32.mrf.mxu1  ;;  %8088 = vmatprep.mubr.msk.f32.mxu1 %vm9077_vm2, %v9075_v0 }
 0x261   :  { %v6741_v12 = vld [vmem:[%s12589_s3 + $0x3c0] sm:$0xff] }
 0x262   :  { %v622_v15 = vpop.f32.mrf.mxu0  ;;  %8046 = vmatmul.mubr.msk.f32.gmra.mxu0 %vm500_vm3, %v6687_v11 }
 0x263   :  { %v802_v16 = vpop.f32.mrf.mxu1  ;;  %8089 = vmatmul.mubr.msk.f32.gmra.mxu1 %vm500_vm3, %v6715_v14  ;;  %8048 = vmatprep.mubr.msk.f32.mxu0 %vm9077_vm2, %v9075_v0 }
 0x264   :  { %v10239_v18 = vadd.f32 %v802_v16, %v617_v8  ;;  %v7741_v19 = vpop.f32.mrf.mxu0  ;;  %8091 = vmatprep.mubr.msk.f32.mxu1 %vm9077_vm2, %v9075_v0 }
 0x265   :  { %v7787_v21 = vpop.f32.mrf.mxu1 }
 0x266   :  { %v627_v22 = vpop.f32.mrf.mxu0  ;;  %8049 = vmatmul.mubr.msk.f32.gmra.mxu0 %vm500_vm3, %v6688_v17  ;;  %v2666_v17 = vpop.permute.xlu0 %2665  ;;  %v6742_v21 = vld [vmem:[%s12589_s3 + $0x3c8] sm:$0xff] }
 0x267   :  { %v807_v23 = vpop.f32.mrf.mxu1  ;;  %8092 = vmatmul.mubr.msk.f32.gmra.mxu1 %vm500_vm3, %v6716_v20  ;;  %8051 = vmatprep.mubr.msk.f32.mxu0 %vm9077_vm2, %v9075_v0 }
 0x268   :  { %v10253_v25 = vadd.f32 %v807_v23, %v622_v15  ;;  %v7744_v26 = vpop.f32.mrf.mxu0  ;;  %8094 = vmatprep.mubr.msk.f32.mxu1 %vm9077_vm2, %v9075_v0  ;;  %v6724_v15 = vld [vmem:[%s12589_s3 + $0x3b0] sm:$0xff] }
 0x269   :  { %v7790_v28 = vpop.f32.mrf.mxu1  ;;  %v6725_v26 = vld [vmem:[%s12589_s3 + $0x3b8] sm:$0xff] }
 0x26a   :  { %v632_v29 = vpop.f32.mrf.mxu0  ;;  %8052 = vmatmul.mubr.msk.f32.gmra.mxu0 %vm500_vm3, %v6689_v24 }
 0x26b   :  { %v812_v30 = vpop.f32.mrf.mxu1  ;;  %8095 = vmatmul.mubr.msk.f32.gmra.mxu1 %vm500_vm3, %v6717_v27  ;;  %8054 = vmatprep.mubr.msk.f32.mxu0 %vm9077_vm2, %v9075_v0 }
 0x26c   :  { %v10267_v32 = vadd.f32 %v812_v30, %v627_v22  ;;  %v7747_v33 = vpop.f32.mrf.mxu0  ;;  %8097 = vmatprep.mubr.msk.f32.mxu1 %vm9077_vm2, %v9075_v0  ;;  %v2664_v22 = vpop.permute.xlu1 %2663  ;;  %v6743_v30 = vld [vmem:[%s12589_s3 + $0x3d0] sm:$0xff] }
 0x26d   :  { %v7793_v35 = vpop.f32.mrf.mxu1 }
 0x26e   :  { %v637_v36 = vpop.f32.mrf.mxu0  ;;  %8055 = vmatmul.mubr.msk.f32.gmra.mxu0 %vm500_vm3, %v6690_v31 }
 0x26f   :  { %v817_v37 = vpop.f32.mrf.mxu1  ;;  %8098 = vmatmul.mubr.msk.f32.gmra.mxu1 %vm500_vm3, %v6718_v34  ;;  %8057 = vmatprep.mubr.msk.f32.mxu0 %vm9077_vm2, %v9075_v0  ;;  %v6771_v34 = vld [vmem:[%s12589_s3 + $0x438] sm:$0xff] }
 0x270   :  { %v10281_v39 = vadd.f32 %v817_v37, %v632_v29  ;;  %v7750_v40 = vpop.f32.mrf.mxu0  ;;  %8100 = vmatprep.mubr.msk.f32.mxu1 %vm9077_vm2, %v9075_v0  ;;  %v2888_v37 = vpop.permute.xlu0 %2887 }
 0x271   :  { %v7796_v42 = vpop.f32.mrf.mxu1  ;;  %v6744_v40 = vld [vmem:[%s12589_s3 + $0x3d8] sm:$0xff] }
 0x272   :  { %v642_v43 = vpop.f32.mrf.mxu0  ;;  %8058 = vmatmul.mubr.msk.f32.gmra.mxu0 %vm500_vm3, %v6691_v38 }
 0x273   :  { %v822_v44 = vpop.f32.mrf.mxu1  ;;  %8101 = vmatmul.mubr.msk.f32.gmra.mxu1 %vm500_vm3, %v6719_v41  ;;  %8060 = vmatprep.mubr.msk.f32.mxu0 %vm9077_vm2, %v9075_v0 }
 0x274   :  { %v10295_v46 = vadd.f32 %v822_v44, %v637_v36  ;;  %v7753_v47 = vpop.f32.mrf.mxu0  ;;  %8103 = vmatprep.mubr.msk.f32.mxu1 %vm9077_vm2, %v9075_v0  ;;  %v2886_v44 = vpop.permute.xlu1 %2885 }
 0x275   :  { %v7799_v49 = vpop.f32.mrf.mxu1 }
 0x276   :  { %v647_v50 = vpop.f32.mrf.mxu0  ;;  %8061 = vmatmul.mubr.msk.f32.gmra.mxu0 %vm500_vm3, %v6692_v45 }
 0x277   :  { %v827_v51 = vpop.f32.mrf.mxu1  ;;  %8104 = vmatmul.mubr.msk.f32.gmra.mxu1 %vm500_vm3, %v6720_v48  ;;  %8063 = vmatprep.mubr.msk.f32.mxu0 %vm9077_vm2, %v9075_v0 }
 0x278   :  { %v10309_v53 = vadd.f32 %v827_v51, %v642_v43  ;;  %v7756_v54 = vpop.f32.mrf.mxu0  ;;  %8106 = vmatprep.mubr.msk.f32.mxu1 %vm9077_vm2, %v9075_v0  ;;  %v6772_v43 = vld [vmem:[%s12589_s3 + $0x440] sm:$0xff] }
 0x279   :  { %v7802_v56 = vpop.f32.mrf.mxu1  ;;  %v6773_v54 = vld [vmem:[%s12589_s3 + $0x448] sm:$0xff] }
 0x27a   :  { %v652_v57 = vpop.f32.mrf.mxu0  ;;  %8064 = vmatmul.mubr.msk.f32.gmra.mxu0 %vm500_vm3, %v6693_v52 }
 0x27b   :  { %v832_v58 = vpop.f32.mrf.mxu1  ;;  %8107 = vmatmul.mubr.msk.f32.gmra.mxu1 %vm500_vm3, %v6721_v55  ;;  %8066 = vmatprep.mubr.msk.f32.mxu0 %vm9077_vm2, %v9075_v0 }
 0x27c   :  { %v10323_v60 = vadd.f32 %v832_v58, %v647_v50  ;;  %v7759_v61 = vpop.f32.mrf.mxu0  ;;  %8109 = vmatprep.mubr.msk.f32.mxu1 %vm9077_vm2, %v9075_v0  ;;  %v6745_v50 = vld [vmem:[%s12589_s3 + $0x3e0] sm:$0xff]  ;;  %v6746_v58 = vld [vmem:[%s12589_s3 + $0x3e8] sm:$0xff] }
 0x27d   :  { %v7805_v63 = vpop.f32.mrf.mxu1 }
 0x27e   :  { %v657_v1 = vpop.f32.mrf.mxu0  ;;  %8067 = vmatmul.mubr.msk.f32.gmra.mxu0 %vm500_vm3, %v6694_v59 }
 0x27f   :  { %v837_v3 = vpop.f32.mrf.mxu1  ;;  %8110 = vmatmul.mubr.msk.f32.gmra.mxu1 %vm500_vm3, %v6722_v62  ;;  %8069 = vmatprep.mubr.msk.f32.mxu0 %vm9077_vm2, %v9075_v0 }
 0x280   :  { %v10337_v5 = vadd.f32 %v837_v3, %v652_v57  ;;  %v7762_v6 = vpop.f32.mrf.mxu0  ;;  %8112 = vmatprep.mubr.msk.f32.mxu1 %vm9077_vm2, %v9075_v0 }
 0x281   :  { %v7808_v8 = vpop.f32.mrf.mxu1 }
 0x282   :  { %v662_v9 = vpop.f32.mrf.mxu0  ;;  %8070 = vmatmul.mubr.msk.f32.gmra.mxu0 %vm500_vm3, %v6695_v4 }
 0x283   :  { %v842_v11 = vpop.f32.mrf.mxu1  ;;  %8113 = vmatmul.mubr.msk.f32.gmra.mxu1 %vm500_vm3, %v6723_v7  ;;  %8125 = vmatprep.mubr.msk.f32.mxu0 %vm9077_vm2, %v9075_v0 }
 0x284   :  { %v10351_v13 = vadd.f32 %v842_v11, %v657_v1  ;;  %v7765_v14 = vpop.f32.mrf.mxu0  ;;  %8115 = vmatprep.mubr.msk.f32.mxu1 %vm9077_vm2, %v9075_v0 }
 0x285   :  { %v7811_v16 = vpop.f32.mrf.mxu1 }
 0x286   :  { %v667_v19 = vpop.f32.mrf.mxu0  ;;  %8126 = vmatmul.mubr.msk.f32.vlgmr.msra.gmra.mxu0 %vm500_vm3, %v6741_v12  ;;  %v6748_v12 = vld [vmem:[%s12589_s3 + $0x3f8] sm:$0xff] }
 0x287   :  { %v847_v20 = vpop.f32.mrf.mxu1  ;;  %8116 = vmatmul.mubr.msk.f32.gmra.mxu1 %vm500_vm3, %v6724_v15  ;;  %8220 = vmatpush3.msra.mxu0 %v2666_v17 }
 0x288   :  { %v10363_v23 = vadd.f32 %v847_v20, %v662_v9  ;;  %8221 = vmatprep.subr.mxu0 %v9075_v0  ;;  %v7768_v24 = vpop.f32.mrf.mxu0  ;;  %8118 = vmatprep.mubr.msk.f32.mxu1 %vm9077_vm2, %v9075_v0 }
 0x289   :  { %v7814_v27 = vpop.f32.mrf.mxu1  ;;  %8222 = vmatpush3.msra.mxu0 %v2664_v22  ;;  %8128 = vmatprep.mubr.msk.f32.mxu0 %vm9077_vm2, %v9075_v0 }
 0x28a   :  { %v672_v28 = vpop.f32.mrf.mxu0  ;;  %8129 = vmatmul.mubr.msk.f32.gmra.mxu0 %vm500_vm3, %v6742_v21  ;;  %8317 = vmatprep.subr.mxu0 %v9075_v0  ;;  %v6749_v21 = vld [vmem:[%s12589_s3 + $0x400] sm:$0xff] }
 0x28b   :  { %v852_v29 = vpop.f32.mrf.mxu1  ;;  %8119 = vmatmul.mubr.msk.f32.gmra.mxu1 %vm500_vm3, %v6725_v26  ;;  %8131 = vmatprep.mubr.msk.f32.mxu0 %vm9077_vm2, %v9075_v0 }
 0x28c   :  { %v10381_v31 = vadd.f32 %v852_v29, %v667_v19  ;;  %v7771_v33 = vpop.f32.mrf.mxu0  ;;  %8174 = vmatprep.mubr.msk.f32.mxu1 %vm9077_vm2, %v9075_v0 }
 0x28d   :  { %v7817_v35 = vpop.f32.mrf.mxu1 }
 0x28e   :  { %v677_v36 = vpop.f32.mrf.mxu0  ;;  %8132 = vmatmul.mubr.msk.f32.gmra.mxu0 %vm500_vm3, %v6743_v30  ;;  %v6750_v30 = vld [vmem:[%s12589_s3 + $0x408] sm:$0xff] }
 0x28f   :  { %v857_v38 = vpop.f32.mrf.mxu1  ;;  %8175 = vmatmul.mubr.msk.f32.vlgmr.msra.gmra.mxu1 %vm500_vm3, %v6771_v34  ;;  %8134 = vmatprep.mubr.msk.f32.mxu0 %vm9077_vm2, %v9075_v0 }
 0x290   :  { %v10395_v41 = vadd.f32 %v857_v38, %v672_v28  ;;  %8269 = vmatpush3.msra.mxu1 %v2888_v37  ;;  %v7774_v42 = vpop.f32.mrf.mxu0  ;;  %8177 = vmatprep.mubr.msk.f32.mxu1 %vm9077_vm2, %v9075_v0 }
 0x291   :  { %8270 = vmatprep.subr.mxu1 %v9075_v0  ;;  %v7820_v45 = vpop.f32.mrf.mxu1 }
 0x292   :  { %8271 = vmatpush3.msra.mxu1 %v2886_v44  ;;  %v1004_v47 = vpop.f32.mrf.mxu0  ;;  %8135 = vmatmul.mubr.msk.f32.gmra.mxu0 %vm500_vm3, %v6744_v40  ;;  %v6751_v40 = vld [vmem:[%s12589_s3 + $0x410] sm:$0xff] }
 0x293   :  { %v862_v48 = vpop.f32.mrf.mxu1  ;;  %v1078_v49 = vadd.f32 %v1004_v47, %v10219_v10  ;;  %8178 = vmatmul.mubr.msk.f32.gmra.mxu1 %vm500_vm3, %v6772_v43  ;;  %8137 = vmatprep.mubr.msk.f32.mxu0 %vm9077_vm2, %v9075_v0 }
 0x294   :  { %v10411_v51 = vadd.f32 %v862_v48, %v677_v36  ;;  %v7833_v52 = vpop.f32.mrf.mxu0  ;;  %8180 = vmatprep.mubr.msk.f32.mxu1 %vm9077_vm2, %v9075_v0  ;;  %8366 = vmatprep.subr.mxu1 %v9075_v0 }
 0x295   :  { %v7823_v10 = vpop.f32.mrf.mxu1 }
 0x296   :  { %v1009_v55 = vpop.f32.mrf.mxu0  ;;  %8138 = vmatmul.mubr.msk.f32.gmra.mxu0 %vm500_vm3, %v6745_v50 }
 0x297   :  { %v867_v56 = vpop.f32.mrf.mxu1  ;;  %v1079_v57 = vadd.f32 %v1009_v55, %v10239_v18  ;;  %8181 = vmatmul.mubr.msk.f32.gmra.mxu1 %vm500_vm3, %v6773_v54  ;;  %8140 = vmatprep.mubr.msk.f32.mxu0 %vm9077_vm2, %v9075_v0  ;;  %v6774_v18 = vld [vmem:[%s12589_s3 + $0x450] sm:$0xff] }
 0x298   :  { %v10428_v59 = vadd.f32 %v867_v56, %v10200_v2  ;;  %v7836_v61 = vpop.f32.mrf.mxu0  ;;  %8183 = vmatprep.mubr.msk.f32.mxu1 %vm9077_vm2, %v9075_v0  ;;  %v6747_v2 = vld [vmem:[%s12589_s3 + $0x3f0] sm:$0xff] }
 0x299   :  { %v7826_v62 = vpop.f32.mrf.mxu1 }
 0x29a   :  { %v1014_v63 = vpop.f32.mrf.mxu0  ;;  %8141 = vmatmul.mubr.msk.f32.gmra.mxu0 %vm500_vm3, %v6746_v58 }
 0x29b   :  { %v1080_v1 = vadd.f32 %v1014_v63, %v10253_v25  ;;  %v1226_v3 = vpop.f32.mrf.mxu1  ;;  %8184 = vmatmul.mubr.msk.f32.gmra.mxu1 %vm500_vm3, %v6774_v18  ;;  %8143 = vmatprep.mubr.msk.f32.mxu0 %vm9077_vm2, %v9075_v0  ;;  %v6775_v25 = vld [vmem:[%s12589_s3 + $0x458] sm:$0xff] }
 0x29c   :  { %v10443_v4 = vadd.f32 %v1226_v3, %v1078_v49  ;;  %v7839_v6 = vpop.f32.mrf.mxu0  ;;  %8186 = vmatprep.mubr.msk.f32.mxu1 %vm9077_vm2, %v9075_v0  ;;  %v6752_v49 = vld [vmem:[%s12589_s3 + $0x418] sm:$0xff]  ;;  %v6754_v3 = vld [vmem:[%s12589_s3 + $0x428] sm:$0xff] }
 0x29d   :  { %v7882_v7 = vpop.f32.mrf.mxu1 }
 0x29e   :  { %v1019_v8 = vpop.f32.mrf.mxu0  ;;  %8144 = vmatmul.mubr.msk.f32.gmra.mxu0 %vm500_vm3, %v6747_v2 }
 0x29f   :  { %v1081_v9 = vadd.f32 %v1019_v8, %v10267_v32  ;;  %v1231_v11 = vpop.f32.mrf.mxu1  ;;  %8187 = vmatmul.mubr.msk.f32.gmra.mxu1 %vm500_vm3, %v6775_v25  ;;  %8146 = vmatprep.mubr.msk.f32.mxu0 %vm9077_vm2, %v9075_v0  ;;  %v6776_v32 = vld [vmem:[%s12589_s3 + $0x460] sm:$0xff] }
 0x2a0   :  { %v10458_v14 = vadd.f32 %v1231_v11, %v1079_v57  ;;  %v7842_v15 = vpop.f32.mrf.mxu0  ;;  %8189 = vmatprep.mubr.msk.f32.mxu1 %vm9077_vm2, %v9075_v0  ;;  %v6753_v57 = vld [vmem:[%s12589_s3 + $0x420] sm:$0xff]  ;;  %v6755_v11 = vld [vmem:[%s12589_s3 + $0x430] sm:$0xff] }
 0x2a1   :  { %v7885_v16 = vpop.f32.mrf.mxu1 }
 0x2a2   :  { %v1024_v17 = vpop.f32.mrf.mxu0  ;;  %8147 = vmatmul.mubr.msk.f32.gmra.mxu0 %vm500_vm3, %v6748_v12 }
 0x2a3   :  { %v1082_v19 = vadd.f32 %v1024_v17, %v10281_v39  ;;  %v1236_v20 = vpop.f32.mrf.mxu1  ;;  %8190 = vmatmul.mubr.msk.f32.gmra.mxu1 %vm500_vm3, %v6776_v32  ;;  %8149 = vmatprep.mubr.msk.f32.mxu0 %vm9077_vm2, %v9075_v0  ;;  %v6777_v39 = vld [vmem:[%s12589_s3 + $0x468] sm:$0xff] }
 0x2a4   :  { %v10473_v22 = vadd.f32 %v1236_v20, %v1080_v1  ;;  %v7845_v24 = vpop.f32.mrf.mxu0  ;;  %8192 = vmatprep.mubr.msk.f32.mxu1 %vm9077_vm2, %v9075_v0  ;;  %v6801_v20 = vld [vmem:[%s12589_s3 + $0x4b0] sm:$0xff] }
 0x2a5   :  { %v7888_v26 = vpop.f32.mrf.mxu1 }
 0x2a6   :  { %v1029_v27 = vpop.f32.mrf.mxu0  ;;  %8150 = vmatmul.mubr.msk.f32.gmra.mxu0 %vm500_vm3, %v6749_v21  ;;  %v3110_v26 = vpop.permute.xlu0 %3109 }
 0x2a7   :  { %v1083_v28 = vadd.f32 %v1029_v27, %v10295_v46  ;;  %v1241_v29 = vpop.f32.mrf.mxu1  ;;  %8193 = vmatmul.mubr.msk.f32.gmra.mxu1 %vm500_vm3, %v6777_v39  ;;  %8152 = vmatprep.mubr.msk.f32.mxu0 %vm9077_vm2, %v9075_v0  ;;  %v6778_v46 = vld [vmem:[%s12589_s3 + $0x470] sm:$0xff] }
 0x2a8   :  { %v10488_v33 = vadd.f32 %v1241_v29, %v1081_v9  ;;  %v7848_v34 = vpop.f32.mrf.mxu0  ;;  %8195 = vmatprep.mubr.msk.f32.mxu1 %vm9077_vm2, %v9075_v0 }
 0x2a9   :  { %v7891_v35 = vpop.f32.mrf.mxu1  ;;  %v3108_v34 = vpop.permute.xlu1 %3107 }
 0x2aa   :  { %v1034_v36 = vpop.f32.mrf.mxu0  ;;  %8153 = vmatmul.mubr.msk.f32.gmra.mxu0 %vm500_vm3, %v6750_v30  ;;  %v6802_v30 = vld [vmem:[%s12589_s3 + $0x4b8] sm:$0xff] }
 0x2ab   :  { %v1084_v37 = vadd.f32 %v1034_v36, %v10309_v53  ;;  %v1246_v38 = vpop.f32.mrf.mxu1  ;;  %8196 = vmatmul.mubr.msk.f32.gmra.mxu1 %vm500_vm3, %v6778_v46  ;;  %8155 = vmatprep.mubr.msk.f32.mxu0 %vm9077_vm2, %v9075_v0  ;;  %v6779_v53 = vld [vmem:[%s12589_s3 + $0x478] sm:$0xff] }
 0x2ac   :  { %v10503_v42 = vadd.f32 %v1246_v38, %v1082_v19  ;;  %v7851_v43 = vpop.f32.mrf.mxu0  ;;  %8198 = vmatprep.mubr.msk.f32.mxu1 %vm9077_vm2, %v9075_v0 }
 0x2ad   :  { %v7894_v44 = vpop.f32.mrf.mxu1  ;;  %v6803_v43 = vld [vmem:[%s12589_s3 + $0x4c0] sm:$0xff] }
 0x2ae   :  { %v1039_v45 = vpop.f32.mrf.mxu0  ;;  %8156 = vmatmul.mubr.msk.f32.gmra.mxu0 %vm500_vm3, %v6751_v40 }
 0x2af   :  { %v1085_v47 = vadd.f32 %v1039_v45, %v10323_v60  ;;  %v1251_v48 = vpop.f32.mrf.mxu1  ;;  %8199 = vmatmul.mubr.msk.f32.gmra.mxu1 %vm500_vm3, %v6779_v53  ;;  %8158 = vmatprep.mubr.msk.f32.mxu0 %vm9077_vm2, %v9075_v0  ;;  %v6780_v60 = vld [vmem:[%s12589_s3 + $0x480] sm:$0xff] }
 0x2b0   :  { %v10518_v50 = vadd.f32 %v1251_v48, %v1083_v28  ;;  %v7854_v52 = vpop.f32.mrf.mxu0  ;;  %8201 = vmatprep.mubr.msk.f32.mxu1 %vm9077_vm2, %v9075_v0  ;;  %v3332_v48 = vpop.permute.xlu0 %3331 }
 0x2b1   :  { %v7897_v54 = vpop.f32.mrf.mxu1 }
 0x2b2   :  { %v1044_v10 = vpop.f32.mrf.mxu0  ;;  %8159 = vmatmul.mubr.msk.f32.gmra.mxu0 %vm500_vm3, %v6752_v49 }
 0x2b3   :  { %v1086_v55 = vadd.f32 %v1044_v10, %v10337_v5  ;;  %v1256_v56 = vpop.f32.mrf.mxu1  ;;  %8202 = vmatmul.mubr.msk.f32.gmra.mxu1 %vm500_vm3, %v6780_v60  ;;  %8161 = vmatprep.mubr.msk.f32.mxu0 %vm9077_vm2, %v9075_v0  ;;  %v6781_v5 = vld [vmem:[%s12589_s3 + $0x488] sm:$0xff] }
 0x2b4   :  { %v10533_v58 = vadd.f32 %v1256_v56, %v1084_v37  ;;  %v7857_v61 = vpop.f32.mrf.mxu0  ;;  %8204 = vmatprep.mubr.msk.f32.mxu1 %vm9077_vm2, %v9075_v0  ;;  %v6804_v60 = vld [vmem:[%s12589_s3 + $0x4c8] sm:$0xff] }
 0x2b5   :  { %v7900_v18 = vpop.f32.mrf.mxu1 }
 0x2b6   :  { %v1049_v62 = vpop.f32.mrf.mxu0  ;;  %8162 = vmatmul.mubr.msk.f32.gmra.mxu0 %vm500_vm3, %v6753_v57  ;;  %v6805_v18 = vld [vmem:[%s12589_s3 + $0x4d0] sm:$0xff] }
 0x2b7   :  { %v1087_v63 = vadd.f32 %v1049_v62, %v10351_v13  ;;  %v1261_v1 = vpop.f32.mrf.mxu1  ;;  %8205 = vmatmul.mubr.msk.f32.gmra.mxu1 %vm500_vm3, %v6781_v5  ;;  %8164 = vmatprep.mubr.msk.f32.mxu0 %vm9077_vm2, %v9075_v0  ;;  %v6782_v13 = vld [vmem:[%s12589_s3 + $0x490] sm:$0xff] }
 0x2b8   :  { %v10548_v2 = vadd.f32 %v1261_v1, %v1085_v47  ;;  %v7860_v6 = vpop.f32.mrf.mxu0  ;;  %8207 = vmatprep.mubr.msk.f32.mxu1 %vm9077_vm2, %v9075_v0  ;;  %v6833_v1 = vld [vmem:[%s12589_s3 + $0x538] sm:$0xff] }
 0x2b9   :  { %v7903_v25 = vpop.f32.mrf.mxu1 }
 0x2ba   :  { %v1054_v7 = vpop.f32.mrf.mxu0  ;;  %8165 = vmatmul.mubr.msk.f32.gmra.mxu0 %vm500_vm3, %v6754_v3  ;;  %v6806_v25 = vld [vmem:[%s12589_s3 + $0x4d8] sm:$0xff] }
 0x2bb   :  { %v1088_v8 = vadd.f32 %v1054_v7, %v10363_v23  ;;  %v1266_v9 = vpop.f32.mrf.mxu1  ;;  %8208 = vmatmul.mubr.msk.f32.gmra.mxu1 %vm500_vm3, %v6782_v13  ;;  %8167 = vmatprep.mubr.msk.f32.mxu0 %vm9077_vm2, %v9075_v0  ;;  %v6783_v23 = vld [vmem:[%s12589_s3 + $0x498] sm:$0xff] }
 0x2bc   :  { %v10563_v12 = vadd.f32 %v1266_v9, %v1086_v55  ;;  %v7863_v15 = vpop.f32.mrf.mxu0  ;;  %8210 = vmatprep.mubr.msk.f32.mxu1 %vm9077_vm2, %v9075_v0  ;;  %v3330_v55 = vpop.permute.xlu1 %3329  ;;  %v6834_v9 = vld [vmem:[%s12589_s3 + $0x540] sm:$0xff] }
 0x2bd   :  { %v7906_v32 = vpop.f32.mrf.mxu1 }
 0x2be   :  { %v1059_v16 = vpop.f32.mrf.mxu0  ;;  %8168 = vmatmul.mubr.msk.f32.gmra.mxu0 %vm500_vm3, %v6755_v11  ;;  %v6807_v32 = vld [vmem:[%s12589_s3 + $0x4e0] sm:$0xff] }
 0x2bf   :  { %v1089_v17 = vadd.f32 %v1059_v16, %v10381_v31  ;;  %v1271_v19 = vpop.f32.mrf.mxu1  ;;  %8211 = vmatmul.mubr.msk.f32.gmra.mxu1 %vm500_vm3, %v6783_v23  ;;  %8223 = vmatprep.mubr.msk.f32.mxu0 %vm9077_vm2, %v9075_v0  ;;  %v6784_v31 = vld [vmem:[%s12589_s3 + $0x4a0] sm:$0xff] }
 0x2c0   :  { %v10578_v21 = vadd.f32 %v1271_v19, %v1087_v63  ;;  %v7866_v24 = vpop.f32.mrf.mxu0  ;;  %8213 = vmatprep.mubr.msk.f32.mxu1 %vm9077_vm2, %v9075_v0 }
 0x2c1   :  { %v7909_v39 = vpop.f32.mrf.mxu1 }
 0x2c2   :  { %v1064_v27 = vpop.f32.mrf.mxu0  ;;  %8224 = vmatmul.mubr.msk.f32.vlgmr.msra.gmra.mxu0 %vm500_vm3, %v6801_v20  ;;  %v6808_v39 = vld [vmem:[%s12589_s3 + $0x4e8] sm:$0xff] }
 0x2c3   :  { %v1090_v28 = vadd.f32 %v1064_v27, %v10395_v41  ;;  %v1276_v29 = vpop.f32.mrf.mxu1  ;;  %8214 = vmatmul.mubr.msk.f32.gmra.mxu1 %vm500_vm3, %v6784_v31  ;;  %8318 = vmatpush3.msra.mxu0 %v3110_v26  ;;  %v6785_v41 = vld [vmem:[%s12589_s3 + $0x4a8] sm:$0xff] }
 0x2c4   :  { %v10591_v46 = vadd.f32 %v1276_v29, %v1088_v8  ;;  %8319 = vmatprep.subr.mxu0 %v9075_v0  ;;  %v7869_v35 = vpop.f32.mrf.mxu0  ;;  %8216 = vmatprep.mubr.msk.f32.mxu1 %vm9077_vm2, %v9075_v0 }
 0x2c5   :  { %v7912_v36 = vpop.f32.mrf.mxu1  ;;  %8320 = vmatpush3.msra.mxu0 %v3108_v34  ;;  %8226 = vmatprep.mubr.msk.f32.mxu0 %vm9077_vm2, %v9075_v0  ;;  %v6809_v35 = vld [vmem:[%s12589_s3 + $0x4f0] sm:$0xff] }
 0x2c6   :  { %v1069_v37 = vpop.f32.mrf.mxu0  ;;  %8227 = vmatmul.mubr.msk.f32.gmra.mxu0 %vm500_vm3, %v6802_v30  ;;  %8415 = vmatprep.subr.mxu0 %v9075_v0 }
 0x2c7   :  { %v1091_v38 = vadd.f32 %v1069_v37, %v10411_v51  ;;  %v1281_v40 = vpop.f32.mrf.mxu1  ;;  %8217 = vmatmul.mubr.msk.f32.gmra.mxu1 %vm500_vm3, %v6785_v41  ;;  %8229 = vmatprep.mubr.msk.f32.mxu0 %vm9077_vm2, %v9075_v0  ;;  %v6831_v51 = vld [vmem:[%s12589_s3 + $0x528] sm:$0xff] }
 0x2c8   :  { %v10610_v53 = vadd.f32 %v1281_v40, %v1089_v17  ;;  %v7872_v44 = vpop.f32.mrf.mxu0  ;;  %8272 = vmatprep.mubr.msk.f32.mxu1 %vm9077_vm2, %v9075_v0 }
 0x2c9   :  { %v7915_v45 = vpop.f32.mrf.mxu1  ;;  %v6810_v44 = vld [vmem:[%s12589_s3 + $0x4f8] sm:$0xff] }
 0x2ca   :  { %v1074_v47 = vpop.f32.mrf.mxu0  ;;  %8230 = vmatmul.mubr.msk.f32.gmra.mxu0 %vm500_vm3, %v6803_v43 }
 0x2cb   :  { %v1092_v49 = vadd.f32 %v1074_v47, %v10428_v59  ;;  %v1286_v52 = vpop.f32.mrf.mxu1  ;;  %8273 = vmatmul.mubr.msk.f32.vlgmr.msra.gmra.mxu1 %vm500_vm3, %v6831_v51  ;;  %8232 = vmatprep.mubr.msk.f32.mxu0 %vm9077_vm2, %v9075_v0  ;;  %v6832_v59 = vld [vmem:[%s12589_s3 + $0x530] sm:$0xff] }
 0x2cc   :  { %v10625_v54 = vadd.f32 %v1286_v52, %v1090_v28  ;;  %8367 = vmatpush3.msra.mxu1 %v3332_v48  ;;  %v7875_v10 = vpop.f32.mrf.mxu0  ;;  %8275 = vmatprep.mubr.msk.f32.mxu1 %vm9077_vm2, %v9075_v0 }
 0x2cd   :  { %8368 = vmatprep.subr.mxu1 %v9075_v0  ;;  %v7918_v56 = vpop.f32.mrf.mxu1 }
 0x2ce   :  { %8369 = vmatpush3.msra.mxu1 %v3330_v55  ;;  %v1448_v57 = vpop.f32.mrf.mxu0  ;;  %8233 = vmatmul.mubr.msk.f32.gmra.mxu0 %vm500_vm3, %v6804_v60  ;;  %v6811_v60 = vld [vmem:[%s12589_s3 + $0x500] sm:$0xff] }
 0x2cf   :  { %v1291_v61 = vpop.f32.mrf.mxu1  ;;  %v1522_v5 = vadd.f32 %v1448_v57, %v10443_v4  ;;  %8276 = vmatmul.mubr.msk.f32.gmra.mxu1 %vm500_vm3, %v6832_v59  ;;  %8235 = vmatprep.mubr.msk.f32.mxu0 %vm9077_vm2, %v9075_v0 }
 0x2d0   :  { %v10641_v62 = vadd.f32 %v1291_v61, %v1091_v38  ;;  %v7931_v63 = vpop.f32.mrf.mxu0  ;;  %8278 = vmatprep.mubr.msk.f32.mxu1 %vm9077_vm2, %v9075_v0  ;;  %8464 = vmatprep.subr.mxu1 %v9075_v0 }
 0x2d1   :  { %v7921_v4 = vpop.f32.mrf.mxu1 }
 0x2d2   :  { %v1453_v3 = vpop.f32.mrf.mxu0  ;;  %8236 = vmatmul.mubr.msk.f32.gmra.mxu0 %vm500_vm3, %v6805_v18 }
 0x2d3   :  { %v1296_v6 = vpop.f32.mrf.mxu1  ;;  %v1523_v13 = vadd.f32 %v1453_v3, %v10458_v14  ;;  %8279 = vmatmul.mubr.msk.f32.gmra.mxu1 %vm500_vm3, %v6833_v1  ;;  %8238 = vmatprep.mubr.msk.f32.mxu0 %vm9077_vm2, %v9075_v0 }
 0x2d4   :  { %v10657_v7 = vadd.f32 %v1296_v6, %v1092_v49  ;;  %v7934_v8 = vpop.f32.mrf.mxu0  ;;  %8281 = vmatprep.mubr.msk.f32.mxu1 %vm9077_vm2, %v9075_v0 }
 0x2d5   :  { %v7924_v14 = vpop.f32.mrf.mxu1 }
 0x2d6   :  { %v1458_v11 = vpop.f32.mrf.mxu0  ;;  %8239 = vmatmul.mubr.msk.f32.gmra.mxu0 %vm500_vm3, %v6806_v25 }
 0x2d7   :  { %v1524_v15 = vadd.f32 %v1458_v11, %v10473_v22  ;;  %v1670_v23 = vpop.f32.mrf.mxu1  ;;  %8282 = vmatmul.mubr.msk.f32.gmra.mxu1 %vm500_vm3, %v6834_v9  ;;  %8241 = vmatprep.mubr.msk.f32.mxu0 %vm9077_vm2, %v9075_v0  ;;  %v6835_v22 = vld [vmem:[%s12589_s3 + $0x548] sm:$0xff] }
 0x2d8   :  { %v10672_v16 = vadd.f32 %v1670_v23, %v1522_v5  ;;  %v7937_v17 = vpop.f32.mrf.mxu0  ;;  %8284 = vmatprep.mubr.msk.f32.mxu1 %vm9077_vm2, %v9075_v0  ;;  %v6812_v5 = vld [vmem:[%s12589_s3 + $0x508] sm:$0xff]  ;;  %v6814_v23 = vld [vmem:[%s12589_s3 + $0x518] sm:$0xff] }
 0x2d9   :  { %v7980_v19 = vpop.f32.mrf.mxu1 }
 0x2da   :  { %v1463_v20 = vpop.f32.mrf.mxu0  ;;  %8242 = vmatmul.mubr.msk.f32.gmra.mxu0 %vm500_vm3, %v6807_v32 }
 0x2db   :  { %v1525_v24 = vadd.f32 %v1463_v20, %v10488_v33  ;;  %v1675_v31 = vpop.f32.mrf.mxu1  ;;  %8285 = vmatmul.mubr.msk.f32.gmra.mxu1 %vm500_vm3, %v6835_v22  ;;  %8244 = vmatprep.mubr.msk.f32.mxu0 %vm9077_vm2, %v9075_v0  ;;  %v6836_v33 = vld [vmem:[%s12589_s3 + $0x550] sm:$0xff] }
 0x2dc   :  { %v10687_v26 = vadd.f32 %v1675_v31, %v1523_v13  ;;  %v7940_v27 = vpop.f32.mrf.mxu0  ;;  %8287 = vmatprep.mubr.msk.f32.mxu1 %vm9077_vm2, %v9075_v0  ;;  %v6813_v13 = vld [vmem:[%s12589_s3 + $0x510] sm:$0xff]  ;;  %v6815_v31 = vld [vmem:[%s12589_s3 + $0x520] sm:$0xff] }
 0x2dd   :  { %v7983_v28 = vpop.f32.mrf.mxu1 }
 0x2de   :  { %v1468_v29 = vpop.f32.mrf.mxu0  ;;  %8245 = vmatmul.mubr.msk.f32.gmra.mxu0 %vm500_vm3, %v6808_v39 }
 0x2df   :  { %v1526_v30 = vadd.f32 %v1468_v29, %v10503_v42  ;;  %v1680_v34 = vpop.f32.mrf.mxu1  ;;  %8288 = vmatmul.mubr.msk.f32.gmra.mxu1 %vm500_vm3, %v6836_v33  ;;  %8247 = vmatprep.mubr.msk.f32.mxu0 %vm9077_vm2, %v9075_v0  ;;  %v6837_v42 = vld [vmem:[%s12589_s3 + $0x558] sm:$0xff] }
 0x2e0   :  { %v10702_v41 = vadd.f32 %v1680_v34, %v1524_v15  ;;  %v7943_v36 = vpop.f32.mrf.mxu0  ;;  %8290 = vmatprep.mubr.msk.f32.mxu1 %vm9077_vm2, %v9075_v0  ;;  %v6861_v34 = vld [vmem:[%s12589_s3 + $0x5a0] sm:$0xff] }
 0x2e1   :  { %v7986_v37 = vpop.f32.mrf.mxu1 }
 0x2e2   :  { %v1473_v38 = vpop.f32.mrf.mxu0  ;;  %8248 = vmatmul.mubr.msk.f32.gmra.mxu0 %vm500_vm3, %v6809_v35  ;;  %v3554_v37 = vpop.permute.xlu0 %3553 }
 0x2e3   :  { %v1527_v40 = vadd.f32 %v1473_v38, %v10518_v50  ;;  %v1685_v43 = vpop.f32.mrf.mxu1  ;;  %8291 = vmatmul.mubr.msk.f32.gmra.mxu1 %vm500_vm3, %v6837_v42  ;;  %8250 = vmatprep.mubr.msk.f32.mxu0 %vm9077_vm2, %v9075_v0  ;;  %v6838_v50 = vld [vmem:[%s12589_s3 + $0x560] sm:$0xff] }
 0x2e4   :  { %v10717_v51 = vadd.f32 %v1685_v43, %v1525_v24  ;;  %v7946_v45 = vpop.f32.mrf.mxu0  ;;  %8293 = vmatprep.mubr.msk.f32.mxu1 %vm9077_vm2, %v9075_v0 }
 0x2e5   :  { %v7989_v47 = vpop.f32.mrf.mxu1  ;;  %v3552_v45 = vpop.permute.xlu1 %3551 }
 0x2e6   :  { %v1478_v48 = vpop.f32.mrf.mxu0  ;;  %8251 = vmatmul.mubr.msk.f32.gmra.mxu0 %vm500_vm3, %v6810_v44  ;;  %v6862_v44 = vld [vmem:[%s12589_s3 + $0x5a8] sm:$0xff] }
 0x2e7   :  { %v1528_v49 = vadd.f32 %v1478_v48, %v10533_v58  ;;  %v1690_v52 = vpop.f32.mrf.mxu1  ;;  %8294 = vmatmul.mubr.msk.f32.gmra.mxu1 %vm500_vm3, %v6838_v50  ;;  %8253 = vmatprep.mubr.msk.f32.mxu0 %vm9077_vm2, %v9075_v0  ;;  %v6839_v58 = vld [vmem:[%s12589_s3 + $0x568] sm:$0xff] }
 0x2e8   :  { %v10732_v10 = vadd.f32 %v1690_v52, %v1526_v30  ;;  %v7949_v59 = vpop.f32.mrf.mxu0  ;;  %8296 = vmatprep.mubr.msk.f32.mxu1 %vm9077_vm2, %v9075_v0 }
 0x2e9   :  { %v7992_v55 = vpop.f32.mrf.mxu1  ;;  %v6863_v59 = vld [vmem:[%s12589_s3 + $0x5b0] sm:$0xff] }
 0x2ea   :  { %v1483_v56 = vpop.f32.mrf.mxu0  ;;  %8254 = vmatmul.mubr.msk.f32.gmra.mxu0 %vm500_vm3, %v6811_v60 }
 0x2eb   :  { %v1529_v57 = vadd.f32 %v1483_v56, %v10548_v2  ;;  %v1695_v61 = vpop.f32.mrf.mxu1  ;;  %8297 = vmatmul.mubr.msk.f32.gmra.mxu1 %vm500_vm3, %v6839_v58  ;;  %8256 = vmatprep.mubr.msk.f32.mxu0 %vm9077_vm2, %v9075_v0  ;;  %v6840_v2 = vld [vmem:[%s12589_s3 + $0x570] sm:$0xff] }
 0x2ec   :  { %v10747_v18 = vadd.f32 %v1695_v61, %v1527_v40  ;;  %v7952_v63 = vpop.f32.mrf.mxu0  ;;  %8299 = vmatprep.mubr.msk.f32.mxu1 %vm9077_vm2, %v9075_v0  ;;  %v3776_v61 = vpop.permute.xlu0 %3775 }
 0x2ed   :  { %v7995_v1 = vpop.f32.mrf.mxu1 }
 0x2ee   :  { %v1488_v4 = vpop.f32.mrf.mxu0  ;;  %8257 = vmatmul.mubr.msk.f32.gmra.mxu0 %vm500_vm3, %v6812_v5 }
 0x2ef   :  { %v1530_v3 = vadd.f32 %v1488_v4, %v10563_v12  ;;  %v1700_v6 = vpop.f32.mrf.mxu1  ;;  %8300 = vmatmul.mubr.msk.f32.gmra.mxu1 %vm500_vm3, %v6840_v2  ;;  %8259 = vmatprep.mubr.msk.f32.mxu0 %vm9077_vm2, %v9075_v0  ;;  %v6841_v12 = vld [vmem:[%s12589_s3 + $0x578] sm:$0xff] }
 0x2f0   :  { %v10762_v25 = vadd.f32 %v1700_v6, %v1528_v49  ;;  %v7955_v8 = vpop.f32.mrf.mxu0  ;;  %8302 = vmatprep.mubr.msk.f32.mxu1 %vm9077_vm2, %v9075_v0  ;;  %v6864_v2 = vld [vmem:[%s12589_s3 + $0x5b8] sm:$0xff] }
 0x2f1   :  { %v7998_v9 = vpop.f32.mrf.mxu1 }
 0x2f2   :  { %v1493_v14 = vpop.f32.mrf.mxu0  ;;  %8260 = vmatmul.mubr.msk.f32.gmra.mxu0 %vm500_vm3, %v6813_v13  ;;  %v6865_v9 = vld [vmem:[%s12589_s3 + $0x5c0] sm:$0xff] }
 0x2f3   :  { %v1531_v11 = vadd.f32 %v1493_v14, %v10578_v21  ;;  %v1705_v15 = vpop.f32.mrf.mxu1  ;;  %8303 = vmatmul.mubr.msk.f32.gmra.mxu1 %vm500_vm3, %v6841_v12  ;;  %8262 = vmatprep.mubr.msk.f32.mxu0 %vm9077_vm2, %v9075_v0  ;;  %v6842_v21 = vld [vmem:[%s12589_s3 + $0x580] sm:$0xff] }
 0x2f4   :  { %v10777_v32 = vadd.f32 %v1705_v15, %v1529_v57  ;;  %v7958_v17 = vpop.f32.mrf.mxu0  ;;  %8305 = vmatprep.mubr.msk.f32.mxu1 %vm9077_vm2, %v9075_v0  ;;  %v6893_v15 = vld [vmem:[%s12589_s3 + $0x628] sm:$0xff] }
 0x2f5   :  { %v8001_v22 = vpop.f32.mrf.mxu1 }
 0x2f6   :  { %v1498_v19 = vpop.f32.mrf.mxu0  ;;  %8263 = vmatmul.mubr.msk.f32.gmra.mxu0 %vm500_vm3, %v6814_v23  ;;  %v6866_v22 = vld [vmem:[%s12589_s3 + $0x5c8] sm:$0xff] }
 0x2f7   :  { %v1532_v20 = vadd.f32 %v1498_v19, %v10591_v46  ;;  %v1710_v24 = vpop.f32.mrf.mxu1  ;;  %8306 = vmatmul.mubr.msk.f32.gmra.mxu1 %vm500_vm3, %v6842_v21  ;;  %8265 = vmatprep.mubr.msk.f32.mxu0 %vm9077_vm2, %v9075_v0  ;;  %v6843_v46 = vld [vmem:[%s12589_s3 + $0x588] sm:$0xff] }
 0x2f8   :  { %v10792_v39 = vadd.f32 %v1710_v24, %v1530_v3  ;;  %v7961_v27 = vpop.f32.mrf.mxu0  ;;  %8308 = vmatprep.mubr.msk.f32.mxu1 %vm9077_vm2, %v9075_v0  ;;  %v3774_v3 = vpop.permute.xlu1 %3773  ;;  %v6894_v24 = vld [vmem:[%s12589_s3 + $0x630] sm:$0xff] }
 0x2f9   :  { %v8004_v33 = vpop.f32.mrf.mxu1 }
 0x2fa   :  { %v1503_v28 = vpop.f32.mrf.mxu0  ;;  %8266 = vmatmul.mubr.msk.f32.gmra.mxu0 %vm500_vm3, %v6815_v31  ;;  %v6867_v33 = vld [vmem:[%s12589_s3 + $0x5d0] sm:$0xff] }
 0x2fb   :  { %v1533_v29 = vadd.f32 %v1503_v28, %v10610_v53  ;;  %v1715_v30 = vpop.f32.mrf.mxu1  ;;  %8309 = vmatmul.mubr.msk.f32.gmra.mxu1 %vm500_vm3, %v6843_v46  ;;  %8321 = vmatprep.mubr.msk.f32.mxu0 %vm9077_vm2, %v9075_v0  ;;  %v6844_v53 = vld [vmem:[%s12589_s3 + $0x590] sm:$0xff] }
 0x2fc   :  { %v10807_v35 = vadd.f32 %v1715_v30, %v1531_v11  ;;  %v7964_v36 = vpop.f32.mrf.mxu0  ;;  %8311 = vmatprep.mubr.msk.f32.mxu1 %vm9077_vm2, %v9075_v0 }
 0x2fd   :  { %v8007_v42 = vpop.f32.mrf.mxu1 }
 0x2fe   :  { %v1508_v38 = vpop.f32.mrf.mxu0  ;;  %8322 = vmatmul.mubr.msk.f32.vlgmr.msra.gmra.mxu0 %vm500_vm3, %v6861_v34  ;;  %v6868_v42 = vld [vmem:[%s12589_s3 + $0x5d8] sm:$0xff] }
 0x2ff   :  { %v1534_v40 = vadd.f32 %v1508_v38, %v10625_v54  ;;  %v1720_v43 = vpop.f32.mrf.mxu1  ;;  %8312 = vmatmul.mubr.msk.f32.gmra.mxu1 %vm500_vm3, %v6844_v53  ;;  %8416 = vmatpush3.msra.mxu0 %v3554_v37  ;;  %v6845_v54 = vld [vmem:[%s12589_s3 + $0x598] sm:$0xff] }
 0x300   :  { %v10820_v50 = vadd.f32 %v1720_v43, %v1532_v20  ;;  %8417 = vmatprep.subr.mxu0 %v9075_v0  ;;  %v7967_v47 = vpop.f32.mrf.mxu0  ;;  %8314 = vmatprep.mubr.msk.f32.mxu1 %vm9077_vm2, %v9075_v0 }
 0x301   :  { %v8010_v48 = vpop.f32.mrf.mxu1  ;;  %8418 = vmatpush3.msra.mxu0 %v3552_v45  ;;  %8324 = vmatprep.mubr.msk.f32.mxu0 %vm9077_vm2, %v9075_v0  ;;  %v6869_v47 = vld [vmem:[%s12589_s3 + $0x5e0] sm:$0xff] }
 0x302   :  { %v1513_v49 = vpop.f32.mrf.mxu0  ;;  %8325 = vmatmul.mubr.msk.f32.gmra.mxu0 %vm500_vm3, %v6862_v44  ;;  %8513 = vmatprep.subr.mxu0 %v9075_v0 }
 0x303   :  { %v1535_v52 = vadd.f32 %v1513_v49, %v10641_v62  ;;  %v1725_v60 = vpop.f32.mrf.mxu1  ;;  %8315 = vmatmul.mubr.msk.f32.gmra.mxu1 %vm500_vm3, %v6845_v54  ;;  %8327 = vmatprep.mubr.msk.f32.mxu0 %vm9077_vm2, %v9075_v0  ;;  %v6891_v62 = vld [vmem:[%s12589_s3 + $0x618] sm:$0xff] }
 0x304   :  { %v10839_v58 = vadd.f32 %v1725_v60, %v1533_v29  ;;  %v7970_v55 = vpop.f32.mrf.mxu0  ;;  %8370 = vmatprep.mubr.msk.f32.mxu1 %vm9077_vm2, %v9075_v0 }
 0x305   :  { %v8013_v56 = vpop.f32.mrf.mxu1  ;;  %v6870_v55 = vld [vmem:[%s12589_s3 + $0x5e8] sm:$0xff] }
 0x306   :  { %v1518_v57 = vpop.f32.mrf.mxu0  ;;  %8328 = vmatmul.mubr.msk.f32.gmra.mxu0 %vm500_vm3, %v6863_v59 }
 0x307   :  { %v1536_v5 = vadd.f32 %v1518_v57, %v10657_v7  ;;  %v1730_v63 = vpop.f32.mrf.mxu1  ;;  %8371 = vmatmul.mubr.msk.f32.vlgmr.msra.gmra.mxu1 %vm500_vm3, %v6891_v62  ;;  %8330 = vmatprep.mubr.msk.f32.mxu0 %vm9077_vm2, %v9075_v0  ;;  %v6892_v7 = vld [vmem:[%s12589_s3 + $0x620] sm:$0xff] }
 0x308   :  { %v10854_v1 = vadd.f32 %v1730_v63, %v1534_v40  ;;  %8465 = vmatpush3.msra.mxu1 %v3776_v61  ;;  %v7973_v4 = vpop.f32.mrf.mxu0  ;;  %8373 = vmatprep.mubr.msk.f32.mxu1 %vm9077_vm2, %v9075_v0 }
 0x309   :  { %8466 = vmatprep.subr.mxu1 %v9075_v0  ;;  %v8016_v6 = vpop.f32.mrf.mxu1 }
 0x30a   :  { %8467 = vmatpush3.msra.mxu1 %v3774_v3  ;;  %v1892_v13 = vpop.f32.mrf.mxu0  ;;  %8331 = vmatmul.mubr.msk.f32.gmra.mxu0 %vm500_vm3, %v6864_v2  ;;  %v6871_v2 = vld [vmem:[%s12589_s3 + $0x5f0] sm:$0xff] }
 0x30b   :  { %v1735_v8 = vpop.f32.mrf.mxu1  ;;  %v1966_v12 = vadd.f32 %v1892_v13, %v10672_v16  ;;  %8374 = vmatmul.mubr.msk.f32.gmra.mxu1 %vm500_vm3, %v6892_v7  ;;  %8333 = vmatprep.mubr.msk.f32.mxu0 %vm9077_vm2, %v9075_v0 }
 0x30c   :  { %v10870_v14 = vadd.f32 %v1735_v8, %v1535_v52  ;;  %v8029_v11 = vpop.f32.mrf.mxu0  ;;  %8376 = vmatprep.mubr.msk.f32.mxu1 %vm9077_vm2, %v9075_v0  ;;  %8562 = vmatprep.subr.mxu1 %v9075_v0 }
 0x30d   :  { %v8019_v16 = vpop.f32.mrf.mxu1 }
 0x30e   :  { %v1897_v23 = vpop.f32.mrf.mxu0  ;;  %8334 = vmatmul.mubr.msk.f32.gmra.mxu0 %vm500_vm3, %v6865_v9 }
 0x30f   :  { %v1740_v17 = vpop.f32.mrf.mxu1  ;;  %v1967_v21 = vadd.f32 %v1897_v23, %v10687_v26  ;;  %8377 = vmatmul.mubr.msk.f32.gmra.mxu1 %vm500_vm3, %v6893_v15  ;;  %8336 = vmatprep.mubr.msk.f32.mxu0 %vm9077_vm2, %v9075_v0 }
 0x310   :  { %v10886_v19 = vadd.f32 %v1740_v17, %v1536_v5  ;;  %v8032_v20 = vpop.f32.mrf.mxu0  ;;  %8379 = vmatprep.mubr.msk.f32.mxu1 %vm9077_vm2, %v9075_v0 }
 0x311   :  { %v8022_v26 = vpop.f32.mrf.mxu1 }
 0x312   :  { %v1902_v31 = vpop.f32.mrf.mxu0  ;;  %8337 = vmatmul.mubr.msk.f32.gmra.mxu0 %vm500_vm3, %v6866_v22 }
 0x313   :  { %v1968_v27 = vadd.f32 %v1902_v31, %v10702_v41  ;;  %v2114_v46 = vpop.f32.mrf.mxu1  ;;  %8380 = vmatmul.mubr.msk.f32.gmra.mxu1 %vm500_vm3, %v6894_v24  ;;  %8339 = vmatprep.mubr.msk.f32.mxu0 %vm9077_vm2, %v9075_v0  ;;  %v6895_v41 = vld [vmem:[%s12589_s3 + $0x638] sm:$0xff] }
 0x314   :  { %v10901_v28 = vadd.f32 %v2114_v46, %v1966_v12  ;;  %v8035_v29 = vpop.f32.mrf.mxu0  ;;  %8382 = vmatprep.mubr.msk.f32.mxu1 %vm9077_vm2, %v9075_v0  ;;  %v6872_v12 = vld [vmem:[%s12589_s3 + $0x5f8] sm:$0xff]  ;;  %v6874_v46 = vld [vmem:[%s12589_s3 + $0x608] sm:$0xff] }
 0x315   :  { %v8078_v30 = vpop.f32.mrf.mxu1 }
 0x316   :  { %v1907_v34 = vpop.f32.mrf.mxu0  ;;  %8340 = vmatmul.mubr.msk.f32.gmra.mxu0 %vm500_vm3, %v6867_v33 }
 0x317   :  { %v1969_v36 = vadd.f32 %v1907_v34, %v10717_v51  ;;  %v2119_v53 = vpop.f32.mrf.mxu1  ;;  %8383 = vmatmul.mubr.msk.f32.gmra.mxu1 %vm500_vm3, %v6895_v41  ;;  %8342 = vmatprep.mubr.msk.f32.mxu0 %vm9077_vm2, %v9075_v0  ;;  %v6896_v51 = vld [vmem:[%s12589_s3 + $0x640] sm:$0xff] }
 0x318   :  { %v10916_v37 = vadd.f32 %v2119_v53, %v1967_v21  ;;  %v8038_v38 = vpop.f32.mrf.mxu0  ;;  %8385 = vmatprep.mubr.msk.f32.mxu1 %vm9077_vm2, %v9075_v0  ;;  %v6873_v21 = vld [vmem:[%s12589_s3 + $0x600] sm:$0xff]  ;;  %v6875_v53 = vld [vmem:[%s12589_s3 + $0x610] sm:$0xff] }
 0x319   :  { %v8081_v40 = vpop.f32.mrf.mxu1 }
 0x31a   :  { %v1912_v43 = vpop.f32.mrf.mxu0  ;;  %8343 = vmatmul.mubr.msk.f32.gmra.mxu0 %vm500_vm3, %v6868_v42 }
 0x31b   :  { %v1970_v44 = vadd.f32 %v1912_v43, %v10732_v10  ;;  %v2124_v45 = vpop.f32.mrf.mxu1  ;;  %8386 = vmatmul.mubr.msk.f32.gmra.mxu1 %vm500_vm3, %v6896_v51  ;;  %8345 = vmatprep.mubr.msk.f32.mxu0 %vm9077_vm2, %v9075_v0  ;;  %v6897_v10 = vld [vmem:[%s12589_s3 + $0x648] sm:$0xff] }
 0x31c   :  { %v10931_v54 = vadd.f32 %v2124_v45, %v1968_v27  ;;  %v8041_v48 = vpop.f32.mrf.mxu0  ;;  %8388 = vmatprep.mubr.msk.f32.mxu1 %vm9077_vm2, %v9075_v0  ;;  %v6921_v45 = vld [vmem:[%s12589_s3 + $0x690] sm:$0xff] }
 0x31d   :  { %v8084_v49 = vpop.f32.mrf.mxu1 }
 0x31e   :  { %v1917_v52 = vpop.f32.mrf.mxu0  ;;  %8346 = vmatmul.mubr.msk.f32.gmra.mxu0 %vm500_vm3, %v6869_v47  ;;  %v3998_v49 = vpop.permute.xlu0 %3997 }
 0x31f   :  { %v1971_v60 = vadd.f32 %v1917_v52, %v10747_v18  ;;  %v2129_v59 = vpop.f32.mrf.mxu1  ;;  %8389 = vmatmul.mubr.msk.f32.gmra.mxu1 %vm500_vm3, %v6897_v10  ;;  %8348 = vmatprep.mubr.msk.f32.mxu0 %vm9077_vm2, %v9075_v0  ;;  %v6898_v18 = vld [vmem:[%s12589_s3 + $0x650] sm:$0xff] }
 0x320   :  { %v10946_v62 = vadd.f32 %v2129_v59, %v1969_v36  ;;  %v8044_v56 = vpop.f32.mrf.mxu0  ;;  %8391 = vmatprep.mubr.msk.f32.mxu1 %vm9077_vm2, %v9075_v0 }
 0x321   :  { %v8087_v57 = vpop.f32.mrf.mxu1  ;;  %v3996_v56 = vpop.permute.xlu1 %3995 }
 0x322   :  { %v1922_v61 = vpop.f32.mrf.mxu0  ;;  %8349 = vmatmul.mubr.msk.f32.gmra.mxu0 %vm500_vm3, %v6870_v55  ;;  %v6922_v55 = vld [vmem:[%s12589_s3 + $0x698] sm:$0xff] }
 0x323   :  { %v1972_v5 = vadd.f32 %v1922_v61, %v10762_v25  ;;  %v2134_v63 = vpop.f32.mrf.mxu1  ;;  %8392 = vmatmul.mubr.msk.f32.gmra.mxu1 %vm500_vm3, %v6898_v18  ;;  %8351 = vmatprep.mubr.msk.f32.mxu0 %vm9077_vm2, %v9075_v0  ;;  %v6899_v25 = vld [vmem:[%s12589_s3 + $0x658] sm:$0xff] }
 0x324   :  { %v10961_v4 = vadd.f32 %v2134_v63, %v1970_v44  ;;  %v8047_v7 = vpop.f32.mrf.mxu0  ;;  %8394 = vmatprep.mubr.msk.f32.mxu1 %vm9077_vm2, %v9075_v0 }
 0x325   :  { %v8090_v3 = vpop.f32.mrf.mxu1  ;;  %v6923_v7 = vld [vmem:[%s12589_s3 + $0x6a0] sm:$0xff] }
 0x326   :  { %v1927_v6 = vpop.f32.mrf.mxu0  ;;  %8352 = vmatmul.mubr.msk.f32.gmra.mxu0 %vm500_vm3, %v6871_v2 }
 0x327   :  { %v1973_v13 = vadd.f32 %v1927_v6, %v10777_v32  ;;  %v2139_v8 = vpop.f32.mrf.mxu1  ;;  %8395 = vmatmul.mubr.msk.f32.gmra.mxu1 %vm500_vm3, %v6899_v25  ;;  %8354 = vmatprep.mubr.msk.f32.mxu0 %vm9077_vm2, %v9075_v0  ;;  %v6900_v32 = vld [vmem:[%s12589_s3 + $0x660] sm:$0xff] }
 0x328   :  { %v10976_v9 = vadd.f32 %v2139_v8, %v1971_v60  ;;  %v8050_v11 = vpop.f32.mrf.mxu0  ;;  %8397 = vmatprep.mubr.msk.f32.mxu1 %vm9077_vm2, %v9075_v0  ;;  %v4220_v8 = vpop.permute.xlu0 %4219 }
 0x329   :  { %v8093_v15 = vpop.f32.mrf.mxu1 }
 0x32a   :  { %v1932_v16 = vpop.f32.mrf.mxu0  ;;  %8355 = vmatmul.mubr.msk.f32.gmra.mxu0 %vm500_vm3, %v6872_v12 }
 0x32b   :  { %v1974_v23 = vadd.f32 %v1932_v16, %v10792_v39  ;;  %v2144_v17 = vpop.f32.mrf.mxu1  ;;  %8398 = vmatmul.mubr.msk.f32.gmra.mxu1 %vm500_vm3, %v6900_v32  ;;  %8357 = vmatprep.mubr.msk.f32.mxu0 %vm9077_vm2, %v9075_v0  ;;  %v6901_v39 = vld [vmem:[%s12589_s3 + $0x668] sm:$0xff] }
 0x32c   :  { %v10991_v22 = vadd.f32 %v2144_v17, %v1972_v5  ;;  %v8053_v20 = vpop.f32.mrf.mxu0  ;;  %8400 = vmatprep.mubr.msk.f32.mxu1 %vm9077_vm2, %v9075_v0  ;;  %v6924_v32 = vld [vmem:[%s12589_s3 + $0x6a8] sm:$0xff] }
 0x32d   :  { %v8096_v24 = vpop.f32.mrf.mxu1 }
 0x32e   :  { %v1937_v26 = vpop.f32.mrf.mxu0  ;;  %8358 = vmatmul.mubr.msk.f32.gmra.mxu0 %vm500_vm3, %v6873_v21  ;;  %v6925_v24 = vld [vmem:[%s12589_s3 + $0x6b0] sm:$0xff] }
 0x32f   :  { %v1975_v31 = vadd.f32 %v1937_v26, %v10807_v35  ;;  %v2149_v27 = vpop.f32.mrf.mxu1  ;;  %8401 = vmatmul.mubr.msk.f32.gmra.mxu1 %vm500_vm3, %v6901_v39  ;;  %8360 = vmatprep.mubr.msk.f32.mxu0 %vm9077_vm2, %v9075_v0  ;;  %v6902_v35 = vld [vmem:[%s12589_s3 + $0x670] sm:$0xff] }
 0x330   :  { %v11006_v33 = vadd.f32 %v2149_v27, %v1973_v13  ;;  %v8056_v29 = vpop.f32.mrf.mxu0  ;;  %8403 = vmatprep.mubr.msk.f32.mxu1 %vm9077_vm2, %v9075_v0  ;;  %v6953_v27 = vld [vmem:[%s12589_s3 + $0x718] sm:$0xff] }
 0x331   :  { %v8099_v41 = vpop.f32.mrf.mxu1 }
 0x332   :  { %v1942_v30 = vpop.f32.mrf.mxu0  ;;  %8361 = vmatmul.mubr.msk.f32.gmra.mxu0 %vm500_vm3, %v6874_v46  ;;  %v6926_v41 = vld [vmem:[%s12589_s3 + $0x6b8] sm:$0xff] }
 0x333   :  { %v1976_v34 = vadd.f32 %v1942_v30, %v10820_v50  ;;  %v2154_v36 = vpop.f32.mrf.mxu1  ;;  %8404 = vmatmul.mubr.msk.f32.gmra.mxu1 %vm500_vm3, %v6902_v35  ;;  %8363 = vmatprep.mubr.msk.f32.mxu0 %vm9077_vm2, %v9075_v0  ;;  %v6903_v50 = vld [vmem:[%s12589_s3 + $0x678] sm:$0xff] }
 0x334   :  { %v11021_v42 = vadd.f32 %v2154_v36, %v1974_v23  ;;  %v8059_v38 = vpop.f32.mrf.mxu0  ;;  %8406 = vmatprep.mubr.msk.f32.mxu1 %vm9077_vm2, %v9075_v0  ;;  %v4218_v23 = vpop.permute.xlu1 %4217  ;;  %v6954_v36 = vld [vmem:[%s12589_s3 + $0x720] sm:$0xff] }
 0x335   :  { %v8102_v51 = vpop.f32.mrf.mxu1 }
 0x336   :  { %v1947_v40 = vpop.f32.mrf.mxu0  ;;  %8364 = vmatmul.mubr.msk.f32.gmra.mxu0 %vm500_vm3, %v6875_v53  ;;  %v6927_v51 = vld [vmem:[%s12589_s3 + $0x6c0] sm:$0xff] }
 0x337   :  { %v1977_v43 = vadd.f32 %v1947_v40, %v10839_v58  ;;  %v2159_v44 = vpop.f32.mrf.mxu1  ;;  %8407 = vmatmul.mubr.msk.f32.gmra.mxu1 %vm500_vm3, %v6903_v50  ;;  %8419 = vmatprep.mubr.msk.f32.mxu0 %vm9077_vm2, %v9075_v0  ;;  %v6904_v58 = vld [vmem:[%s12589_s3 + $0x680] sm:$0xff] }
 0x338   :  { %v11036_v47 = vadd.f32 %v2159_v44, %v1975_v31  ;;  %v8062_v48 = vpop.f32.mrf.mxu0  ;;  %8409 = vmatprep.mubr.msk.f32.mxu1 %vm9077_vm2, %v9075_v0 }
 0x339   :  { %v8105_v10 = vpop.f32.mrf.mxu1 }
 0x33a   :  { %v1952_v52 = vpop.f32.mrf.mxu0  ;;  %8420 = vmatmul.mubr.msk.f32.vlgmr.msra.gmra.mxu0 %vm500_vm3, %v6921_v45  ;;  %v6928_v10 = vld [vmem:[%s12589_s3 + $0x6c8] sm:$0xff] }
 0x33b   :  { %v1978_v60 = vadd.f32 %v1952_v52, %v10854_v1  ;;  %v2164_v59 = vpop.f32.mrf.mxu1  ;;  %8410 = vmatmul.mubr.msk.f32.gmra.mxu1 %vm500_vm3, %v6904_v58  ;;  %8514 = vmatpush3.msra.mxu0 %v3998_v49  ;;  %v6905_v1 = vld [vmem:[%s12589_s3 + $0x688] sm:$0xff] }
 0x33c   :  { %v11049_v18 = vadd.f32 %v2164_v59, %v1976_v34  ;;  %8515 = vmatprep.subr.mxu0 %v9075_v0  ;;  %v8065_v57 = vpop.f32.mrf.mxu0  ;;  %8412 = vmatprep.mubr.msk.f32.mxu1 %vm9077_vm2, %v9075_v0 }
 0x33d   :  { %v8108_v61 = vpop.f32.mrf.mxu1  ;;  %8516 = vmatpush3.msra.mxu0 %v3996_v56  ;;  %8422 = vmatprep.mubr.msk.f32.mxu0 %vm9077_vm2, %v9075_v0  ;;  %v6929_v57 = vld [vmem:[%s12589_s3 + $0x6d0] sm:$0xff] }
 0x33e   :  { %v1957_v5 = vpop.f32.mrf.mxu0  ;;  %8423 = vmatmul.mubr.msk.f32.gmra.mxu0 %vm500_vm3, %v6922_v55  ;;  %8611 = vmatprep.subr.mxu0 %v9075_v0 }
 0x33f   :  { %v1979_v63 = vadd.f32 %v1957_v5, %v10870_v14  ;;  %v2169_v2 = vpop.f32.mrf.mxu1  ;;  %8413 = vmatmul.mubr.msk.f32.gmra.mxu1 %vm500_vm3, %v6905_v1  ;;  %8425 = vmatprep.mubr.msk.f32.mxu0 %vm9077_vm2, %v9075_v0  ;;  %v6951_v14 = vld [vmem:[%s12589_s3 + $0x708] sm:$0xff] }
 0x340   :  { %v11068_v25 = vadd.f32 %v2169_v2, %v1977_v43  ;;  %v8068_v3 = vpop.f32.mrf.mxu0  ;;  %8468 = vmatprep.mubr.msk.f32.mxu1 %vm9077_vm2, %v9075_v0 }
 0x341   :  { %v8111_v6 = vpop.f32.mrf.mxu1  ;;  %v6930_v3 = vld [vmem:[%s12589_s3 + $0x6d8] sm:$0xff] }
 0x342   :  { %v1962_v13 = vpop.f32.mrf.mxu0  ;;  %8426 = vmatmul.mubr.msk.f32.gmra.mxu0 %vm500_vm3, %v6923_v7 }
 0x343   :  { %v1980_v12 = vadd.f32 %v1962_v13, %v10886_v19  ;;  %v2174_v11 = vpop.f32.mrf.mxu1  ;;  %8469 = vmatmul.mubr.msk.f32.vlgmr.msra.gmra.mxu1 %vm500_vm3, %v6951_v14  ;;  %8428 = vmatprep.mubr.msk.f32.mxu0 %vm9077_vm2, %v9075_v0  ;;  %v6952_v19 = vld [vmem:[%s12589_s3 + $0x710] sm:$0xff] }
 0x344   :  { %v11083_v15 = vadd.f32 %v2174_v11, %v1978_v60  ;;  %8563 = vmatpush3.msra.mxu1 %v4220_v8  ;;  %v8071_v16 = vpop.f32.mrf.mxu0  ;;  %8471 = vmatprep.mubr.msk.f32.mxu1 %vm9077_vm2, %v9075_v0 }
 0x345   :  { %8564 = vmatprep.subr.mxu1 %v9075_v0  ;;  %v8114_v17 = vpop.f32.mrf.mxu1 }
 0x346   :  { %8565 = vmatpush3.msra.mxu1 %v4218_v23  ;;  %v2336_v21 = vpop.f32.mrf.mxu0  ;;  %8429 = vmatmul.mubr.msk.f32.gmra.mxu0 %vm500_vm3, %v6924_v32  ;;  %v6931_v32 = vld [vmem:[%s12589_s3 + $0x6e0] sm:$0xff] }
 0x347   :  { %v2179_v20 = vpop.f32.mrf.mxu1  ;;  %v2410_v39 = vadd.f32 %v2336_v21, %v10901_v28  ;;  %8472 = vmatmul.mubr.msk.f32.gmra.mxu1 %vm500_vm3, %v6952_v19  ;;  %8431 = vmatprep.mubr.msk.f32.mxu0 %vm9077_vm2, %v9075_v0 }
 0x348   :  { %v11099_v26 = vadd.f32 %v2179_v20, %v1979_v63  ;;  %v8127_v31 = vpop.f32.mrf.mxu0  ;;  %8474 = vmatprep.mubr.msk.f32.mxu1 %vm9077_vm2, %v9075_v0  ;;  %8660 = vmatprep.subr.mxu1 %v9075_v0 }
 0x349   :  { %v8117_v28 = vpop.f32.mrf.mxu1 }
 0x34a   :  { %v2341_v46 = vpop.f32.mrf.mxu0  ;;  %8432 = vmatmul.mubr.msk.f32.gmra.mxu0 %vm500_vm3, %v6925_v24 }
 0x34b   :  { %v2184_v29 = vpop.f32.mrf.mxu1  ;;  %v2411_v35 = vadd.f32 %v2341_v46, %v10916_v37  ;;  %8475 = vmatmul.mubr.msk.f32.gmra.mxu1 %vm500_vm3, %v6953_v27  ;;  %8434 = vmatprep.mubr.msk.f32.mxu0 %vm9077_vm2, %v9075_v0 }
 0x34c   :  { %v11115_v30 = vadd.f32 %v2184_v29, %v1980_v12  ;;  %v8130_v34 = vpop.f32.mrf.mxu0  ;;  %8477 = vmatprep.mubr.msk.f32.mxu1 %vm9077_vm2, %v9075_v0 }
 0x34d   :  { %v8120_v37 = vpop.f32.mrf.mxu1 }
 0x34e   :  { %v2346_v53 = vpop.f32.mrf.mxu0  ;;  %8435 = vmatmul.mubr.msk.f32.gmra.mxu0 %vm500_vm3, %v6926_v41 }
 0x34f   :  { %v2412_v38 = vadd.f32 %v2346_v53, %v10931_v54  ;;  %v2558_v50 = vpop.f32.mrf.mxu1  ;;  %8478 = vmatmul.mubr.msk.f32.gmra.mxu1 %vm500_vm3, %v6954_v36  ;;  %8437 = vmatprep.mubr.msk.f32.mxu0 %vm9077_vm2, %v9075_v0  ;;  %v6955_v54 = vld [vmem:[%s12589_s3 + $0x728] sm:$0xff] }
 0x350   :  { %v11130_v40 = vadd.f32 %v2558_v50, %v2410_v39  ;;  %v8133_v43 = vpop.f32.mrf.mxu0  ;;  %8480 = vmatprep.mubr.msk.f32.mxu1 %vm9077_vm2, %v9075_v0  ;;  %v6932_v39 = vld [vmem:[%s12589_s3 + $0x6e8] sm:$0xff]  ;;  %v6934_v50 = vld [vmem:[%s12589_s3 + $0x6f8] sm:$0xff] }
 0x351   :  { %v8176_v44 = vpop.f32.mrf.mxu1 }
 0x352   :  { %v2351_v45 = vpop.f32.mrf.mxu0  ;;  %8438 = vmatmul.mubr.msk.f32.gmra.mxu0 %vm500_vm3, %v6927_v51 }
 0x353   :  { %v2413_v48 = vadd.f32 %v2351_v45, %v10946_v62  ;;  %v2563_v58 = vpop.f32.mrf.mxu1  ;;  %8481 = vmatmul.mubr.msk.f32.gmra.mxu1 %vm500_vm3, %v6955_v54  ;;  %8440 = vmatprep.mubr.msk.f32.mxu0 %vm9077_vm2, %v9075_v0  ;;  %v6956_v62 = vld [vmem:[%s12589_s3 + $0x730] sm:$0xff] }
 0x354   :  { %v11145_v49 = vadd.f32 %v2563_v58, %v2411_v35  ;;  %v8136_v52 = vpop.f32.mrf.mxu0  ;;  %8483 = vmatprep.mubr.msk.f32.mxu1 %vm9077_vm2, %v9075_v0  ;;  %v6933_v35 = vld [vmem:[%s12589_s3 + $0x6f0] sm:$0xff]  ;;  %v6935_v58 = vld [vmem:[%s12589_s3 + $0x700] sm:$0xff] }
 0x355   :  { %v8179_v60 = vpop.f32.mrf.mxu1 }
 0x356   :  { %v2356_v59 = vpop.f32.mrf.mxu0  ;;  %8441 = vmatmul.mubr.msk.f32.gmra.mxu0 %vm500_vm3, %v6928_v10 }
 0x357   :  { %v2414_v55 = vadd.f32 %v2356_v59, %v10961_v4  ;;  %v2568_v56 = vpop.f32.mrf.mxu1  ;;  %8484 = vmatmul.mubr.msk.f32.gmra.mxu1 %vm500_vm3, %v6956_v62  ;;  %8443 = vmatprep.mubr.msk.f32.mxu0 %vm9077_vm2, %v9075_v0  ;;  %v6957_v4 = vld [vmem:[%s12589_s3 + $0x738] sm:$0xff] }
 0x358   :  { %v11160_v1 = vadd.f32 %v2568_v56, %v2412_v38  ;;  %v8139_v61 = vpop.f32.mrf.mxu0  ;;  %8486 = vmatprep.mubr.msk.f32.mxu1 %vm9077_vm2, %v9075_v0  ;;  %v6981_v56 = vld [vmem:[%s12589_s3 + $0x780] sm:$0xff] }
 0x359   :  { %v8182_v5 = vpop.f32.mrf.mxu1 }
 0x35a   :  { %v2361_v63 = vpop.f32.mrf.mxu0  ;;  %8444 = vmatmul.mubr.msk.f32.gmra.mxu0 %vm500_vm3, %v6929_v57  ;;  %v4442_v5 = vpop.permute.xlu0 %4441 }
 0x35b   :  { %v2415_v2 = vadd.f32 %v2361_v63, %v10976_v9  ;;  %v2573_v7 = vpop.f32.mrf.mxu1  ;;  %8487 = vmatmul.mubr.msk.f32.gmra.mxu1 %vm500_vm3, %v6957_v4  ;;  %8446 = vmatprep.mubr.msk.f32.mxu0 %vm9077_vm2, %v9075_v0  ;;  %v6958_v9 = vld [vmem:[%s12589_s3 + $0x740] sm:$0xff] }
 0x35c   :  { %v11175_v14 = vadd.f32 %v2573_v7, %v2413_v48  ;;  %v8142_v6 = vpop.f32.mrf.mxu0  ;;  %8489 = vmatprep.mubr.msk.f32.mxu1 %vm9077_vm2, %v9075_v0 }
 0x35d   :  { %v8185_v13 = vpop.f32.mrf.mxu1  ;;  %v4440_v6 = vpop.permute.xlu1 %4439 }
 0x35e   :  { %v2366_v8 = vpop.f32.mrf.mxu0  ;;  %8447 = vmatmul.mubr.msk.f32.gmra.mxu0 %vm500_vm3, %v6930_v3  ;;  %v6982_v3 = vld [vmem:[%s12589_s3 + $0x788] sm:$0xff] }
 0x35f   :  { %v2416_v12 = vadd.f32 %v2366_v8, %v10991_v22  ;;  %v2578_v11 = vpop.f32.mrf.mxu1  ;;  %8490 = vmatmul.mubr.msk.f32.gmra.mxu1 %vm500_vm3, %v6958_v9  ;;  %8449 = vmatprep.mubr.msk.f32.mxu0 %vm9077_vm2, %v9075_v0  ;;  %v6959_v22 = vld [vmem:[%s12589_s3 + $0x748] sm:$0xff] }
 0x360   :  { %v11190_v16 = vadd.f32 %v2578_v11, %v2414_v55  ;;  %v8145_v19 = vpop.f32.mrf.mxu0  ;;  %8492 = vmatprep.mubr.msk.f32.mxu1 %vm9077_vm2, %v9075_v0 }
 0x361   :  { %v8188_v23 = vpop.f32.mrf.mxu1  ;;  %v6983_v19 = vld [vmem:[%s12589_s3 + $0x790] sm:$0xff] }
 0x362   :  { %v2371_v17 = vpop.f32.mrf.mxu0  ;;  %8450 = vmatmul.mubr.msk.f32.gmra.mxu0 %vm500_vm3, %v6931_v32 }
 0x363   :  { %v2417_v21 = vadd.f32 %v2371_v17, %v11006_v33  ;;  %v2583_v20 = vpop.f32.mrf.mxu1  ;;  %8493 = vmatmul.mubr.msk.f32.gmra.mxu1 %vm500_vm3, %v6959_v22  ;;  %8452 = vmatprep.mubr.msk.f32.mxu0 %vm9077_vm2, %v9075_v0  ;;  %v6960_v33 = vld [vmem:[%s12589_s3 + $0x750] sm:$0xff] }
 0x364   :  { %v11205_v24 = vadd.f32 %v2583_v20, %v2415_v2  ;;  %v8148_v31 = vpop.f32.mrf.mxu0  ;;  %8495 = vmatprep.mubr.msk.f32.mxu1 %vm9077_vm2, %v9075_v0  ;;  %v4664_v20 = vpop.permute.xlu0 %4663 }
 0x365   :  { %v8191_v27 = vpop.f32.mrf.mxu1 }
 0x366   :  { %v2376_v28 = vpop.f32.mrf.mxu0  ;;  %8453 = vmatmul.mubr.msk.f32.gmra.mxu0 %vm500_vm3, %v6932_v39 }
 0x367   :  { %v2418_v46 = vadd.f32 %v2376_v28, %v11021_v42  ;;  %v2588_v29 = vpop.f32.mrf.mxu1  ;;  %8496 = vmatmul.mubr.msk.f32.gmra.mxu1 %vm500_vm3, %v6960_v33  ;;  %8455 = vmatprep.mubr.msk.f32.mxu0 %vm9077_vm2, %v9075_v0  ;;  %v6961_v42 = vld [vmem:[%s12589_s3 + $0x758] sm:$0xff] }
 0x368   :  { %v11220_v41 = vadd.f32 %v2588_v29, %v2416_v12  ;;  %v8151_v34 = vpop.f32.mrf.mxu0  ;;  %8498 = vmatprep.mubr.msk.f32.mxu1 %vm9077_vm2, %v9075_v0  ;;  %v6984_v33 = vld [vmem:[%s12589_s3 + $0x798] sm:$0xff] }
 0x369   :  { %v8194_v36 = vpop.f32.mrf.mxu1 }
 0x36a   :  { %v2381_v37 = vpop.f32.mrf.mxu0  ;;  %8456 = vmatmul.mubr.msk.f32.gmra.mxu0 %vm500_vm3, %v6933_v35  ;;  %v6985_v36 = vld [vmem:[%s12589_s3 + $0x7a0] sm:$0xff] }
 0x36b   :  { %v2419_v53 = vadd.f32 %v2381_v37, %v11036_v47  ;;  %v2593_v38 = vpop.f32.mrf.mxu1  ;;  %8499 = vmatmul.mubr.msk.f32.gmra.mxu1 %vm500_vm3, %v6961_v42  ;;  %8458 = vmatprep.mubr.msk.f32.mxu0 %vm9077_vm2, %v9075_v0  ;;  %v6962_v47 = vld [vmem:[%s12589_s3 + $0x760] sm:$0xff] }
 0x36c   :  { %v11235_v51 = vadd.f32 %v2593_v38, %v2417_v21  ;;  %v8154_v43 = vpop.f32.mrf.mxu0  ;;  %8501 = vmatprep.mubr.msk.f32.mxu1 %vm9077_vm2, %v9075_v0  ;;  %v7013_v38 = vld [vmem:[%s12589_s3 + $0x808] sm:$0xff] }
 0x36d   :  { %v8197_v54 = vpop.f32.mrf.mxu1 }
 0x36e   :  { %v2386_v44 = vpop.f32.mrf.mxu0  ;;  %8459 = vmatmul.mubr.msk.f32.gmra.mxu0 %vm500_vm3, %v6934_v50  ;;  %v6986_v54 = vld [vmem:[%s12589_s3 + $0x7a8] sm:$0xff] }
 0x36f   :  { %v2420_v45 = vadd.f32 %v2386_v44, %v11049_v18  ;;  %v2598_v48 = vpop.f32.mrf.mxu1  ;;  %8502 = vmatmul.mubr.msk.f32.gmra.mxu1 %vm500_vm3, %v6962_v47  ;;  %8461 = vmatprep.mubr.msk.f32.mxu0 %vm9077_vm2, %v9075_v0  ;;  %v6963_v18 = vld [vmem:[%s12589_s3 + $0x768] sm:$0xff] }
 0x370   :  { %v11250_v10 = vadd.f32 %v2598_v48, %v2418_v46  ;;  %v8157_v52 = vpop.f32.mrf.mxu0  ;;  %8504 = vmatprep.mubr.msk.f32.mxu1 %vm9077_vm2, %v9075_v0  ;;  %v4662_v46 = vpop.permute.xlu1 %4661  ;;  %v7014_v48 = vld [vmem:[%s12589_s3 + $0x810] sm:$0xff] }
 0x371   :  { %v8200_v62 = vpop.f32.mrf.mxu1 }
 0x372   :  { %v2391_v60 = vpop.f32.mrf.mxu0  ;;  %8462 = vmatmul.mubr.msk.f32.gmra.mxu0 %vm500_vm3, %v6935_v58  ;;  %v6987_v62 = vld [vmem:[%s12589_s3 + $0x7b0] sm:$0xff] }
 0x373   :  { %v2421_v59 = vadd.f32 %v2391_v60, %v11068_v25  ;;  %v2603_v55 = vpop.f32.mrf.mxu1  ;;  %8505 = vmatmul.mubr.msk.f32.gmra.mxu1 %vm500_vm3, %v6963_v18  ;;  %8517 = vmatprep.mubr.msk.f32.mxu0 %vm9077_vm2, %v9075_v0  ;;  %v6964_v25 = vld [vmem:[%s12589_s3 + $0x770] sm:$0xff] }
 0x374   :  { %v11265_v57 = vadd.f32 %v2603_v55, %v2419_v53  ;;  %v8160_v61 = vpop.f32.mrf.mxu0  ;;  %8507 = vmatprep.mubr.msk.f32.mxu1 %vm9077_vm2, %v9075_v0 }
 0x375   :  { %v8203_v4 = vpop.f32.mrf.mxu1 }
 0x376   :  { %v2396_v63 = vpop.f32.mrf.mxu0  ;;  %8518 = vmatmul.mubr.msk.f32.vlgmr.msra.gmra.mxu0 %vm500_vm3, %v6981_v56  ;;  %v6988_v4 = vld [vmem:[%s12589_s3 + $0x7b8] sm:$0xff] }
 0x377   :  { %v2422_v2 = vadd.f32 %v2396_v63, %v11083_v15  ;;  %v2608_v7 = vpop.f32.mrf.mxu1  ;;  %8508 = vmatmul.mubr.msk.f32.gmra.mxu1 %vm500_vm3, %v6964_v25  ;;  %8612 = vmatpush3.msra.mxu0 %v4442_v5  ;;  %v6965_v15 = vld [vmem:[%s12589_s3 + $0x778] sm:$0xff] }
 0x378   :  { %v11278_v9 = vadd.f32 %v2608_v7, %v2420_v45  ;;  %8613 = vmatprep.subr.mxu0 %v9075_v0  ;;  %v8163_v13 = vpop.f32.mrf.mxu0  ;;  %8510 = vmatprep.mubr.msk.f32.mxu1 %vm9077_vm2, %v9075_v0 }
 0x379   :  { %v8206_v8 = vpop.f32.mrf.mxu1  ;;  %8614 = vmatpush3.msra.mxu0 %v4440_v6  ;;  %8520 = vmatprep.mubr.msk.f32.mxu0 %vm9077_vm2, %v9075_v0  ;;  %v6989_v13 = vld [vmem:[%s12589_s3 + $0x7c0] sm:$0xff] }
 0x37a   :  { %v2401_v12 = vpop.f32.mrf.mxu0  ;;  %8521 = vmatmul.mubr.msk.f32.gmra.mxu0 %vm500_vm3, %v6982_v3  ;;  %8709 = vmatprep.subr.mxu0 %v9075_v0 }
 0x37b   :  { %v2423_v11 = vadd.f32 %v2401_v12, %v11099_v26  ;;  %v2613_v32 = vpop.f32.mrf.mxu1  ;;  %8511 = vmatmul.mubr.msk.f32.gmra.mxu1 %vm500_vm3, %v6965_v15  ;;  %8523 = vmatprep.mubr.msk.f32.mxu0 %vm9077_vm2, %v9075_v0  ;;  %v7011_v26 = vld [vmem:[%s12589_s3 + $0x7f8] sm:$0xff] }
 0x37c   :  { %v11297_v22 = vadd.f32 %v2613_v32, %v2421_v59  ;;  %v8166_v23 = vpop.f32.mrf.mxu0  ;;  %8566 = vmatprep.mubr.msk.f32.mxu1 %vm9077_vm2, %v9075_v0 }
 0x37d   :  { %v8209_v17 = vpop.f32.mrf.mxu1  ;;  %v6990_v23 = vld [vmem:[%s12589_s3 + $0x7c8] sm:$0xff] }
 0x37e   :  { %v2406_v21 = vpop.f32.mrf.mxu0  ;;  %8524 = vmatmul.mubr.msk.f32.gmra.mxu0 %vm500_vm3, %v6983_v19 }
 0x37f   :  { %v2424_v39 = vadd.f32 %v2406_v21, %v11115_v30  ;;  %v2618_v31 = vpop.f32.mrf.mxu1  ;;  %8567 = vmatmul.mubr.msk.f32.vlgmr.msra.gmra.mxu1 %vm500_vm3, %v7011_v26  ;;  %8526 = vmatprep.mubr.msk.f32.mxu0 %vm9077_vm2, %v9075_v0  ;;  %v7012_v30 = vld [vmem:[%s12589_s3 + $0x800] sm:$0xff] }
 0x380   :  { %v11312_v27 = vadd.f32 %v2618_v31, %v2422_v2  ;;  %8661 = vmatpush3.msra.mxu1 %v4664_v20  ;;  %v8169_v28 = vpop.f32.mrf.mxu0  ;;  %8569 = vmatprep.mubr.msk.f32.mxu1 %vm9077_vm2, %v9075_v0 }
 0x381   :  { %8662 = vmatprep.subr.mxu1 %v9075_v0  ;;  %v8212_v29 = vpop.f32.mrf.mxu1 }
 0x382   :  { %8663 = vmatpush3.msra.mxu1 %v4662_v46  ;;  %v2780_v35 = vpop.f32.mrf.mxu0  ;;  %8527 = vmatmul.mubr.msk.f32.gmra.mxu0 %vm500_vm3, %v6984_v33  ;;  %v6991_v33 = vld [vmem:[%s12589_s3 + $0x7d0] sm:$0xff] }
 0x383   :  { %v2623_v34 = vpop.f32.mrf.mxu1  ;;  %v2854_v42 = vadd.f32 %v2780_v35, %v11130_v40  ;;  %8570 = vmatmul.mubr.msk.f32.gmra.mxu1 %vm500_vm3, %v7012_v30  ;;  %8529 = vmatprep.mubr.msk.f32.mxu0 %vm9077_vm2, %v9075_v0 }
 0x384   :  { %v11328_v37 = vadd.f32 %v2623_v34, %v2423_v11  ;;  %v8225_v53 = vpop.f32.mrf.mxu0  ;;  %8572 = vmatprep.mubr.msk.f32.mxu1 %vm9077_vm2, %v9075_v0  ;;  %8758 = vmatprep.subr.mxu1 %v9075_v0 }
 0x385   :  { %v8215_v40 = vpop.f32.mrf.mxu1 }
 0x386   :  { %v2785_v50 = vpop.f32.mrf.mxu0  ;;  %8530 = vmatmul.mubr.msk.f32.gmra.mxu0 %vm500_vm3, %v6985_v36 }
 0x387   :  { %v2628_v43 = vpop.f32.mrf.mxu1  ;;  %v2855_v47 = vadd.f32 %v2785_v50, %v11145_v49  ;;  %8573 = vmatmul.mubr.msk.f32.gmra.mxu1 %vm500_vm3, %v7013_v38  ;;  %8532 = vmatprep.mubr.msk.f32.mxu0 %vm9077_vm2, %v9075_v0 }
 0x388   :  { %v11344_v44 = vadd.f32 %v2628_v43, %v2424_v39  ;;  %v8228_v45 = vpop.f32.mrf.mxu0  ;;  %8575 = vmatprep.mubr.msk.f32.mxu1 %vm9077_vm2, %v9075_v0 }
 0x389   :  { %v8218_v49 = vpop.f32.mrf.mxu1 }
 0x38a   :  { %v2790_v58 = vpop.f32.mrf.mxu0  ;;  %8533 = vmatmul.mubr.msk.f32.gmra.mxu0 %vm500_vm3, %v6986_v54 }
 0x38b   :  { %v2856_v52 = vadd.f32 %v2790_v58, %v11160_v1  ;;  %v3002_v18 = vpop.f32.mrf.mxu1  ;;  %8576 = vmatmul.mubr.msk.f32.gmra.mxu1 %vm500_vm3, %v7014_v48  ;;  %8535 = vmatprep.mubr.msk.f32.mxu0 %vm9077_vm2, %v9075_v0  ;;  %v7015_v1 = vld [vmem:[%s12589_s3 + $0x818] sm:$0xff] }
 0x38c   :  { %v11359_v60 = vadd.f32 %v3002_v18, %v2854_v42  ;;  %v8231_v59 = vpop.f32.mrf.mxu0  ;;  %8578 = vmatprep.mubr.msk.f32.mxu1 %vm9077_vm2, %v9075_v0  ;;  %v6992_v42 = vld [vmem:[%s12589_s3 + $0x7d8] sm:$0xff]  ;;  %v6994_v18 = vld [vmem:[%s12589_s3 + $0x7e8] sm:$0xff] }
 0x38d   :  { %v8274_v55 = vpop.f32.mrf.mxu1 }
 0x38e   :  { %v2795_v56 = vpop.f32.mrf.mxu0  ;;  %8536 = vmatmul.mubr.msk.f32.gmra.mxu0 %vm500_vm3, %v6987_v62 }
 0x38f   :  { %v2857_v61 = vadd.f32 %v2795_v56, %v11175_v14  ;;  %v3007_v25 = vpop.f32.mrf.mxu1  ;;  %8579 = vmatmul.mubr.msk.f32.gmra.mxu1 %vm500_vm3, %v7015_v1  ;;  %8538 = vmatprep.mubr.msk.f32.mxu0 %vm9077_vm2, %v9075_v0  ;;  %v7016_v14 = vld [vmem:[%s12589_s3 + $0x820] sm:$0xff] }
 0x390   :  { %v11374_v5 = vadd.f32 %v3007_v25, %v2855_v47  ;;  %v8234_v63 = vpop.f32.mrf.mxu0  ;;  %8581 = vmatprep.mubr.msk.f32.mxu1 %vm9077_vm2, %v9075_v0  ;;  %v6993_v47 = vld [vmem:[%s12589_s3 + $0x7e0] sm:$0xff]  ;;  %v6995_v25 = vld [vmem:[%s12589_s3 + $0x7f0] sm:$0xff] }
 0x391   :  { %v8277_v2 = vpop.f32.mrf.mxu1 }
 0x392   :  { %v2800_v7 = vpop.f32.mrf.mxu0  ;;  %8539 = vmatmul.mubr.msk.f32.gmra.mxu0 %vm500_vm3, %v6988_v4 }
 0x393   :  { %v2858_v3 = vadd.f32 %v2800_v7, %v11190_v16  ;;  %v3012_v6 = vpop.f32.mrf.mxu1  ;;  %8582 = vmatmul.mubr.msk.f32.gmra.mxu1 %vm500_vm3, %v7016_v14  ;;  %8541 = vmatprep.mubr.msk.f32.mxu0 %vm9077_vm2, %v9075_v0  ;;  %v7017_v16 = vld [vmem:[%s12589_s3 + $0x828] sm:$0xff] }
 0x394   :  { %v11389_v15 = vadd.f32 %v3012_v6, %v2856_v52  ;;  %v8237_v8 = vpop.f32.mrf.mxu0  ;;  %8584 = vmatprep.mubr.msk.f32.mxu1 %vm9077_vm2, %v9075_v0  ;;  %v7041_v6 = vld [vmem:[%s12589_s3 + $0x870] sm:$0xff] }
 0x395   :  { %v8280_v12 = vpop.f32.mrf.mxu1 }
 0x396   :  { %v2805_v11 = vpop.f32.mrf.mxu0  ;;  %8542 = vmatmul.mubr.msk.f32.gmra.mxu0 %vm500_vm3, %v6989_v13  ;;  %v4886_v12 = vpop.permute.xlu0 %4885 }
 0x397   :  { %v2859_v32 = vadd.f32 %v2805_v11, %v11205_v24  ;;  %v3017_v19 = vpop.f32.mrf.mxu1  ;;  %8585 = vmatmul.mubr.msk.f32.gmra.mxu1 %vm500_vm3, %v7017_v16  ;;  %8544 = vmatprep.mubr.msk.f32.mxu0 %vm9077_vm2, %v9075_v0  ;;  %v7018_v24 = vld [vmem:[%s12589_s3 + $0x830] sm:$0xff] }
 0x398   :  { %v11404_v26 = vadd.f32 %v3017_v19, %v2857_v61  ;;  %v8240_v17 = vpop.f32.mrf.mxu0  ;;  %8587 = vmatprep.mubr.msk.f32.mxu1 %vm9077_vm2, %v9075_v0 }
 0x399   :  { %v8283_v21 = vpop.f32.mrf.mxu1  ;;  %v4884_v17 = vpop.permute.xlu1 %4883 }
 0x39a   :  { %v2810_v20 = vpop.f32.mrf.mxu0  ;;  %8545 = vmatmul.mubr.msk.f32.gmra.mxu0 %vm500_vm3, %v6990_v23  ;;  %v7042_v23 = vld [vmem:[%s12589_s3 + $0x878] sm:$0xff] }
 0x39b   :  { %v2860_v39 = vadd.f32 %v2810_v20, %v11220_v41  ;;  %v3022_v31 = vpop.f32.mrf.mxu1  ;;  %8588 = vmatmul.mubr.msk.f32.gmra.mxu1 %vm500_vm3, %v7018_v24  ;;  %8547 = vmatprep.mubr.msk.f32.mxu0 %vm9077_vm2, %v9075_v0  ;;  %v7019_v41 = vld [vmem:[%s12589_s3 + $0x838] sm:$0xff] }
 0x39c   :  { %v11419_v28 = vadd.f32 %v3022_v31, %v2858_v3  ;;  %v8243_v30 = vpop.f32.mrf.mxu0  ;;  %8590 = vmatprep.mubr.msk.f32.mxu1 %vm9077_vm2, %v9075_v0 }
 0x39d   :  { %v8286_v46 = vpop.f32.mrf.mxu1  ;;  %v7043_v30 = vld [vmem:[%s12589_s3 + $0x880] sm:$0xff] }
 0x39e   :  { %v2815_v29 = vpop.f32.mrf.mxu0  ;;  %8548 = vmatmul.mubr.msk.f32.gmra.mxu0 %vm500_vm3, %v6991_v33 }
 0x39f   :  { %v2861_v35 = vadd.f32 %v2815_v29, %v11235_v51  ;;  %v3027_v34 = vpop.f32.mrf.mxu1  ;;  %8591 = vmatmul.mubr.msk.f32.gmra.mxu1 %vm500_vm3, %v7019_v41  ;;  %8550 = vmatprep.mubr.msk.f32.mxu0 %vm9077_vm2, %v9075_v0  ;;  %v7020_v51 = vld [vmem:[%s12589_s3 + $0x840] sm:$0xff] }
 0x3a0   :  { %v11434_v36 = vadd.f32 %v3027_v34, %v2859_v32  ;;  %v8246_v53 = vpop.f32.mrf.mxu0  ;;  %8593 = vmatprep.mubr.msk.f32.mxu1 %vm9077_vm2, %v9075_v0  ;;  %v5108_v34 = vpop.permute.xlu0 %5107 }
 0x3a1   :  { %v8289_v38 = vpop.f32.mrf.mxu1 }
 0x3a2   :  { %v2820_v40 = vpop.f32.mrf.mxu0  ;;  %8551 = vmatmul.mubr.msk.f32.gmra.mxu0 %vm500_vm3, %v6992_v42 }
 0x3a3   :  { %v2862_v50 = vadd.f32 %v2820_v40, %v11250_v10  ;;  %v3032_v43 = vpop.f32.mrf.mxu1  ;;  %8594 = vmatmul.mubr.msk.f32.gmra.mxu1 %vm500_vm3, %v7020_v51  ;;  %8553 = vmatprep.mubr.msk.f32.mxu0 %vm9077_vm2, %v9075_v0  ;;  %v7021_v10 = vld [vmem:[%s12589_s3 + $0x848] sm:$0xff] }
 0x3a4   :  { %v11449_v54 = vadd.f32 %v3032_v43, %v2860_v39  ;;  %v8249_v45 = vpop.f32.mrf.mxu0  ;;  %8596 = vmatprep.mubr.msk.f32.mxu1 %vm9077_vm2, %v9075_v0  ;;  %v7044_v51 = vld [vmem:[%s12589_s3 + $0x888] sm:$0xff] }
 0x3a5   :  { %v8292_v48 = vpop.f32.mrf.mxu1 }
 0x3a6   :  { %v2825_v49 = vpop.f32.mrf.mxu0  ;;  %8554 = vmatmul.mubr.msk.f32.gmra.mxu0 %vm500_vm3, %v6993_v47  ;;  %v7045_v48 = vld [vmem:[%s12589_s3 + $0x890] sm:$0xff] }
 0x3a7   :  { %v2863_v58 = vadd.f32 %v2825_v49, %v11265_v57  ;;  %v3037_v52 = vpop.f32.mrf.mxu1  ;;  %8597 = vmatmul.mubr.msk.f32.gmra.mxu1 %vm500_vm3, %v7021_v10  ;;  %8556 = vmatprep.mubr.msk.f32.mxu0 %vm9077_vm2, %v9075_v0  ;;  %v7022_v57 = vld [vmem:[%s12589_s3 + $0x850] sm:$0xff] }
 0x3a8   :  { %v11464_v62 = vadd.f32 %v3037_v52, %v2861_v35  ;;  %v8252_v59 = vpop.f32.mrf.mxu0  ;;  %8599 = vmatprep.mubr.msk.f32.mxu1 %vm9077_vm2, %v9075_v0  ;;  %v7073_v52 = vld [vmem:[%s12589_s3 + $0x8f8] sm:$0xff] }
 0x3a9   :  { %v8295_v1 = vpop.f32.mrf.mxu1 }
 0x3aa   :  { %v2830_v55 = vpop.f32.mrf.mxu0  ;;  %8557 = vmatmul.mubr.msk.f32.gmra.mxu0 %vm500_vm3, %v6994_v18  ;;  %v7046_v1 = vld [vmem:[%s12589_s3 + $0x898] sm:$0xff] }
 0x3ab   :  { %v2864_v56 = vadd.f32 %v2830_v55, %v11278_v9  ;;  %v3042_v61 = vpop.f32.mrf.mxu1  ;;  %8600 = vmatmul.mubr.msk.f32.gmra.mxu1 %vm500_vm3, %v7022_v57  ;;  %8559 = vmatprep.mubr.msk.f32.mxu0 %vm9077_vm2, %v9075_v0  ;;  %v7023_v9 = vld [vmem:[%s12589_s3 + $0x858] sm:$0xff] }
 0x3ac   :  { %v11479_v4 = vadd.f32 %v3042_v61, %v2862_v50  ;;  %v8255_v63 = vpop.f32.mrf.mxu0  ;;  %8602 = vmatprep.mubr.msk.f32.mxu1 %vm9077_vm2, %v9075_v0  ;;  %v5106_v50 = vpop.permute.xlu1 %5105  ;;  %v7074_v61 = vld [vmem:[%s12589_s3 + $0x900] sm:$0xff] }
 0x3ad   :  { %v8298_v14 = vpop.f32.mrf.mxu1 }
 0x3ae   :  { %v2835_v2 = vpop.f32.mrf.mxu0  ;;  %8560 = vmatmul.mubr.msk.f32.gmra.mxu0 %vm500_vm3, %v6995_v25  ;;  %v7047_v14 = vld [vmem:[%s12589_s3 + $0x8a0] sm:$0xff] }
 0x3af   :  { %v2865_v7 = vadd.f32 %v2835_v2, %v11297_v22  ;;  %v3047_v3 = vpop.f32.mrf.mxu1  ;;  %8603 = vmatmul.mubr.msk.f32.gmra.mxu1 %vm500_vm3, %v7023_v9  ;;  %8615 = vmatprep.mubr.msk.f32.mxu0 %vm9077_vm2, %v9075_v0  ;;  %v7024_v22 = vld [vmem:[%s12589_s3 + $0x860] sm:$0xff] }
 0x3b0   :  { %v11494_v13 = vadd.f32 %v3047_v3, %v2863_v58  ;;  %v8258_v8 = vpop.f32.mrf.mxu0  ;;  %8605 = vmatprep.mubr.msk.f32.mxu1 %vm9077_vm2, %v9075_v0 }
 0x3b1   :  { %v8301_v16 = vpop.f32.mrf.mxu1 }
 0x3b2   :  { %v2840_v11 = vpop.f32.mrf.mxu0  ;;  %8616 = vmatmul.mubr.msk.f32.vlgmr.msra.gmra.mxu0 %vm500_vm3, %v7041_v6  ;;  %v7048_v16 = vld [vmem:[%s12589_s3 + $0x8a8] sm:$0xff] }
 0x3b3   :  { %v2866_v32 = vadd.f32 %v2840_v11, %v11312_v27  ;;  %v3052_v19 = vpop.f32.mrf.mxu1  ;;  %8606 = vmatmul.mubr.msk.f32.gmra.mxu1 %vm500_vm3, %v7024_v22  ;;  %8710 = vmatpush3.msra.mxu0 %v4886_v12  ;;  %v7025_v27 = vld [vmem:[%s12589_s3 + $0x868] sm:$0xff] }
 0x3b4   :  { %v11507_v24 = vadd.f32 %v3052_v19, %v2864_v56  ;;  %8711 = vmatprep.subr.mxu0 %v9075_v0  ;;  %v8261_v21 = vpop.f32.mrf.mxu0  ;;  %8608 = vmatprep.mubr.msk.f32.mxu1 %vm9077_vm2, %v9075_v0 }
 0x3b5   :  { %v8304_v20 = vpop.f32.mrf.mxu1  ;;  %8712 = vmatpush3.msra.mxu0 %v4884_v17  ;;  %8618 = vmatprep.mubr.msk.f32.mxu0 %vm9077_vm2, %v9075_v0  ;;  %v7049_v21 = vld [vmem:[%s12589_s3 + $0x8b0] sm:$0xff] }
 0x3b6   :  { %v2845_v39 = vpop.f32.mrf.mxu0  ;;  %8619 = vmatmul.mubr.msk.f32.gmra.mxu0 %vm500_vm3, %v7042_v23  ;;  %8807 = vmatprep.subr.mxu0 %v9075_v0 }
 0x3b7   :  { %v2867_v31 = vadd.f32 %v2845_v39, %v11328_v37  ;;  %v3057_v33 = vpop.f32.mrf.mxu1  ;;  %8609 = vmatmul.mubr.msk.f32.gmra.mxu1 %vm500_vm3, %v7025_v27  ;;  %8621 = vmatprep.mubr.msk.f32.mxu0 %vm9077_vm2, %v9075_v0  ;;  %v7071_v37 = vld [vmem:[%s12589_s3 + $0x8e8] sm:$0xff] }
 0x3b8   :  { %v11526_v41 = vadd.f32 %v3057_v33, %v2865_v7  ;;  %v8264_v46 = vpop.f32.mrf.mxu0  ;;  %8664 = vmatprep.mubr.msk.f32.mxu1 %vm9077_vm2, %v9075_v0 }
 0x3b9   :  { %v8307_v29 = vpop.f32.mrf.mxu1  ;;  %v7050_v46 = vld [vmem:[%s12589_s3 + $0x8b8] sm:$0xff] }
 0x3ba   :  { %v2850_v35 = vpop.f32.mrf.mxu0  ;;  %8622 = vmatmul.mubr.msk.f32.gmra.mxu0 %vm500_vm3, %v7043_v30 }
 0x3bb   :  { %v2868_v42 = vadd.f32 %v2850_v35, %v11344_v44  ;;  %v3062_v53 = vpop.f32.mrf.mxu1  ;;  %8665 = vmatmul.mubr.msk.f32.vlgmr.msra.gmra.mxu1 %vm500_vm3, %v7071_v37  ;;  %8624 = vmatprep.mubr.msk.f32.mxu0 %vm9077_vm2, %v9075_v0  ;;  %v7072_v44 = vld [vmem:[%s12589_s3 + $0x8f0] sm:$0xff] }
 0x3bc   :  { %v11541_v38 = vadd.f32 %v3062_v53, %v2866_v32  ;;  %8759 = vmatpush3.msra.mxu1 %v5108_v34  ;;  %v8267_v40 = vpop.f32.mrf.mxu0  ;;  %8667 = vmatprep.mubr.msk.f32.mxu1 %vm9077_vm2, %v9075_v0 }
 0x3bd   :  { %8760 = vmatprep.subr.mxu1 %v9075_v0  ;;  %v8310_v43 = vpop.f32.mrf.mxu1 }
 0x3be   :  { %8761 = vmatpush3.msra.mxu1 %v5106_v50  ;;  %v3224_v47 = vpop.f32.mrf.mxu0  ;;  %8625 = vmatmul.mubr.msk.f32.gmra.mxu0 %vm500_vm3, %v7044_v51  ;;  %v7051_v51 = vld [vmem:[%s12589_s3 + $0x8c0] sm:$0xff] }
 0x3bf   :  { %v3067_v45 = vpop.f32.mrf.mxu1  ;;  %v3298_v10 = vadd.f32 %v3224_v47, %v11359_v60  ;;  %8668 = vmatmul.mubr.msk.f32.gmra.mxu1 %vm500_vm3, %v7072_v44  ;;  %8627 = vmatprep.mubr.msk.f32.mxu0 %vm9077_vm2, %v9075_v0 }
 0x3c0   :  { %v11557_v49 = vadd.f32 %v3067_v45, %v2867_v31  ;;  %v8323_v58 = vpop.f32.mrf.mxu0  ;;  %8670 = vmatprep.mubr.msk.f32.mxu1 %vm9077_vm2, %v9075_v0  ;;  %8856 = vmatprep.subr.mxu1 %v9075_v0 }
 0x3c1   :  { %v8313_v60 = vpop.f32.mrf.mxu1 }
 0x3c2   :  { %v3229_v18 = vpop.f32.mrf.mxu0  ;;  %8628 = vmatmul.mubr.msk.f32.gmra.mxu0 %vm500_vm3, %v7045_v48 }
 0x3c3   :  { %v3072_v59 = vpop.f32.mrf.mxu1  ;;  %v3299_v57 = vadd.f32 %v3229_v18, %v11374_v5  ;;  %8671 = vmatmul.mubr.msk.f32.gmra.mxu1 %vm500_vm3, %v7073_v52  ;;  %8630 = vmatprep.mubr.msk.f32.mxu0 %vm9077_vm2, %v9075_v0 }
 0x3c4   :  { %v11573_v55 = vadd.f32 %v3072_v59, %v2868_v42  ;;  %v8326_v56 = vpop.f32.mrf.mxu0  ;;  %8673 = vmatprep.mubr.msk.f32.mxu1 %vm9077_vm2, %v9075_v0 }
 0x3c5   :  { %v8316_v5 = vpop.f32.mrf.mxu1 }
 0x3c6   :  { %v3234_v25 = vpop.f32.mrf.mxu0  ;;  %8631 = vmatmul.mubr.msk.f32.gmra.mxu0 %vm500_vm3, %v7046_v1 }
 0x3c7   :  { %v3300_v63 = vadd.f32 %v3234_v25, %v11389_v15  ;;  %v3446_v9 = vpop.f32.mrf.mxu1  ;;  %8674 = vmatmul.mubr.msk.f32.gmra.mxu1 %vm500_vm3, %v7074_v61  ;;  %8633 = vmatprep.mubr.msk.f32.mxu0 %vm9077_vm2, %v9075_v0  ;;  %v7075_v15 = vld [vmem:[%s12589_s3 + $0x908] sm:$0xff] }
 0x3c8   :  { %v11588_v2 = vadd.f32 %v3446_v9, %v3298_v10  ;;  %v8329_v7 = vpop.f32.mrf.mxu0  ;;  %8676 = vmatprep.mubr.msk.f32.mxu1 %vm9077_vm2, %v9075_v0  ;;  %v7052_v10 = vld [vmem:[%s12589_s3 + $0x8c8] sm:$0xff]  ;;  %v7054_v9 = vld [vmem:[%s12589_s3 + $0x8d8] sm:$0xff] }
 0x3c9   :  { %v8372_v3 = vpop.f32.mrf.mxu1 }
 0x3ca   :  { %v3239_v6 = vpop.f32.mrf.mxu0  ;;  %8634 = vmatmul.mubr.msk.f32.gmra.mxu0 %vm500_vm3, %v7047_v14 }
 0x3cb   :  { %v3301_v8 = vadd.f32 %v3239_v6, %v11404_v26  ;;  %v3451_v22 = vpop.f32.mrf.mxu1  ;;  %8677 = vmatmul.mubr.msk.f32.gmra.mxu1 %vm500_vm3, %v7075_v15  ;;  %8636 = vmatprep.mubr.msk.f32.mxu0 %vm9077_vm2, %v9075_v0  ;;  %v7076_v26 = vld [vmem:[%s12589_s3 + $0x910] sm:$0xff] }
 0x3cc   :  { %v11603_v12 = vadd.f32 %v3451_v22, %v3299_v57  ;;  %v8332_v11 = vpop.f32.mrf.mxu0  ;;  %8679 = vmatprep.mubr.msk.f32.mxu1 %vm9077_vm2, %v9075_v0  ;;  %v7053_v57 = vld [vmem:[%s12589_s3 + $0x8d0] sm:$0xff]  ;;  %v7055_v22 = vld [vmem:[%s12589_s3 + $0x8e0] sm:$0xff] }
 0x3cd   :  { %v8375_v32 = vpop.f32.mrf.mxu1 }
 0x3ce   :  { %v3244_v19 = vpop.f32.mrf.mxu0  ;;  %8637 = vmatmul.mubr.msk.f32.gmra.mxu0 %vm500_vm3, %v7048_v16 }
 0x3cf   :  { %v3302_v23 = vadd.f32 %v3244_v19, %v11419_v28  ;;  %v3456_v17 = vpop.f32.mrf.mxu1  ;;  %8680 = vmatmul.mubr.msk.f32.gmra.mxu1 %vm500_vm3, %v7076_v26  ;;  %8639 = vmatprep.mubr.msk.f32.mxu0 %vm9077_vm2, %v9075_v0  ;;  %v7077_v28 = vld [vmem:[%s12589_s3 + $0x918] sm:$0xff] }
 0x3d0   :  { %v11618_v27 = vadd.f32 %v3456_v17, %v3300_v63  ;;  %v8335_v20 = vpop.f32.mrf.mxu0  ;;  %8682 = vmatprep.mubr.msk.f32.mxu1 %vm9077_vm2, %v9075_v0  ;;  %v7101_v17 = vld [vmem:[%s12589_s3 + $0x960] sm:$0xff] }
 0x3d1   :  { %v8378_v39 = vpop.f32.mrf.mxu1 }
 0x3d2   :  { %v3249_v31 = vpop.f32.mrf.mxu0  ;;  %8640 = vmatmul.mubr.msk.f32.gmra.mxu0 %vm500_vm3, %v7049_v21  ;;  %v5330_v39 = vpop.permute.xlu0 %5329 }
 0x3d3   :  { %v3303_v33 = vadd.f32 %v3249_v31, %v11434_v36  ;;  %v3461_v30 = vpop.f32.mrf.mxu1  ;;  %8683 = vmatmul.mubr.msk.f32.gmra.mxu1 %vm500_vm3, %v7077_v28  ;;  %8642 = vmatprep.mubr.msk.f32.mxu0 %vm9077_vm2, %v9075_v0  ;;  %v7078_v36 = vld [vmem:[%s12589_s3 + $0x920] sm:$0xff] }
 0x3d4   :  { %v11633_v37 = vadd.f32 %v3461_v30, %v3301_v8  ;;  %v8338_v29 = vpop.f32.mrf.mxu0  ;;  %8685 = vmatprep.mubr.msk.f32.mxu1 %vm9077_vm2, %v9075_v0 }
 0x3d5   :  { %v8381_v35 = vpop.f32.mrf.mxu1  ;;  %v5328_v29 = vpop.permute.xlu1 %5327 }
 0x3d6   :  { %v3254_v34 = vpop.f32.mrf.mxu0  ;;  %8643 = vmatmul.mubr.msk.f32.gmra.mxu0 %vm500_vm3, %v7050_v46  ;;  %v7102_v46 = vld [vmem:[%s12589_s3 + $0x968] sm:$0xff] }
 0x3d7   :  { %v3304_v42 = vadd.f32 %v3254_v34, %v11449_v54  ;;  %v3466_v53 = vpop.f32.mrf.mxu1  ;;  %8686 = vmatmul.mubr.msk.f32.gmra.mxu1 %vm500_vm3, %v7078_v36  ;;  %8645 = vmatprep.mubr.msk.f32.mxu0 %vm9077_vm2, %v9075_v0  ;;  %v7079_v54 = vld [vmem:[%s12589_s3 + $0x928] sm:$0xff] }
 0x3d8   :  { %v11648_v40 = vadd.f32 %v3466_v53, %v3302_v23  ;;  %v8341_v44 = vpop.f32.mrf.mxu0  ;;  %8688 = vmatprep.mubr.msk.f32.mxu1 %vm9077_vm2, %v9075_v0 }
 0x3d9   :  { %v8384_v50 = vpop.f32.mrf.mxu1  ;;  %v7103_v44 = vld [vmem:[%s12589_s3 + $0x970] sm:$0xff] }
 0x3da   :  { %v3259_v43 = vpop.f32.mrf.mxu0  ;;  %8646 = vmatmul.mubr.msk.f32.gmra.mxu0 %vm500_vm3, %v7051_v51 }
 0x3db   :  { %v3305_v47 = vadd.f32 %v3259_v43, %v11464_v62  ;;  %v3471_v45 = vpop.f32.mrf.mxu1  ;;  %8689 = vmatmul.mubr.msk.f32.gmra.mxu1 %vm500_vm3, %v7079_v54  ;;  %8648 = vmatprep.mubr.msk.f32.mxu0 %vm9077_vm2, %v9075_v0  ;;  %v7080_v62 = vld [vmem:[%s12589_s3 + $0x930] sm:$0xff] }
 0x3dc   :  { %v11663_v48 = vadd.f32 %v3471_v45, %v3303_v33  ;;  %v8344_v58 = vpop.f32.mrf.mxu0  ;;  %8691 = vmatprep.mubr.msk.f32.mxu1 %vm9077_vm2, %v9075_v0  ;;  %v5552_v45 = vpop.permute.xlu0 %5551 }
 0x3dd   :  { %v8387_v52 = vpop.f32.mrf.mxu1 }
 0x3de   :  { %v3264_v60 = vpop.f32.mrf.mxu0  ;;  %8649 = vmatmul.mubr.msk.f32.gmra.mxu0 %vm500_vm3, %v7052_v10 }
 0x3df   :  { %v3306_v18 = vadd.f32 %v3264_v60, %v11479_v4  ;;  %v3476_v59 = vpop.f32.mrf.mxu1  ;;  %8692 = vmatmul.mubr.msk.f32.gmra.mxu1 %vm500_vm3, %v7080_v62  ;;  %8651 = vmatprep.mubr.msk.f32.mxu0 %vm9077_vm2, %v9075_v0  ;;  %v7081_v4 = vld [vmem:[%s12589_s3 + $0x938] sm:$0xff] }
 0x3e0   :  { %v11678_v1 = vadd.f32 %v3476_v59, %v3304_v42  ;;  %v8347_v56 = vpop.f32.mrf.mxu0  ;;  %8694 = vmatprep.mubr.msk.f32.mxu1 %vm9077_vm2, %v9075_v0  ;;  %v7104_v62 = vld [vmem:[%s12589_s3 + $0x978] sm:$0xff] }
 0x3e1   :  { %v8390_v61 = vpop.f32.mrf.mxu1 }
 0x3e2   :  { %v3269_v5 = vpop.f32.mrf.mxu0  ;;  %8652 = vmatmul.mubr.msk.f32.gmra.mxu0 %vm500_vm3, %v7053_v57  ;;  %v7105_v61 = vld [vmem:[%s12589_s3 + $0x980] sm:$0xff] }
 0x3e3   :  { %v3307_v25 = vadd.f32 %v3269_v5, %v11494_v13  ;;  %v3481_v63 = vpop.f32.mrf.mxu1  ;;  %8695 = vmatmul.mubr.msk.f32.gmra.mxu1 %vm500_vm3, %v7081_v4  ;;  %8654 = vmatprep.mubr.msk.f32.mxu0 %vm9077_vm2, %v9075_v0  ;;  %v7082_v13 = vld [vmem:[%s12589_s3 + $0x940] sm:$0xff] }
 0x3e4   :  { %v11693_v14 = vadd.f32 %v3481_v63, %v3305_v47  ;;  %v8350_v7 = vpop.f32.mrf.mxu0  ;;  %8697 = vmatprep.mubr.msk.f32.mxu1 %vm9077_vm2, %v9075_v0  ;;  %v7133_v63 = vld [vmem:[%s12589_s3 + $0x9e8] sm:$0xff] }
 0x3e5   :  { %v8393_v15 = vpop.f32.mrf.mxu1 }
 0x3e6   :  { %v3274_v3 = vpop.f32.mrf.mxu0  ;;  %8655 = vmatmul.mubr.msk.f32.gmra.mxu0 %vm500_vm3, %v7054_v9  ;;  %v7106_v15 = vld [vmem:[%s12589_s3 + $0x988] sm:$0xff] }
 0x3e7   :  { %v3308_v6 = vadd.f32 %v3274_v3, %v11507_v24  ;;  %v3486_v8 = vpop.f32.mrf.mxu1  ;;  %8698 = vmatmul.mubr.msk.f32.gmra.mxu1 %vm500_vm3, %v7082_v13  ;;  %8657 = vmatprep.mubr.msk.f32.mxu0 %vm9077_vm2, %v9075_v0  ;;  %v7083_v24 = vld [vmem:[%s12589_s3 + $0x948] sm:$0xff] }
 0x3e8   :  { %v11708_v16 = vadd.f32 %v3486_v8, %v3306_v18  ;;  %v8353_v11 = vpop.f32.mrf.mxu0  ;;  %8700 = vmatprep.mubr.msk.f32.mxu1 %vm9077_vm2, %v9075_v0  ;;  %v5550_v18 = vpop.permute.xlu1 %5549  ;;  %v7134_v8 = vld [vmem:[%s12589_s3 + $0x9f0] sm:$0xff] }
 0x3e9   :  { %v8396_v26 = vpop.f32.mrf.mxu1 }
 0x3ea   :  { %v3279_v32 = vpop.f32.mrf.mxu0  ;;  %8658 = vmatmul.mubr.msk.f32.gmra.mxu0 %vm500_vm3, %v7055_v22  ;;  %v7107_v26 = vld [vmem:[%s12589_s3 + $0x990] sm:$0xff] }
 0x3eb   :  { %v3309_v19 = vadd.f32 %v3279_v32, %v11526_v41  ;;  %v3491_v23 = vpop.f32.mrf.mxu1  ;;  %8701 = vmatmul.mubr.msk.f32.gmra.mxu1 %vm500_vm3, %v7083_v24  ;;  %8713 = vmatprep.mubr.msk.f32.mxu0 %vm9077_vm2, %v9075_v0  ;;  %v7084_v41 = vld [vmem:[%s12589_s3 + $0x950] sm:$0xff] }
 0x3ec   :  { %v11723_v21 = vadd.f32 %v3491_v23, %v3307_v25  ;;  %v8356_v20 = vpop.f32.mrf.mxu0  ;;  %8703 = vmatprep.mubr.msk.f32.mxu1 %vm9077_vm2, %v9075_v0 }
 0x3ed   :  { %v8399_v28 = vpop.f32.mrf.mxu1 }
 0x3ee   :  { %v3284_v31 = vpop.f32.mrf.mxu0  ;;  %8714 = vmatmul.mubr.msk.f32.vlgmr.msra.gmra.mxu0 %vm500_vm3, %v7101_v17  ;;  %v7108_v28 = vld [vmem:[%s12589_s3 + $0x998] sm:$0xff] }
 0x3ef   :  { %v3310_v33 = vadd.f32 %v3284_v31, %v11541_v38  ;;  %v3496_v30 = vpop.f32.mrf.mxu1  ;;  %8704 = vmatmul.mubr.msk.f32.gmra.mxu1 %vm500_vm3, %v7084_v41  ;;  %8808 = vmatpush3.msra.mxu0 %v5330_v39  ;;  %v7085_v38 = vld [vmem:[%s12589_s3 + $0x958] sm:$0xff] }
 0x3f0   :  { %v11736_v36 = vadd.f32 %v3496_v30, %v3308_v6  ;;  %8809 = vmatprep.subr.mxu0 %v9075_v0  ;;  %v8359_v35 = vpop.f32.mrf.mxu0  ;;  %8706 = vmatprep.mubr.msk.f32.mxu1 %vm9077_vm2, %v9075_v0 }
 0x3f1   :  { %v8402_v34 = vpop.f32.mrf.mxu1  ;;  %8810 = vmatpush3.msra.mxu0 %v5328_v29  ;;  %8716 = vmatprep.mubr.msk.f32.mxu0 %vm9077_vm2, %v9075_v0  ;;  %v7109_v35 = vld [vmem:[%s12589_s3 + $0x9a0] sm:$0xff] }
 0x3f2   :  { %v3289_v42 = vpop.f32.mrf.mxu0  ;;  %8717 = vmatmul.mubr.msk.f32.gmra.mxu0 %vm500_vm3, %v7102_v46  ;;  %8905 = vmatprep.subr.mxu0 %v9075_v0 }
 0x3f3   :  { %v3311_v53 = vadd.f32 %v3289_v42, %v11557_v49  ;;  %v3501_v51 = vpop.f32.mrf.mxu1  ;;  %8707 = vmatmul.mubr.msk.f32.gmra.mxu1 %vm500_vm3, %v7085_v38  ;;  %8719 = vmatprep.mubr.msk.f32.mxu0 %vm9077_vm2, %v9075_v0  ;;  %v7131_v49 = vld [vmem:[%s12589_s3 + $0x9d8] sm:$0xff] }
 0x3f4   :  { %v11755_v54 = vadd.f32 %v3501_v51, %v3309_v19  ;;  %v8362_v50 = vpop.f32.mrf.mxu0  ;;  %8762 = vmatprep.mubr.msk.f32.mxu1 %vm9077_vm2, %v9075_v0 }
 0x3f5   :  { %v8405_v43 = vpop.f32.mrf.mxu1  ;;  %v7110_v50 = vld [vmem:[%s12589_s3 + $0x9a8] sm:$0xff] }
 0x3f6   :  { %v3294_v47 = vpop.f32.mrf.mxu0  ;;  %8720 = vmatmul.mubr.msk.f32.gmra.mxu0 %vm500_vm3, %v7103_v44 }
 0x3f7   :  { %v3312_v10 = vadd.f32 %v3294_v47, %v11573_v55  ;;  %v3506_v58 = vpop.f32.mrf.mxu1  ;;  %8763 = vmatmul.mubr.msk.f32.vlgmr.msra.gmra.mxu1 %vm500_vm3, %v7131_v49  ;;  %8722 = vmatprep.mubr.msk.f32.mxu0 %vm9077_vm2, %v9075_v0  ;;  %v7132_v55 = vld [vmem:[%s12589_s3 + $0x9e0] sm:$0xff] }
 0x3f8   :  { %v11770_v52 = vadd.f32 %v3506_v58, %v3310_v33  ;;  %8857 = vmatpush3.msra.mxu1 %v5552_v45  ;;  %v8365_v60 = vpop.f32.mrf.mxu0  ;;  %8765 = vmatprep.mubr.msk.f32.mxu1 %vm9077_vm2, %v9075_v0 }
 0x3f9   :  { %8858 = vmatprep.subr.mxu1 %v9075_v0  ;;  %v8408_v59 = vpop.f32.mrf.mxu1 }
 0x3fa   :  { %8859 = vmatpush3.msra.mxu1 %v5550_v18  ;;  %v3668_v57 = vpop.f32.mrf.mxu0  ;;  %8723 = vmatmul.mubr.msk.f32.gmra.mxu0 %vm500_vm3, %v7104_v62  ;;  %v7111_v62 = vld [vmem:[%s12589_s3 + $0x9b0] sm:$0xff] }
 0x3fb   :  { %v3511_v56 = vpop.f32.mrf.mxu1  ;;  %v3742_v4 = vadd.f32 %v3668_v57, %v11588_v2  ;;  %8766 = vmatmul.mubr.msk.f32.gmra.mxu1 %vm500_vm3, %v7132_v55  ;;  %8725 = vmatprep.mubr.msk.f32.mxu0 %vm9077_vm2, %v9075_v0 }
 0x3fc   :  { %v11786_v5 = vadd.f32 %v3511_v56, %v3311_v53  ;;  %v8421_v25 = vpop.f32.mrf.mxu0  ;;  %8768 = vmatprep.mubr.msk.f32.mxu1 %vm9077_vm2, %v9075_v0  ;;  %8954 = vmatprep.subr.mxu1 %v9075_v0 }
 0x3fd   :  { %v8411_v2 = vpop.f32.mrf.mxu1 }
 0x3fe   :  { %v3673_v9 = vpop.f32.mrf.mxu0  ;;  %8726 = vmatmul.mubr.msk.f32.gmra.mxu0 %vm500_vm3, %v7105_v61  ;;  %v5990_v2 = vld [vmem:[%s12588_s4 + $0x68] sm:$0xff] }
 0x3ff   :  { %v3516_v7 = vpop.f32.mrf.mxu1  ;;  %v3743_v13 = vadd.f32 %v3673_v9, %v11603_v12  ;;  %8769 = vmatmul.mubr.msk.f32.gmra.mxu1 %vm500_vm3, %v7133_v63  ;;  %8728 = vmatprep.mubr.msk.f32.mxu0 %vm9077_vm2, %v9075_v0 }
 0x400   :  { %v11802_v3 = vadd.f32 %v3516_v7, %v3312_v10  ;;  %v8424_v6 = vpop.f32.mrf.mxu0  ;;  %8771 = vmatprep.mubr.msk.f32.mxu1 %vm9077_vm2, %v9075_v0  ;;  %6059 = vperm.xlu1 %9074, %v5990_v2   ;;  %v5978_v2 = vld [vmem:[%s12588_s4 + $0x8] sm:$0xff] }
 0x401   :  { %v8414_v12 = vpop.f32.mrf.mxu1 }
 0x402   :  { %v3678_v22 = vpop.f32.mrf.mxu0  ;;  %8729 = vmatmul.mubr.msk.f32.gmra.mxu0 %vm500_vm3, %v7106_v15  ;;  %v7113_v15 = vld [vmem:[%s12589_s3 + $0x9c0] sm:$0xff] }
 0x403   :  { %v3744_v11 = vadd.f32 %v3678_v22, %v11618_v27  ;;  %v3890_v24 = vpop.f32.mrf.mxu1  ;;  %8772 = vmatmul.mubr.msk.f32.gmra.mxu1 %vm500_vm3, %v7134_v8  ;;  %8731 = vmatprep.mubr.msk.f32.mxu0 %vm9077_vm2, %v9075_v0  ;;  %v7135_v27 = vld [vmem:[%s12589_s3 + $0x9f8] sm:$0xff] }
 0x404   :  { %v11817_v32 = vadd.f32 %v3890_v24, %v3742_v4  ;;  %v8427_v19 = vpop.f32.mrf.mxu0  ;;  %8774 = vmatprep.mubr.msk.f32.mxu1 %vm9077_vm2, %v9075_v0  ;;  %v7112_v4 = vld [vmem:[%s12589_s3 + $0x9b8] sm:$0xff] }
 0x405   :  { %v8470_v23 = vpop.f32.mrf.mxu1  ;;  %v5988_v22 = vld [vmem:[%s12588_s4 + $0x58] sm:$0xff]  ;;  %v7114_v19 = vld [vmem:[%s12589_s3 + $0x9c8] sm:$0xff] }
 0x406   :  { %v3683_v17 = vpop.f32.mrf.mxu0  ;;  %8732 = vmatmul.mubr.msk.f32.gmra.mxu0 %vm500_vm3, %v7107_v26  ;;  %6049 = vperm.xlu1 %9074, %v5988_v22  }
 0x407   :  { %v3745_v20 = vadd.f32 %v3683_v17, %v11633_v37  ;;  %v3895_v41 = vpop.f32.mrf.mxu1  ;;  %8775 = vmatmul.mubr.msk.f32.gmra.mxu1 %vm500_vm3, %v7135_v27  ;;  %8734 = vmatprep.mubr.msk.f32.mxu0 %vm9077_vm2, %v9075_v0  ;;  %v7136_v37 = vld [vmem:[%s12589_s3 + $0xa00] sm:$0xff] }
 0x408   :  { %v11832_v39 = vadd.f32 %v3895_v41, %v3743_v13  ;;  %v8430_v31 = vpop.f32.mrf.mxu0  ;;  %8777 = vmatprep.mubr.msk.f32.mxu1 %vm9077_vm2, %v9075_v0 }
 0x409   :  { %v8473_v33 = vpop.f32.mrf.mxu1 }
 0x40a   :  { %v3688_v30 = vpop.f32.mrf.mxu0  ;;  %8735 = vmatmul.mubr.msk.f32.gmra.mxu0 %vm500_vm3, %v7108_v28 }
 0x40b   :  { %v3746_v46 = vadd.f32 %v3688_v30, %v11648_v40  ;;  %v3900_v29 = vpop.f32.mrf.mxu1  ;;  %8778 = vmatmul.mubr.msk.f32.gmra.mxu1 %vm500_vm3, %v7136_v37  ;;  %8737 = vmatprep.mubr.msk.f32.mxu0 %vm9077_vm2, %v9075_v0  ;;  %v7137_v40 = vld [vmem:[%s12589_s3 + $0xa08] sm:$0xff]  ;;  %v7115_v37 = vld [vmem:[%s12589_s3 + $0x9d0] sm:$0xff] }
 0x40c   :  { %v11847_v38 = vadd.f32 %v3900_v29, %v3744_v11  ;;  %v8433_v34 = vpop.f32.mrf.mxu0  ;;  %8780 = vmatprep.mubr.msk.f32.mxu1 %vm9077_vm2, %v9075_v0  ;;  %v5984_v29 = vld [vmem:[%s12588_s4 + $0x38] sm:$0xff] }
 0x40d   :  { %v8476_v42 = vpop.f32.mrf.mxu1 }
 0x40e   :  { %v3693_v53 = vpop.f32.mrf.mxu0  ;;  %8738 = vmatmul.mubr.msk.f32.gmra.mxu0 %vm500_vm3, %v7109_v35  ;;  %v7161_v42 = vld [vmem:[%s12589_s3 + $0xa50] sm:$0xff] }
 0x40f   :  { %v3747_v51 = vadd.f32 %v3693_v53, %v11663_v48  ;;  %v3905_v44 = vpop.f32.mrf.mxu1  ;;  %8781 = vmatmul.mubr.msk.f32.gmra.mxu1 %vm500_vm3, %v7137_v40  ;;  %8740 = vmatprep.mubr.msk.f32.mxu0 %vm9077_vm2, %v9075_v0  ;;  %v7138_v48 = vld [vmem:[%s12589_s3 + $0xa10] sm:$0xff] }
 0x410   :  { %v11862_v49 = vadd.f32 %v3905_v44, %v3745_v20  ;;  %v8436_v43 = vpop.f32.mrf.mxu0  ;;  %8783 = vmatprep.mubr.msk.f32.mxu1 %vm9077_vm2, %v9075_v0  ;;  %v5986_v20 = vld [vmem:[%s12588_s4 + $0x48] sm:$0xff] }
 0x411   :  { %v8479_v47 = vpop.f32.mrf.mxu1  ;;  %6039 = vperm.xlu1 %9074, %v5986_v20   ;;  %v5774_v43 = vpop.permute.xlu0 %5773 }
 0x412   :  { %v3698_v45 = vpop.f32.mrf.mxu0  ;;  %8741 = vmatmul.mubr.msk.f32.gmra.mxu0 %vm500_vm3, %v7110_v50  ;;  %v5982_v50 = vld [vmem:[%s12588_s4 + $0x28] sm:$0xff] }
 0x413   :  { %v3748_v10 = vadd.f32 %v3698_v45, %v11678_v1  ;;  %v3910_v58 = vpop.f32.mrf.mxu1  ;;  %8784 = vmatmul.mubr.msk.f32.gmra.mxu1 %vm500_vm3, %v7138_v48  ;;  %8743 = vmatprep.mubr.msk.f32.mxu0 %vm9077_vm2, %v9075_v0  ;;  %v7139_v1 = vld [vmem:[%s12589_s3 + $0xa18] sm:$0xff] }
 0x414   :  { %v11877_v60 = vadd.f32 %v3910_v58, %v3746_v46  ;;  %v8439_v55 = vpop.f32.mrf.mxu0  ;;  %8786 = vmatprep.mubr.msk.f32.mxu1 %vm9077_vm2, %v9075_v0  ;;  %v5772_v58 = vpop.permute.xlu1 %5771 }
 0x415   :  { %v8482_v18 = vpop.f32.mrf.mxu1  ;;  %6029 = vperm.xlu1 %9074, %v5984_v29  }
 0x416   :  { %v3703_v59 = vpop.f32.mrf.mxu0  ;;  %8744 = vmatmul.mubr.msk.f32.gmra.mxu0 %vm500_vm3, %v7111_v62  ;;  %v5980_v18 = vld [vmem:[%s12588_s4 + $0x18] sm:$0xff] }
 0x417   :  { %v3749_v57 = vadd.f32 %v3703_v59, %v11693_v14  ;;  %v3915_v56 = vpop.f32.mrf.mxu1  ;;  %8787 = vmatmul.mubr.msk.f32.gmra.mxu1 %vm500_vm3, %v7139_v1  ;;  %8746 = vmatprep.mubr.msk.f32.mxu0 %vm9077_vm2, %v9075_v0  ;;  %v7140_v14 = vld [vmem:[%s12589_s3 + $0xa20] sm:$0xff] }
 0x418   :  { %v11892_v61 = vadd.f32 %v3915_v56, %v3747_v51  ;;  %v8442_v25 = vpop.f32.mrf.mxu0  ;;  %8789 = vmatprep.mubr.msk.f32.mxu1 %vm9077_vm2, %v9075_v0 }
 0x419   :  { %v8485_v63 = vpop.f32.mrf.mxu1  ;;  %6019 = vperm.xlu1 %9074, %v5982_v50   ;;  %v7168_v50 = vld [vmem:[%s12589_s3 + $0xa88] sm:$0xff] }
 0x41a   :  { %v3708_v9 = vpop.f32.mrf.mxu0  ;;  %8747 = vmatmul.mubr.msk.f32.gmra.mxu0 %vm500_vm3, %v7112_v4  ;;  %v7163_v4 = vld [vmem:[%s12589_s3 + $0xa60] sm:$0xff] }
 0x41b   :  { %v3750_v7 = vadd.f32 %v3708_v9, %v11708_v16  ;;  %v3920_v13 = vpop.f32.mrf.mxu1  ;;  %8790 = vmatmul.mubr.msk.f32.gmra.mxu1 %vm500_vm3, %v7140_v14  ;;  %8749 = vmatprep.mubr.msk.f32.mxu0 %vm9077_vm2, %v9075_v0  ;;  %v7141_v16 = vld [vmem:[%s12589_s3 + $0xa28] sm:$0xff] }
 0x41c   :  { %v11910_v6 = vadd.f32 %v3920_v13, %v3748_v10  ;;  %v8445_v8 = vpop.f32.mrf.mxu0  ;;  %8792 = vmatprep.mubr.msk.f32.mxu1 %vm9077_vm2, %v9075_v0  ;;  %v7162_v10 = vld [vmem:[%s12589_s3 + $0xa58] sm:$0xff] }
 0x41d   :  { %v8488_v12 = vpop.f32.mrf.mxu1  ;;  %6009 = vperm.xlu1 %9074, %v5980_v18  }
 0x41e   :  { %v3713_v11 = vpop.f32.mrf.mxu0  ;;  %8750 = vmatmul.mubr.msk.f32.gmra.mxu0 %vm500_vm3, %v7113_v15  ;;  %v7164_v15 = vld [vmem:[%s12589_s3 + $0xa68] sm:$0xff] }
 0x41f   :  { %v3751_v24 = vadd.f32 %v3713_v11, %v11723_v21  ;;  %v3925_v26 = vpop.f32.mrf.mxu1  ;;  %8793 = vmatmul.mubr.msk.f32.gmra.mxu1 %vm500_vm3, %v7141_v16  ;;  %8752 = vmatprep.mubr.msk.f32.mxu0 %vm9077_vm2, %v9075_v0  ;;  %v7142_v21 = vld [vmem:[%s12589_s3 + $0xa30] sm:$0xff] }
 0x420   :  { %v11928_v27 = vadd.f32 %v3925_v26, %v3749_v57  ;;  %v8448_v23 = vpop.f32.mrf.mxu0  ;;  %8795 = vmatprep.mubr.msk.f32.mxu1 %vm9077_vm2, %v9075_v0  ;;  %v7165_v26 = vld [vmem:[%s12589_s3 + $0xa70] sm:$0xff] }
 0x421   :  { %v8491_v17 = vpop.f32.mrf.mxu1  ;;  %5999 = vperm.xlu1 %9074, %v5978_v2  }
 0x422   :  { %v3718_v41 = vpop.f32.mrf.mxu0  ;;  %8753 = vmatmul.mubr.msk.f32.gmra.mxu0 %vm500_vm3, %v7114_v19 }
 0x423   :  { %v3752_v28 = vadd.f32 %v3718_v41, %v11736_v36  ;;  %v3930_v31 = vpop.f32.mrf.mxu1  ;;  %8796 = vmatmul.mubr.msk.f32.gmra.mxu1 %vm500_vm3, %v7142_v21  ;;  %8755 = vmatprep.mubr.msk.f32.mxu0 %vm9077_vm2, %v9075_v0  ;;  %v7143_v36 = vld [vmem:[%s12589_s3 + $0xa38] sm:$0xff] }
 0x424   :  { %v11946_v33 = vadd.f32 %v3930_v31, %v3750_v7  ;;  %v8451_v30 = vpop.f32.mrf.mxu0  ;;  %8798 = vmatprep.mubr.msk.f32.mxu1 %vm9077_vm2, %v9075_v0  ;;  %v7193_v21 = vld [vmem:[%s12589_s3 + $0xad8] sm:$0xff] }
 0x425   :  { %v8494_v46 = vpop.f32.mrf.mxu1  ;;  %v7194_v30 = vld [vmem:[%s12589_s3 + $0xae0] sm:$0xff] }
 0x426   :  { %v3723_v35 = vpop.f32.mrf.mxu0  ;;  %8756 = vmatmul.mubr.msk.f32.gmra.mxu0 %vm500_vm3, %v7115_v37 }
 0x427   :  { %v3753_v34 = vadd.f32 %v3723_v35, %v11755_v54  ;;  %v3935_v40 = vpop.f32.mrf.mxu1  ;;  %8799 = vmatmul.mubr.msk.f32.gmra.mxu1 %vm500_vm3, %v7143_v36  ;;  %8811 = vmatprep.mubr.msk.f32.mxu0 %vm9077_vm2, %v9075_v0  ;;  %v7144_v54 = vld [vmem:[%s12589_s3 + $0xa40] sm:$0xff] }
 0x428   :  { %v11964_v53 = vadd.f32 %v3935_v40, %v3751_v24  ;;  %v8454_v51 = vpop.f32.mrf.mxu0  ;;  %8801 = vmatprep.mubr.msk.f32.mxu1 %vm9077_vm2, %v9075_v0  ;;  %v7167_v35 = vld [vmem:[%s12589_s3 + $0xa80] sm:$0xff] }
 0x429   :  { %v8497_v44 = vpop.f32.mrf.mxu1 }
 0x42a   :  { %v3728_v48 = vpop.f32.mrf.mxu0  ;;  %8812 = vmatmul.mubr.msk.f32.vlgmr.msra.gmra.mxu0 %vm500_vm3, %v7161_v42 }
 0x42b   :  { %v3754_v47 = vadd.f32 %v3728_v48, %v11770_v52  ;;  %v3940_v45 = vpop.f32.mrf.mxu1  ;;  %8802 = vmatmul.mubr.msk.f32.gmra.mxu1 %vm500_vm3, %v7144_v54  ;;  %8906 = vmatpush3.msra.mxu0 %v5774_v43  ;;  %v7145_v52 = vld [vmem:[%s12589_s3 + $0xa48] sm:$0xff] }
 0x42c   :  { %v11980_v62 = vadd.f32 %v3940_v45, %v3752_v28  ;;  %8907 = vmatprep.subr.mxu0 %v9075_v0  ;;  %v8457_v55 = vpop.f32.mrf.mxu0  ;;  %8804 = vmatprep.mubr.msk.f32.mxu1 %vm9077_vm2, %v9075_v0  ;;  %v7166_v28 = vld [vmem:[%s12589_s3 + $0xa78] sm:$0xff] }
 0x42d   :  { %v8500_v1 = vpop.f32.mrf.mxu1  ;;  %8908 = vmatpush3.msra.mxu0 %v5772_v58  ;;  %8814 = vmatprep.mubr.msk.f32.mxu0 %vm9077_vm2, %v9075_v0  ;;  %v7169_v55 = vld [vmem:[%s12589_s3 + $0xa90] sm:$0xff] }
 0x42e   :  { %v3733_v59 = vpop.f32.mrf.mxu0  ;;  %8815 = vmatmul.mubr.msk.f32.gmra.mxu0 %vm500_vm3, %v7162_v10 }
 0x42f   :  { %v3755_v57 = vadd.f32 %v3733_v59, %v11786_v5  ;;  %v3945_v56 = vpop.f32.mrf.mxu1  ;;  %8805 = vmatmul.mubr.msk.f32.gmra.mxu1 %vm500_vm3, %v7145_v52  ;;  %8817 = vmatprep.mubr.msk.f32.mxu0 %vm9077_vm2, %v9075_v0  ;;  %v7191_v5 = vld [vmem:[%s12589_s3 + $0xac8] sm:$0xff] }
 0x430   :  { %v12001_v25 = vadd.f32 %v3945_v56, %v3753_v34  ;;  %v8460_v14 = vpop.f32.mrf.mxu0  ;;  %8860 = vmatprep.mubr.msk.f32.mxu1 %vm9077_vm2, %v9075_v0 }
 0x431   :  { %v8503_v63 = vpop.f32.mrf.mxu1 }
 0x432   :  { %v3738_v9 = vpop.f32.mrf.mxu0  ;;  %8818 = vmatmul.mubr.msk.f32.gmra.mxu0 %vm500_vm3, %v7163_v4  ;;  %v7170_v4 = vld [vmem:[%s12589_s3 + $0xa98] sm:$0xff] }
 0x433   :  { %v3756_v7 = vadd.f32 %v3738_v9, %v11802_v3  ;;  %v3950_v13 = vpop.f32.mrf.mxu1  ;;  %8861 = vmatmul.mubr.msk.f32.vlgmr.msra.gmra.mxu1 %vm500_vm3, %v7191_v5  ;;  %8820 = vmatprep.mubr.msk.f32.mxu0 %vm9077_vm2, %v9075_v0  ;;  %v7192_v3 = vld [vmem:[%s12589_s3 + $0xad0] sm:$0xff] }
 0x434   :  { %v12019_v8 = vadd.f32 %v3950_v13, %v3754_v47  ;;  %v8463_v16 = vpop.f32.mrf.mxu0  ;;  %8863 = vmatprep.mubr.msk.f32.mxu1 %vm9077_vm2, %v9075_v0  ;;  %v7171_v13 = vld [vmem:[%s12589_s3 + $0xaa0] sm:$0xff] }
 0x435   :  { %v8506_v12 = vpop.f32.mrf.mxu1 }
 0x436   :  { %v4112_v22 = vpop.f32.mrf.mxu0  ;;  %8821 = vmatmul.mubr.msk.f32.gmra.mxu0 %vm500_vm3, %v7164_v15 }
 0x437   :  { %v3955_v11 = vpop.f32.mrf.mxu1  ;;  %v4186_v24 = vadd.f32 %v4112_v22, %v11817_v32  ;;  %8864 = vmatmul.mubr.msk.f32.gmra.mxu1 %vm500_vm3, %v7192_v3  ;;  %8823 = vmatprep.mubr.msk.f32.mxu0 %vm9077_vm2, %v9075_v0  ;;  %v6118_v3 = vld [vmem:[%s12590_s6 + $0x50] sm:$0xf] }
 0x438   :  { %v12034_v19 = vadd.f32 %v3955_v11, %v3755_v57  ;;  %v8519_v23 = vpop.f32.mrf.mxu0  ;;  %8866 = vmatprep.mubr.msk.f32.mxu1 %vm9077_vm2, %v9075_v0  ;;  %6171 = vperm.xlu1 %9074, %v6118_v3  }
 0x439   :  { %v8509_v32 = vpop.f32.mrf.mxu1 }
 0x43a   :  { %v4117_v17 = vpop.f32.mrf.mxu0  ;;  %8824 = vmatmul.mubr.msk.f32.gmra.mxu0 %vm500_vm3, %v7165_v26  ;;  %v7172_v26 = vld [vmem:[%s12589_s3 + $0xaa8] sm:$0xff]  ;;  %v6116_v32 = vld [vmem:[%s12590_s6 + $0x40] sm:$0xff] }
 0x43b   :  { %v3960_v20 = vpop.f32.mrf.mxu1  ;;  %v4187_v41 = vadd.f32 %v4117_v17, %v11832_v39  ;;  %8867 = vmatmul.mubr.msk.f32.gmra.mxu1 %vm500_vm3, %v7193_v21  ;;  %8826 = vmatprep.mubr.msk.f32.mxu0 %vm9077_vm2, %v9075_v0 }
 0x43c   :  { %v12049_v31 = vadd.f32 %v3960_v20, %v3756_v7  ;;  %v8522_v37 = vpop.f32.mrf.mxu0  ;;  %8869 = vmatprep.mubr.msk.f32.mxu1 %vm9077_vm2, %v9075_v0  ;;  %6161 = vperm.xlu1 %9074, %v6116_v32  }
 0x43d   :  { %v8512_v39 = vpop.f32.mrf.mxu1  ;;  %v7173_v37 = vld [vmem:[%s12589_s3 + $0xab0] sm:$0xff] }
 0x43e   :  { %v4122_v36 = vpop.f32.mrf.mxu0  ;;  %8827 = vmatmul.mubr.msk.f32.gmra.mxu0 %vm500_vm3, %v7166_v28 }
 0x43f   :  { %v4188_v46 = vadd.f32 %v4122_v36, %v11847_v38  ;;  %v4334_v29 = vpop.f32.mrf.mxu1  ;;  %8870 = vmatmul.mubr.msk.f32.gmra.mxu1 %vm500_vm3, %v7194_v30  ;;  %8829 = vmatprep.mubr.msk.f32.mxu0 %vm9077_vm2, %v9075_v0  ;;  %v7195_v38 = vld [vmem:[%s12589_s3 + $0xae8] sm:$0xff]  ;;  %v6114_v36 = vld [vmem:[%s12590_s6 + $0x30] sm:$0xff] }
 0x440   :  { %v12064_v34 = vadd.f32 %v4334_v29, %v4186_v24  ;;  %v8525_v40 = vpop.f32.mrf.mxu0  ;;  %8872 = vmatprep.mubr.msk.f32.mxu1 %vm9077_vm2, %v9075_v0  ;;  %6151 = vperm.xlu1 %9074, %v6114_v36  }
 0x441   :  { %v8568_v42 = vpop.f32.mrf.mxu1 }
 0x442   :  { %v4127_v51 = vpop.f32.mrf.mxu0  ;;  %8830 = vmatmul.mubr.msk.f32.gmra.mxu0 %vm500_vm3, %v7167_v35 }
 0x443   :  { %v4189_v54 = vadd.f32 %v4127_v51, %v11862_v49  ;;  %v4339_v44 = vpop.f32.mrf.mxu1  ;;  %8873 = vmatmul.mubr.msk.f32.gmra.mxu1 %vm500_vm3, %v7195_v38  ;;  %8832 = vmatprep.mubr.msk.f32.mxu0 %vm9077_vm2, %v9075_v0  ;;  %v7196_v49 = vld [vmem:[%s12589_s3 + $0xaf0] sm:$0xff]  ;;  %v7174_v38 = vld [vmem:[%s12589_s3 + $0xab8] sm:$0xff] }
 0x444   :  { %v12079_v43 = vadd.f32 %v4339_v44, %v4187_v41  ;;  %v8528_v48 = vpop.f32.mrf.mxu0  ;;  %8875 = vmatprep.mubr.msk.f32.mxu1 %vm9077_vm2, %v9075_v0 }
 0x445   :  { %v8571_v47 = vpop.f32.mrf.mxu1 }
 0x446   :  { %v4132_v45 = vpop.f32.mrf.mxu0  ;;  %8833 = vmatmul.mubr.msk.f32.gmra.mxu0 %vm500_vm3, %v7168_v50  ;;  %v7175_v47 = vld [vmem:[%s12589_s3 + $0xac0] sm:$0xff] }
 0x447   :  { %v4190_v10 = vadd.f32 %v4132_v45, %v11877_v60  ;;  %v4344_v58 = vpop.f32.mrf.mxu1  ;;  %8876 = vmatmul.mubr.msk.f32.gmra.mxu1 %vm500_vm3, %v7196_v49  ;;  %8835 = vmatprep.mubr.msk.f32.mxu0 %vm9077_vm2, %v9075_v0  ;;  %v7197_v60 = vld [vmem:[%s12589_s3 + $0xaf8] sm:$0xff] }
 0x448   :  { %v12094_v52 = vadd.f32 %v4344_v58, %v4188_v46  ;;  %v8531_v1 = vpop.f32.mrf.mxu0  ;;  %8878 = vmatprep.mubr.msk.f32.mxu1 %vm9077_vm2, %v9075_v0  ;;  %v6110_v58 = vld [vmem:[%s12590_s6 + $0x10] sm:$0xff] }
 0x449   :  { %v8574_v18 = vpop.f32.mrf.mxu1 }
 0x44a   :  { %v4137_v59 = vpop.f32.mrf.mxu0  ;;  %8836 = vmatmul.mubr.msk.f32.gmra.mxu0 %vm500_vm3, %v7169_v55 }
 0x44b   :  { %v4191_v57 = vadd.f32 %v4137_v59, %v11892_v61  ;;  %v4349_v56 = vpop.f32.mrf.mxu1  ;;  %8879 = vmatmul.mubr.msk.f32.gmra.mxu1 %vm500_vm3, %v7197_v60  ;;  %8838 = vmatprep.mubr.msk.f32.mxu0 %vm9077_vm2, %v9075_v0  ;;  %v7198_v61 = vld [vmem:[%s12589_s3 + $0xb00] sm:$0xff] }
 0x44c   :  { %v12109_v14 = vadd.f32 %v4349_v56, %v4189_v54  ;;  %v8534_v5 = vpop.f32.mrf.mxu0  ;;  %8881 = vmatprep.mubr.msk.f32.mxu1 %vm9077_vm2, %v9075_v0  ;;  %v6112_v54 = vld [vmem:[%s12590_s6 + $0x20] sm:$0xff] }
 0x44d   :  { %v8577_v63 = vpop.f32.mrf.mxu1  ;;  %6141 = vperm.xlu1 %9074, %v6112_v54   ;;  %v7221_v59 = vld [vmem:[%s12589_s3 + $0xb40] sm:$0xff] }
 0x44e   :  { %v4142_v2 = vpop.f32.mrf.mxu0  ;;  %8839 = vmatmul.mubr.msk.f32.gmra.mxu0 %vm500_vm3, %v7170_v4  ;;  %v6108_v4 = vld [vmem:[%s12590_s6] sm:$0xff] }
 0x44f   :  { %v4192_v9 = vadd.f32 %v4142_v2, %v11910_v6  ;;  %v4354_v7 = vpop.f32.mrf.mxu1  ;;  %8882 = vmatmul.mubr.msk.f32.gmra.mxu1 %vm500_vm3, %v7198_v61  ;;  %8841 = vmatprep.mubr.msk.f32.mxu0 %vm9077_vm2, %v9075_v0  ;;  %v7199_v6 = vld [vmem:[%s12589_s3 + $0xb08] sm:$0xff] }
 0x450   :  { %v12124_v15 = vadd.f32 %v4354_v7, %v4190_v10  ;;  %v8537_v16 = vpop.f32.mrf.mxu0  ;;  %8884 = vmatprep.mubr.msk.f32.mxu1 %vm9077_vm2, %v9075_v0 }
 0x451   :  { %v8580_v12 = vpop.f32.mrf.mxu1  ;;  %6131 = vperm.xlu1 %9074, %v6110_v58   ;;  %v6342_v16 = vld [vmem:[%s12591_s8 + $0x8] sm:$0x3] }
 0x452   :  { %v4147_v22 = vpop.f32.mrf.mxu0  ;;  %8842 = vmatmul.mubr.msk.f32.gmra.mxu0 %vm500_vm3, %v7171_v13 }
 0x453   :  { %v4193_v11 = vadd.f32 %v4147_v22, %v11928_v27  ;;  %v4359_v24 = vpop.f32.mrf.mxu1  ;;  %8885 = vmatmul.mubr.msk.f32.gmra.mxu1 %vm500_vm3, %v7199_v6  ;;  %8844 = vmatprep.mubr.msk.f32.mxu0 %vm9077_vm2, %v9075_v0  ;;  %v7200_v27 = vld [vmem:[%s12589_s3 + $0xb10] sm:$0xff] }
 0x454   :  { %v12142_v23 = vadd.f32 %v4359_v24, %v4191_v57  ;;  %v8540_v21 = vpop.f32.mrf.mxu0  ;;  %8887 = vmatprep.mubr.msk.f32.mxu1 %vm9077_vm2, %v9075_v0 }
 0x455   :  { %v8583_v17 = vpop.f32.mrf.mxu1  ;;  %6121 = vperm.xlu1 %9074, %v6108_v4  }
 0x456   :  { %v4152_v20 = vpop.f32.mrf.mxu0  ;;  %8845 = vmatmul.mubr.msk.f32.gmra.mxu0 %vm500_vm3, %v7172_v26  ;;  %v7224_v17 = vld [vmem:[%s12589_s3 + $0xb58] sm:$0xff] }
 0x457   :  { %v4194_v41 = vadd.f32 %v4152_v20, %v11946_v33  ;;  %v4364_v28 = vpop.f32.mrf.mxu1  ;;  %8888 = vmatmul.mubr.msk.f32.gmra.mxu1 %vm500_vm3, %v7200_v27  ;;  %8847 = vmatprep.mubr.msk.f32.mxu0 %vm9077_vm2, %v9075_v0  ;;  %v7201_v33 = vld [vmem:[%s12589_s3 + $0xb18] sm:$0xff] }
 0x458   :  { %v12160_v30 = vadd.f32 %v4364_v28, %v4192_v9  ;;  %v8543_v39 = vpop.f32.mrf.mxu0  ;;  %8890 = vmatprep.mubr.msk.f32.mxu1 %vm9077_vm2, %v9075_v0  ;;  %v7222_v9 = vld [vmem:[%s12589_s3 + $0xb48] sm:$0xff] }
 0x459   :  { %v8586_v46 = vpop.f32.mrf.mxu1  ;;  %6350 = vperm.xlu1 %9074, %v6342_v16  }
 0x45a   :  { %v4157_v29 = vpop.f32.mrf.mxu0  ;;  %8848 = vmatmul.mubr.msk.f32.gmra.mxu0 %vm500_vm3, %v7173_v37 }
 0x45b   :  { %v4195_v35 = vadd.f32 %v4157_v29, %v11964_v53  ;;  %v4369_v40 = vpop.f32.mrf.mxu1  ;;  %8891 = vmatmul.mubr.msk.f32.gmra.mxu1 %vm500_vm3, %v7201_v33  ;;  %8850 = vmatprep.mubr.msk.f32.mxu0 %vm9077_vm2, %v9075_v0  ;;  %v7202_v53 = vld [vmem:[%s12589_s3 + $0xb20] sm:$0xff] }
 0x45c   :  { %v12178_v42 = vadd.f32 %v4369_v40, %v4193_v11  ;;  %v8546_v51 = vpop.f32.mrf.mxu0  ;;  %8893 = vmatprep.mubr.msk.f32.mxu1 %vm9077_vm2, %v9075_v0  ;;  %v7223_v11 = vld [vmem:[%s12589_s3 + $0xb50] sm:$0xff] }
 0x45d   :  { %v8589_v44 = vpop.f32.mrf.mxu1 }
 0x45e   :  { %v4162_v50 = vpop.f32.mrf.mxu0  ;;  %8851 = vmatmul.mubr.msk.f32.gmra.mxu0 %vm500_vm3, %v7174_v38 }
 0x45f   :  { %v4196_v48 = vadd.f32 %v4162_v50, %v11980_v62  ;;  %v4374_v49 = vpop.f32.mrf.mxu1  ;;  %8894 = vmatmul.mubr.msk.f32.gmra.mxu1 %vm500_vm3, %v7202_v53  ;;  %8853 = vmatprep.mubr.msk.f32.mxu0 %vm9077_vm2, %v9075_v0  ;;  %v7203_v62 = vld [vmem:[%s12589_s3 + $0xb28] sm:$0xff] }
 0x460   :  { %v12196_v45 = vadd.f32 %v4374_v49, %v4194_v41  ;;  %v8549_v10 = vpop.f32.mrf.mxu0  ;;  %8896 = vmatprep.mubr.msk.f32.mxu1 %vm9077_vm2, %v9075_v0 }
 0x461   :  { %v8592_v55 = vpop.f32.mrf.mxu1 }
 0x462   :  { %v4167_v1 = vpop.f32.mrf.mxu0  ;;  %8854 = vmatmul.mubr.msk.f32.gmra.mxu0 %vm500_vm3, %v7175_v47 }
 0x463   :  { %v4197_v60 = vadd.f32 %v4167_v1, %v12001_v25  ;;  %v4379_v18 = vpop.f32.mrf.mxu1  ;;  %8897 = vmatmul.mubr.msk.f32.gmra.mxu1 %vm500_vm3, %v7203_v62  ;;  %8909 = vmatprep.mubr.msk.f32.mxu0 %vm9077_vm2, %v9075_v0  ;;  %v7204_v25 = vld [vmem:[%s12589_s3 + $0xb30] sm:$0xff] }
 0x464   :  { %v12214_v57 = vadd.f32 %v4379_v18, %v4195_v35  ;;  %v8552_v56 = vpop.f32.mrf.mxu0  ;;  %8899 = vmatprep.mubr.msk.f32.mxu1 %vm9077_vm2, %v9075_v0 }
 0x465   :  { %v8595_v5 = vpop.f32.mrf.mxu1 }
 0x466   :  { %v4172_v61 = vpop.f32.mrf.mxu0  ;;  %8910 = vmatmul.mubr.msk.f32.vlgmr.msra.gmra.mxu0 %vm500_vm3, %v7221_v59 }
 0x467   :  { %v4198_v63 = vadd.f32 %v4172_v61, %v12019_v8  ;;  %v4384_v2 = vpop.f32.mrf.mxu1  ;;  %8900 = vmatmul.mubr.msk.f32.gmra.mxu1 %vm500_vm3, %v7204_v25  ;;  %8912 = vmatprep.mubr.msk.f32.mxu0 %vm9077_vm2, %v9075_v0  ;;  %v7205_v8 = vld [vmem:[%s12589_s3 + $0xb38] sm:$0xff] }
 0x468   :  { %v12232_v7 = vadd.f32 %v4384_v2, %v4196_v48  ;;  %v8555_v13 = vpop.f32.mrf.mxu0  ;;  %8902 = vmatprep.mubr.msk.f32.mxu1 %vm9077_vm2, %v9075_v0 }
 0x469   :  { %v8598_v6 = vpop.f32.mrf.mxu1 }
 0x46a   :  { %v4177_v3 = vpop.f32.mrf.mxu0  ;;  %8913 = vmatmul.mubr.msk.f32.gmra.mxu0 %vm500_vm3, %v7222_v9 }
 0x46b   :  { %v4199_v12 = vadd.f32 %v4177_v3, %v12034_v19  ;;  %v4389_v22 = vpop.f32.mrf.mxu1  ;;  %8903 = vmatmul.mubr.msk.f32.gmra.mxu1 %vm500_vm3, %v7205_v8  ;;  %8915 = vmatprep.mubr.msk.f32.mxu0 %vm9077_vm2, %v9075_v0 }
 0x46c   :  { %v12250_v24 = vadd.f32 %v4389_v22, %v4197_v60  ;;  %v8558_v26 = vpop.f32.mrf.mxu0  ;;  %8984 = vmatprep.mubr.msk.f32.mxu1 %vm9077_vm2, %v9075_v0 }
 0x46d   :  { %v8601_v21 = vpop.f32.mrf.mxu1 }
 0x46e   :  { %v4182_v27 = vpop.f32.mrf.mxu0  ;;  %8916 = vmatmul.mubr.msk.f32.gmra.mxu0 %vm500_vm3, %v7223_v11 }
 0x46f   :  { %v4200_v19 = vadd.f32 %v4182_v27, %v12049_v31  ;;  %v4394_v32 = vpop.f32.mrf.mxu1  ;;  %8918 = vmatprep.mubr.msk.f32.mxu0 %vm9077_vm2, %v9075_v0  ;;  %v7225_v31 = vld [vmem:[%s12589_s3 + $0xb60] sm:$0xff] }
 0x470   :  { %v12261_v20 = vadd.f32 %v4394_v32, %v4198_v63  ;;  %v8561_v41 = vpop.f32.mrf.mxu0 }
 0x471   :  { %v8604_v28 = vpop.f32.mrf.mxu1 }
 0x472   :  { %v4556_v37 = vpop.f32.mrf.mxu0  ;;  %8919 = vmatmul.mubr.msk.f32.gmra.mxu0 %vm500_vm3, %v7224_v17 }
 0x473   :  { %v4399_v39 = vpop.f32.mrf.mxu1  ;;  %v4630_v33 = vadd.f32 %v4556_v37, %v12064_v34  ;;  %8921 = vmatprep.mubr.msk.f32.mxu0 %vm9077_vm2, %v9075_v0  ;;  %v7226_v34 = vld [vmem:[%s12589_s3 + $0xb68] sm:$0xff] }
 0x474   :  { %v12270_v36 = vadd.f32 %v4399_v39, %v4199_v12  ;;  %v8617_v46 = vpop.f32.mrf.mxu0 }
 0x475   :  { %v8607_v29 = vpop.f32.mrf.mxu1 }
 0x476   :  { %v4561_v35 = vpop.f32.mrf.mxu0  ;;  %8922 = vmatmul.mubr.msk.f32.gmra.mxu0 %vm500_vm3, %v7225_v31 }
 0x477   :  { %v4404_v40 = vpop.f32.mrf.mxu1  ;;  %v4631_v38 = vadd.f32 %v4561_v35, %v12079_v43  ;;  %8924 = vmatprep.mubr.msk.f32.mxu0 %vm9077_vm2, %v9075_v0  ;;  %v7227_v43 = vld [vmem:[%s12589_s3 + $0xb70] sm:$0xff] }
 0x478   :  { %v12279_v51 = vadd.f32 %v4404_v40, %v4200_v19  ;;  %v8620_v53 = vpop.f32.mrf.mxu0 }
 0x479   :  { %v8610_v54 = vpop.f32.mrf.mxu1 }
 0x47a   :  { %v4566_v44 = vpop.f32.mrf.mxu0  ;;  %8925 = vmatmul.mubr.msk.f32.gmra.mxu0 %vm500_vm3, %v7226_v34 }
 0x47b   :  { %v4632_v50 = vadd.f32 %v4566_v44, %v12094_v52  ;;  %v4778_v48 = vpop.f32.mrf.mxu1  ;;  %8927 = vmatprep.mubr.msk.f32.mxu0 %vm9077_vm2, %v9075_v0  ;;  %v7228_v52 = vld [vmem:[%s12589_s3 + $0xb78] sm:$0xff] }
 0x47c   :  { %v12288_v49 = vadd.f32 %v4778_v48, %v4630_v33  ;;  %v8623_v47 = vpop.f32.mrf.mxu0 }
 0x47d   :  { %v8666_v10 = vpop.f32.mrf.mxu1 }
 0x47e   :  { %v4571_v62 = vpop.f32.mrf.mxu0  ;;  %8928 = vmatmul.mubr.msk.f32.gmra.mxu0 %vm500_vm3, %v7227_v43 }
 0x47f   :  { %v4633_v58 = vadd.f32 %v4571_v62, %v12109_v14  ;;  %v4783_v55 = vpop.f32.mrf.mxu1  ;;  %8930 = vmatprep.mubr.msk.f32.mxu0 %vm9077_vm2, %v9075_v0  ;;  %v7229_v14 = vld [vmem:[%s12589_s3 + $0xb80] sm:$0xff] }
 0x480   :  { %v12297_v1 = vadd.f32 %v4783_v55, %v4631_v38  ;;  %v8626_v60 = vpop.f32.mrf.mxu0 }
 0x481   :  { %v8669_v18 = vpop.f32.mrf.mxu1 }
 0x482   :  { %v4576_v59 = vpop.f32.mrf.mxu0  ;;  %8931 = vmatmul.mubr.msk.f32.gmra.mxu0 %vm500_vm3, %v7228_v52 }
 0x483   :  { %v4634_v56 = vadd.f32 %v4576_v59, %v12124_v15  ;;  %v4788_v25 = vpop.f32.mrf.mxu1  ;;  %8933 = vmatprep.mubr.msk.f32.mxu0 %vm9077_vm2, %v9075_v0  ;;  %v7230_v15 = vld [vmem:[%s12589_s3 + $0xb88] sm:$0xff] }
 0x484   :  { %v12306_v4 = vadd.f32 %v4788_v25, %v4632_v50  ;;  %v8629_v5 = vpop.f32.mrf.mxu0 }
 0x485   :  { %v8672_v61 = vpop.f32.mrf.mxu1 }
 0x486   :  { %v4581_v63 = vpop.f32.mrf.mxu0  ;;  %8934 = vmatmul.mubr.msk.f32.gmra.mxu0 %vm500_vm3, %v7229_v14 }
 0x487   :  { %v4635_v2 = vadd.f32 %v4581_v63, %v12142_v23  ;;  %v4793_v9 = vpop.f32.mrf.mxu1  ;;  %8936 = vmatprep.mubr.msk.f32.mxu0 %vm9077_vm2, %v9075_v0  ;;  %v7231_v23 = vld [vmem:[%s12589_s3 + $0xb90] sm:$0xff] }
 0x488   :  { %v12315_v13 = vadd.f32 %v4793_v9, %v4633_v58  ;;  %v8632_v8 = vpop.f32.mrf.mxu0 }
 0x489   :  { %v8675_v16 = vpop.f32.mrf.mxu1 }
 0x48a   :  { %v4586_v6 = vpop.f32.mrf.mxu0  ;;  %8937 = vmatmul.mubr.msk.f32.gmra.mxu0 %vm500_vm3, %v7230_v15 }
 0x48b   :  { %v4636_v3 = vadd.f32 %v4586_v6, %v12160_v30  ;;  %v4798_v12 = vpop.f32.mrf.mxu1  ;;  %8939 = vmatprep.mubr.msk.f32.mxu0 %vm9077_vm2, %v9075_v0  ;;  %v7232_v30 = vld [vmem:[%s12589_s3 + $0xb98] sm:$0xff] }
 0x48c   :  { %v12324_v22 = vadd.f32 %v4798_v12, %v4634_v56  ;;  %v8635_v11 = vpop.f32.mrf.mxu0 }
 0x48d   :  { %v8678_v26 = vpop.f32.mrf.mxu1 }
 0x48e   :  { %v4591_v21 = vpop.f32.mrf.mxu0  ;;  %8940 = vmatmul.mubr.msk.f32.gmra.mxu0 %vm500_vm3, %v7231_v23 }
 0x48f   :  { %v4637_v27 = vadd.f32 %v4591_v21, %v12178_v42  ;;  %v4803_v19 = vpop.f32.mrf.mxu1  ;;  %8942 = vmatprep.mubr.msk.f32.mxu0 %vm9077_vm2, %v9075_v0  ;;  %v7233_v42 = vld [vmem:[%s12589_s3 + $0xba0] sm:$0xff] }
 0x490   :  { %v12333_v32 = vadd.f32 %v4803_v19, %v4635_v2  ;;  %v8638_v17 = vpop.f32.mrf.mxu0 }
 0x491   :  { %v8681_v41 = vpop.f32.mrf.mxu1 }
 0x492   :  { %v4596_v28 = vpop.f32.mrf.mxu0  ;;  %8943 = vmatmul.mubr.msk.f32.gmra.mxu0 %vm500_vm3, %v7232_v30 }
 0x493   :  { %v4638_v37 = vadd.f32 %v4596_v28, %v12196_v45  ;;  %v4808_v39 = vpop.f32.mrf.mxu1  ;;  %8945 = vmatprep.mubr.msk.f32.mxu0 %vm9077_vm2, %v9075_v0  ;;  %v7234_v45 = vld [vmem:[%s12589_s3 + $0xba8] sm:$0xff] }
 0x494   :  { %v12342_v33 = vadd.f32 %v4808_v39, %v4636_v3  ;;  %v8641_v31 = vpop.f32.mrf.mxu0 }
 0x495   :  { %v8684_v46 = vpop.f32.mrf.mxu1 }
 0x496   :  { %v4601_v29 = vpop.f32.mrf.mxu0  ;;  %8946 = vmatmul.mubr.msk.f32.gmra.mxu0 %vm500_vm3, %v7233_v42 }
 0x497   :  { %v4639_v35 = vadd.f32 %v4601_v29, %v12214_v57  ;;  %v4813_v40 = vpop.f32.mrf.mxu1  ;;  %8948 = vmatprep.mubr.msk.f32.mxu0 %vm9077_vm2, %v9075_v0  ;;  %v7235_v57 = vld [vmem:[%s12589_s3 + $0xbb0] sm:$0xff] }
 0x498   :  { %v12351_v38 = vadd.f32 %v4813_v40, %v4637_v27  ;;  %v8644_v34 = vpop.f32.mrf.mxu0 }
 0x499   :  { %v8687_v53 = vpop.f32.mrf.mxu1 }
 0x49a   :  { %v4606_v54 = vpop.f32.mrf.mxu0  ;;  %8949 = vmatmul.mubr.msk.f32.gmra.mxu0 %vm500_vm3, %v7234_v45 }
 0x49b   :  { %v4640_v44 = vadd.f32 %v4606_v54, %v12232_v7  ;;  %v4818_v50 = vpop.f32.mrf.mxu1  ;;  %8951 = vmatprep.mubr.msk.f32.mxu0 %vm9077_vm2, %v9075_v0 }
 0x49c   :  { %v12360_v48 = vadd.f32 %v4818_v50, %v4638_v37  ;;  %v8647_v43 = vpop.f32.mrf.mxu0 }
 0x49d   :  { %v8690_v47 = vpop.f32.mrf.mxu1 }
 0x49e   :  { %v4611_v10 = vpop.f32.mrf.mxu0  ;;  %8952 = vmatmul.mubr.msk.f32.gmra.mxu0 %vm500_vm3, %v7235_v57 }
 0x49f   :  { %v4641_v62 = vadd.f32 %v4611_v10, %v12250_v24  ;;  %v4823_v58 = vpop.f32.mrf.mxu1 }
 0x4a0   :  { %v12364_v55 = vadd.f32 %v4823_v58, %v4639_v35  ;;  %v8650_v7 = vpop.f32.mrf.mxu0 }
 0x4a1   :  { %v8693_v52 = vpop.f32.mrf.mxu1 }
 0x4a2   :  { %v4616_v60 = vpop.f32.mrf.mxu0 }
 0x4a3   :  { %v4642_v18 = vadd.f32 %v4616_v60, %v12261_v20  ;;  %v4828_v59 = vpop.f32.mrf.mxu1 }
 0x4a4   :  { %v12367_v56 = vadd.f32 %v4828_v59, %v4640_v44  ;;  %v8653_v25 = vpop.f32.mrf.mxu0 }
 0x4a5   :  { %v8696_v14 = vpop.f32.mrf.mxu1 }
 0x4a6   :  { %v4621_v5 = vpop.f32.mrf.mxu0 }
 0x4a7   :  { %v4643_v61 = vadd.f32 %v4621_v5, %v12270_v36  ;;  %v4833_v63 = vpop.f32.mrf.mxu1 }
 0x4a8   :  { %v12370_v2 = vadd.f32 %v4833_v63, %v4641_v62  ;;  %v8656_v24 = vpop.f32.mrf.mxu0 }
 0x4a9   :  { %v8699_v9 = vpop.f32.mrf.mxu1 }
 0x4aa   :  { %v4626_v15 = vpop.f32.mrf.mxu0 }
 0x4ab   :  { %v4644_v8 = vadd.f32 %v4626_v15, %v12279_v51  ;;  %v4838_v16 = vpop.f32.mrf.mxu1 }
 0x4ac   :  { %v12373_v6 = vadd.f32 %v4838_v16, %v4642_v18  ;;  %v8659_v20 = vpop.f32.mrf.mxu0 }
 0x4ad   :  { %v8702_v3 = vpop.f32.mrf.mxu1 }
 0x4ae   :  { %v5000_v12 = vpop.f32.mrf.mxu0 }
 0x4af   :  { %v4843_v23 = vpop.f32.mrf.mxu1  ;;  %v5074_v11 = vadd.f32 %v5000_v12, %v12288_v49 }
 0x4b0   :  { %v12376_v26 = vadd.f32 %v4843_v23, %v4643_v61  ;;  %v8715_v36 = vpop.f32.mrf.mxu0 }
 0x4b1   :  { %v8705_v21 = vpop.f32.mrf.mxu1 }
 0x4b2   :  { %v5005_v27 = vpop.f32.mrf.mxu0 }
 0x4b3   :  { %v4848_v19 = vpop.f32.mrf.mxu1  ;;  %v5075_v30 = vadd.f32 %v5005_v27, %v12297_v1 }
 0x4b4   :  { %v12379_v17 = vadd.f32 %v4848_v19, %v4644_v8  ;;  %v8718_v51 = vpop.f32.mrf.mxu0 }
 0x4b5   :  { %v8708_v41 = vpop.f32.mrf.mxu1 }
 0x4b6   :  { %v5010_v28 = vpop.f32.mrf.mxu0 }
 0x4b7   :  { %v5076_v37 = vadd.f32 %v5010_v28, %v12306_v4  ;;  %v5222_v39 = vpop.f32.mrf.mxu1 }
 0x4b8   :  { %v12382_v42 = vadd.f32 %v5222_v39, %v5074_v11  ;;  %v8721_v31 = vpop.f32.mrf.mxu0 }
 0x4b9   :  { %v8764_v49 = vpop.f32.mrf.mxu1 }
 0x4ba   :  { %v5015_v46 = vpop.f32.mrf.mxu0 }
 0x4bb   :  { %v5077_v29 = vadd.f32 %v5015_v46, %v12315_v13  ;;  %v5227_v35 = vpop.f32.mrf.mxu1 }
 0x4bc   :  { %v12385_v40 = vadd.f32 %v5227_v35, %v5075_v30  ;;  %v8724_v45 = vpop.f32.mrf.mxu0 }
 0x4bd   :  { %v8767_v1 = vpop.f32.mrf.mxu1 }
 0x4be   :  { %v5020_v34 = vpop.f32.mrf.mxu0 }
 0x4bf   :  { %v5078_v53 = vadd.f32 %v5020_v34, %v12324_v22  ;;  %v5232_v54 = vpop.f32.mrf.mxu1 }
 0x4c0   :  { %v12388_v44 = vadd.f32 %v5232_v54, %v5076_v37  ;;  %v8727_v4 = vpop.f32.mrf.mxu0 }
 0x4c1   :  { %v8770_v50 = vpop.f32.mrf.mxu1 }
 0x4c2   :  { %v5025_v57 = vpop.f32.mrf.mxu0 }
 0x4c3   :  { %v5079_v43 = vadd.f32 %v5025_v57, %v12333_v32  ;;  %v5237_v47 = vpop.f32.mrf.mxu1 }
 0x4c4   :  { %v12391_v10 = vadd.f32 %v5237_v47, %v5077_v29  ;;  %v8730_v13 = vpop.f32.mrf.mxu0 }
 0x4c5   :  { %v8773_v62 = vpop.f32.mrf.mxu1 }
 0x4c6   :  { %v5030_v58 = vpop.f32.mrf.mxu0 }
 0x4c7   :  { %v5080_v7 = vadd.f32 %v5030_v58, %v12342_v33  ;;  %v5242_v52 = vpop.f32.mrf.mxu1 }
 0x4c8   :  { %v12394_v60 = vadd.f32 %v5242_v52, %v5078_v53  ;;  %v8733_v22 = vpop.f32.mrf.mxu0 }
 0x4c9   :  { %v8776_v18 = vpop.f32.mrf.mxu1 }
 0x4ca   :  { %v5035_v59 = vpop.f32.mrf.mxu0 }
 0x4cb   :  { %v5081_v25 = vadd.f32 %v5035_v59, %v12351_v38  ;;  %v5247_v14 = vpop.f32.mrf.mxu1 }
 0x4cc   :  { %v12397_v5 = vadd.f32 %v5247_v14, %v5079_v43  ;;  %v8736_v32 = vpop.f32.mrf.mxu0 }
 0x4cd   :  { %v8779_v61 = vpop.f32.mrf.mxu1 }
 0x4ce   :  { %v5040_v63 = vpop.f32.mrf.mxu0 }
 0x4cf   :  { %v5082_v24 = vadd.f32 %v5040_v63, %v12360_v48  ;;  %v5252_v9 = vpop.f32.mrf.mxu1 }
 0x4d0   :  { %v12400_v15 = vadd.f32 %v5252_v9, %v5080_v7  ;;  %v8739_v33 = vpop.f32.mrf.mxu0 }
 0x4d1   :  { %v8782_v8 = vpop.f32.mrf.mxu1 }
 0x4d2   :  { %v5045_v16 = vpop.f32.mrf.mxu0 }
 0x4d3   :  { %v5083_v20 = vadd.f32 %v5045_v16, %v12364_v55  ;;  %v5257_v3 = vpop.f32.mrf.mxu1 }
 0x4d4   :  { %v12403_v12 = vadd.f32 %v5257_v3, %v5081_v25  ;;  %v8742_v38 = vpop.f32.mrf.mxu0 }
 0x4d5   :  { %v8785_v23 = vpop.f32.mrf.mxu1 }
 0x4d6   :  { %v5050_v11 = vpop.f32.mrf.mxu0 }
 0x4d7   :  { %v5084_v36 = vadd.f32 %v5050_v11, %v12367_v56  ;;  %v5262_v21 = vpop.f32.mrf.mxu1 }
 0x4d8   :  { %v12406_v27 = vadd.f32 %v5262_v21, %v5082_v24  ;;  %v8745_v48 = vpop.f32.mrf.mxu0 }
 0x4d9   :  { %v8788_v19 = vpop.f32.mrf.mxu1 }
 0x4da   :  { %v5055_v30 = vpop.f32.mrf.mxu0 }
 0x4db   :  { %v5085_v51 = vadd.f32 %v5055_v30, %v12370_v2  ;;  %v5267_v41 = vpop.f32.mrf.mxu1 }
 0x4dc   :  { %v12409_v28 = vadd.f32 %v5267_v41, %v5083_v20  ;;  %v8748_v55 = vpop.f32.mrf.mxu0 }
 0x4dd   :  { %v8791_v37 = vpop.f32.mrf.mxu1 }
 0x4de   :  { %v5060_v39 = vpop.f32.mrf.mxu0 }
 0x4df   :  { %v5086_v31 = vadd.f32 %v5060_v39, %v12373_v6  ;;  %v5272_v49 = vpop.f32.mrf.mxu1 }
 0x4e0   :  { %v12412_v46 = vadd.f32 %v5272_v49, %v5084_v36  ;;  %v8751_v56 = vpop.f32.mrf.mxu0 }
 0x4e1   :  { %v8794_v29 = vpop.f32.mrf.mxu1 }
 0x4e2   :  { %v5065_v35 = vpop.f32.mrf.mxu0 }
 0x4e3   :  { %v5087_v45 = vadd.f32 %v5065_v35, %v12376_v26  ;;  %v5277_v1 = vpop.f32.mrf.mxu1 }
 0x4e4   :  { %v12415_v34 = vadd.f32 %v5277_v1, %v5085_v51  ;;  %v8754_v2 = vpop.f32.mrf.mxu0 }
 0x4e5   :  { %v8797_v53 = vpop.f32.mrf.mxu1 }
 0x4e6   :  { %v5070_v54 = vpop.f32.mrf.mxu0 }
 0x4e7   :  { %v5088_v4 = vadd.f32 %v5070_v54, %v12379_v17  ;;  %v5282_v50 = vpop.f32.mrf.mxu1 }
 0x4e8   :  { %v12418_v57 = vadd.f32 %v5282_v50, %v5086_v31  ;;  %v8757_v6 = vpop.f32.mrf.mxu0 }
 0x4e9   :  { %v8800_v43 = vpop.f32.mrf.mxu1 }
 0x4ea   :  { %v5444_v47 = vpop.f32.mrf.mxu0 }
 0x4eb   :  { %v5287_v13 = vpop.f32.mrf.mxu1  ;;  %v5518_v62 = vadd.f32 %v5444_v47, %v12382_v42 }
 0x4ec   :  { %v12421_v58 = vadd.f32 %v5287_v13, %v5087_v45  ;;  %v8813_v26 = vpop.f32.mrf.mxu0 }
 0x4ed   :  { %v8803_v7 = vpop.f32.mrf.mxu1 }
 0x4ee   :  { %v5449_v52 = vpop.f32.mrf.mxu0 }
 0x4ef   :  { %v5292_v22 = vpop.f32.mrf.mxu1  ;;  %v5519_v18 = vadd.f32 %v5449_v52, %v12385_v40 }
 0x4f0   :  { %v12424_v59 = vadd.f32 %v5292_v22, %v5088_v4  ;;  %v8816_v17 = vpop.f32.mrf.mxu0 }
 0x4f1   :  { %v8806_v25 = vpop.f32.mrf.mxu1 }
 0x4f2   :  { %v5454_v14 = vpop.f32.mrf.mxu0 }
 0x4f3   :  { %v5520_v32 = vadd.f32 %v5454_v14, %v12388_v44  ;;  %v5666_v61 = vpop.f32.mrf.mxu1 }
 0x4f4   :  { %v12427_v63 = vadd.f32 %v5666_v61, %v5518_v62  ;;  %v8819_v24 = vpop.f32.mrf.mxu0 }
 0x4f5   :  { %v8862_v42 = vpop.f32.mrf.mxu1 }
 0x4f6   :  { %v5459_v9 = vpop.f32.mrf.mxu0 }
 0x4f7   :  { %v5521_v33 = vadd.f32 %v5459_v9, %v12391_v10  ;;  %v5671_v8 = vpop.f32.mrf.mxu1 }
 0x4f8   :  { %v12430_v16 = vadd.f32 %v5671_v8, %v5519_v18  ;;  %v8822_v20 = vpop.f32.mrf.mxu0 }
 0x4f9   :  { %v8865_v40 = vpop.f32.mrf.mxu1 }
 0x4fa   :  { %v5464_v3 = vpop.f32.mrf.mxu0 }
 0x4fb   :  { %v5522_v38 = vadd.f32 %v5464_v3, %v12394_v60  ;;  %v5676_v23 = vpop.f32.mrf.mxu1 }
 0x4fc   :  { %v12433_v11 = vadd.f32 %v5676_v23, %v5520_v32  ;;  %v8825_v44 = vpop.f32.mrf.mxu0 }
 0x4fd   :  { %v8868_v36 = vpop.f32.mrf.mxu1 }
 0x4fe   :  { %v5469_v21 = vpop.f32.mrf.mxu0 }
 0x4ff   :  { %v5523_v48 = vadd.f32 %v5469_v21, %v12397_v5  ;;  %v5681_v19 = vpop.f32.mrf.mxu1 }
 0x500   :  { %v12436_v30 = vadd.f32 %v5681_v19, %v5521_v33  ;;  %v8828_v10 = vpop.f32.mrf.mxu0 }
 0x501   :  { %v8871_v51 = vpop.f32.mrf.mxu1 }
 0x502   :  { %v5474_v41 = vpop.f32.mrf.mxu0 }
 0x503   :  { %v5524_v55 = vadd.f32 %v5474_v41, %v12400_v15  ;;  %v5686_v37 = vpop.f32.mrf.mxu1 }
 0x504   :  { %v12439_v39 = vadd.f32 %v5686_v37, %v5522_v38  ;;  %v8831_v60 = vpop.f32.mrf.mxu0 }
 0x505   :  { %v8874_v31 = vpop.f32.mrf.mxu1 }
 0x506   :  { %v5479_v49 = vpop.f32.mrf.mxu0 }
 0x507   :  { %v5525_v56 = vadd.f32 %v5479_v49, %v12403_v12  ;;  %v5691_v29 = vpop.f32.mrf.mxu1 }
 0x508   :  { %v12442_v35 = vadd.f32 %v5691_v29, %v5523_v48  ;;  %v8834_v5 = vpop.f32.mrf.mxu0 }
 0x509   :  { %v8877_v45 = vpop.f32.mrf.mxu1 }
 0x50a   :  { %v5484_v1 = vpop.f32.mrf.mxu0 }
 0x50b   :  { %v5526_v2 = vadd.f32 %v5484_v1, %v12406_v27  ;;  %v5696_v53 = vpop.f32.mrf.mxu1 }
 0x50c   :  { %v12445_v54 = vadd.f32 %v5696_v53, %v5524_v55  ;;  %v8837_v15 = vpop.f32.mrf.mxu0 }
 0x50d   :  { %v8880_v4 = vpop.f32.mrf.mxu1 }
 0x50e   :  { %v5489_v50 = vpop.f32.mrf.mxu0 }
 0x50f   :  { %v5527_v6 = vadd.f32 %v5489_v50, %v12409_v28  ;;  %v5701_v43 = vpop.f32.mrf.mxu1 }
 0x510   :  { %v12448_v47 = vadd.f32 %v5701_v43, %v5525_v56  ;;  %v8840_v12 = vpop.f32.mrf.mxu0 }
 0x511   :  { %v8883_v13 = vpop.f32.mrf.mxu1 }
 0x512   :  { %v5494_v62 = vpop.f32.mrf.mxu0 }
 0x513   :  { %v5528_v26 = vadd.f32 %v5494_v62, %v12412_v46  ;;  %v5706_v7 = vpop.f32.mrf.mxu1  ;;  %v6065_v62 = vpop.permute.xlu0 %6064 }
 0x514   :  { %v12451_v52 = vadd.f32 %v5706_v7, %v5526_v2  ;;  %v8843_v27 = vpop.f32.mrf.mxu0 }
 0x515   :  { %v8886_v22 = vpop.f32.mrf.mxu1 }
 0x516   :  { %v5499_v18 = vpop.f32.mrf.mxu0 }
 0x517   :  { %v5529_v17 = vadd.f32 %v5499_v18, %v12415_v34  ;;  %v5711_v25 = vpop.f32.mrf.mxu1  ;;  %v6055_v22 = vpop.permute.xlu0 %6054 }
 0x518   :  { %v12454_v14 = vadd.f32 %v5711_v25, %v5527_v6  ;;  %v8846_v28 = vpop.f32.mrf.mxu0 }
 0x519   :  { %v8889_v32 = vpop.f32.mrf.mxu1 }
 0x51a   :  { %v5504_v61 = vpop.f32.mrf.mxu0 }
 0x51b   :  { %v5530_v24 = vadd.f32 %v5504_v61, %v12418_v57  ;;  %v5716_v42 = vpop.f32.mrf.mxu1 }
 0x51c   :  { %v12457_v9 = vadd.f32 %v5716_v42, %v5528_v26  ;;  %v8849_v46 = vpop.f32.mrf.mxu0 }
 0x51d   :  { %v8892_v33 = vpop.f32.mrf.mxu1  ;;  %v6045_v46 = vpop.permute.xlu0 %6044 }
 0x51e   :  { %v5509_v8 = vpop.f32.mrf.mxu0 }
 0x51f   :  { %v5721_v20 = vpop.f32.mrf.mxu1  ;;  %v5531_v28 = vadd.f32 %v5509_v8, %v12421_v58 }
 0x520   :  { %v5751_v40 = vadd.f32 %v5721_v20, %v5529_v17  ;;  %v8852_v3 = vpop.f32.mrf.mxu0 }
 0x521   :  { %v8895_v38 = vpop.f32.mrf.mxu1 }
 0x522   :  { %v5514_v23 = vpop.f32.mrf.mxu0 }
 0x523   :  { %v5726_v34 = vpop.f32.mrf.mxu1  ;;  %v5532_v61 = vadd.f32 %v5514_v23, %v12424_v59 }
 0x524   :  { %v8855_v44 = vpop.f32.mrf.mxu0  ;;  %v5752_v20 = vadd.f32 %v5726_v34, %v5530_v24 }
 0x525   :  { %v8898_v36 = vpop.f32.mrf.mxu1 }
 0x526   :  { %v5888_v21 = vpop.f32.mrf.mxu0 }
 0x527   :  { %v5731_v48 = vpop.f32.mrf.mxu1  ;;  %v12460_v19 = vadd.f32 %v5888_v21, %v12427_v63 }
 0x528   :  { %v8911_v57 = vpop.f32.mrf.mxu0  ;;  %v5753_v42 = vadd.f32 %v5731_v48, %v5531_v28  ;;  %v6099_v28 = vld [vmem:[%s12592_s5 + $0x10] sm:$0xff] }
 0x529   :  { %v8901_v10 = vpop.f32.mrf.mxu1 }
 0x52a   :  { %v5893_v51 = vpop.f32.mrf.mxu0 }
 0x52b   :  { %v5736_v41 = vpop.f32.mrf.mxu1  ;;  %v12463_v55 = vadd.f32 %v5893_v51, %v12430_v16 }
 0x52c   :  { %v8914_v37 = vpop.f32.mrf.mxu0  ;;  %v5754_v3 = vadd.f32 %v5736_v41, %v5532_v61  ;;  %v6101_v61 = vld [vmem:[%s12592_s5 + $0x20] sm:$0xff] }
 0x52d   :  { %v8904_v60 = vpop.f32.mrf.mxu1 }
 0x52e   :  { %v5898_v31 = vpop.f32.mrf.mxu0 }
 0x52f   :  { %v12466_v49 = vadd.f32 %v5898_v31, %v12433_v11  ;;  %v6035_v31 = vpop.permute.xlu0 %6034 }
 0x530   :  { %v8917_v56 = vpop.f32.mrf.mxu0 }
 0x532   :  { %v5903_v29 = vpop.f32.mrf.mxu0 }
 0x533   :  { %v12469_v5 = vadd.f32 %v5903_v29, %v12436_v30  ;;  %v6060_v30 = vpop.permute.xlu1 %6059 }
 0x534   :  { %v8920_v63 = vpop.f32.mrf.mxu0 }
 0x536   :  { %v12471_v45 = vpop.f32.mrf.mxu0 }
 0x537   :  { %v6050_v17 = vpop.permute.xlu1 %6049 }
 0x538   :  { %v8923_v1 = vpop.f32.mrf.mxu0 }
 0x53a   :  { %v12473_v2 = vpop.f32.mrf.mxu0 }
 0x53b   :  { %v6040_v44 = vpop.permute.xlu1 %6039 }
 0x53c   :  { %v8926_v53 = vpop.f32.mrf.mxu0 }
 0x53e   :  { %v5918_v16 = vpop.f32.mrf.mxu0 }
 0x53f   :  { %v6030_v59 = vpop.permute.xlu1 %6029 }
 0x540   :  { %v8929_v15 = vpop.f32.mrf.mxu0 }
 0x542   :  { %v5923_v4 = vpop.f32.mrf.mxu0 }
 0x543   :  { %v6020_v53 = vpop.permute.xlu1 %6019 }
 0x544   :  { %v8932_v50 = vpop.f32.mrf.mxu0 }
 0x546   :  { %v5928_v6 = vpop.f32.mrf.mxu0 }
 0x547   :  { %v5970_v34 = vadd.f32 %v5928_v6, %v12451_v52  ;;  %v5967_v52 = vadd.f32 %v12473_v2, %v12442_v35 }
 0x548   :  { %v8935_v43 = vpop.f32.mrf.mxu0 }
 0x549   :  { %v6075_v15 = vadd.f32 %v6035_v31, %v5970_v34 }
 0x54a   :  { %v5933_v11 = vpop.f32.mrf.mxu0 }
 0x54b   :  { %v5971_v23 = vadd.f32 %v5933_v11, %v12454_v14  ;;  %v5968_v14 = vadd.f32 %v5918_v16, %v12445_v54  ;;  %v6010_v54 = vpop.permute.xlu1 %6009  ;;  %v6072_v16 = vadd.f32 %v6020_v53, %v5967_v52 }
 0x54c   :  { %v8938_v12 = vpop.f32.mrf.mxu0 }
 0x54d   :  { %v6076_v63 = vadd.f32 %v6040_v44, %v5971_v23  ;;  %v6090_v12 = vmax.f32 %v6075_v15, 0.0  ;;  %v6339_v44 = vld [vmem:[%s12593_s7] sm:$0xff] }
 0x54e   :  { %v5938_v13 = vpop.f32.mrf.mxu0 }
 0x54f   :  { %v5972_v58 = vadd.f32 %v5938_v13, %v12457_v9  ;;  %v5969_v9 = vadd.f32 %v5923_v4, %v12448_v47  ;;  %v6091_v43 = vmax.f32 %v6076_v63, 0.0  ;;  %v5966_v4 = vadd.f32 %v12471_v45, %v12439_v39  ;;  %v6000_v45 = vpop.permute.xlu1 %5999 }
 0x550   :  { %v8941_v26 = vpop.f32.mrf.mxu0  ;;  %v6087_v39 = vmax.f32 %v6072_v16, 0.0 }
 0x551   :  { %v6077_v41 = vadd.f32 %v6045_v46, %v5972_v58  ;;  %v6074_v6 = vadd.f32 %v6030_v59, %v5969_v9  ;;  %v6070_v26 = vadd.f32 %v6010_v54, %v12469_v5  ;;  %v6103_v46 = vld [vmem:[%s12592_s5 + $0x30] sm:$0xff] }
 0x552   :  { %v5943_v7 = vpop.f32.mrf.mxu0 }
 0x553   :  { %v5973_v51 = vadd.f32 %v5943_v7, %v5751_v40  ;;  %v6025_v40 = vpop.permute.xlu0 %6024  ;;  %v6092_v50 = vmax.f32 %v6077_v41, 0.0  ;;  %v6089_v13 = vmax.f32 %v6074_v6, 0.0 }
 0x554   :  { %v8944_v27 = vpop.f32.mrf.mxu0  ;;  %v6073_v11 = vadd.f32 %v6025_v40, %v5968_v14 }
 0x555   :  { %v6078_v48 = vadd.f32 %v6050_v17, %v5973_v51  ;;  %v6068_v27 = vadd.f32 %v6000_v45, %v12463_v55  ;;  %v6097_v55 = vld [vmem:[%s12592_s5] sm:$0xff] }
 0x556   :  { %v5948_v18 = vpop.f32.mrf.mxu0  ;;  %v6088_v2 = vmax.f32 %v6073_v11, 0.0 }
 0x557   :  { %v5974_v21 = vadd.f32 %v5948_v18, %v5752_v20  ;;  %v6093_v1 = vmax.f32 %v6078_v48, 0.0  ;;  %v6015_v47 = vpop.permute.xlu0 %6014  ;;  %v6105_v20 = vld [vmem:[%s12592_s5 + $0x40] sm:$0xff]  ;;  %v6172_v48 = vpop.permute.xlu1 %6171 }
 0x558   :  { %v8947_v25 = vpop.f32.mrf.mxu0  ;;  %v6071_v35 = vadd.f32 %v6015_v47, %v5966_v4 }
 0x559   :  { %v6079_v8 = vadd.f32 %v6055_v22, %v5974_v21  ;;  %v6085_v22 = vmax.f32 %v6070_v26, 0.0  ;;  %v6083_v25 = vmax.f32 %v6068_v27, 0.0 }
 0x55a   :  { %v5953_v32 = vpop.f32.mrf.mxu0  ;;  %v6086_v7 = vmax.f32 %v6071_v35, 0.0 }
 0x55b   :  { %v5975_v38 = vadd.f32 %v5953_v32, %v5753_v42  ;;  %v6094_v29 = vmax.f32 %v6079_v8, 0.0  ;;  %v6100_v32 = vld [vmem:[%s12592_s5 + $0x18] sm:$0xff]  ;;  %v6102_v42 = vld [vmem:[%s12592_s5 + $0x28] sm:$0xff]  ;;  %v6162_v40 = vpop.permute.xlu1 %6161 }
 0x55c   :  { %v8950_v33 = vpop.f32.mrf.mxu0 }
 0x55d   :  { %v6080_v37 = vadd.f32 %v6060_v30, %v5975_v38  ;;  %v6104_v33 = vld [vmem:[%s12592_s5 + $0x38] sm:$0xff]  ;;  %v6107_v38 = vld [vmem:[%s12592_s5 + $0x50] sm:$0xf] }
 0x55e   :  { %v5958_v36 = vpop.f32.mrf.mxu0 }
 0x55f   :  { %v5976_v57 = vadd.f32 %v5958_v36, %v5754_v3  ;;  %v6095_v24 = vmax.f32 %v6080_v37, 0.0  ;;  %v6106_v3 = vld [vmem:[%s12592_s5 + $0x48] sm:$0xff]  ;;  %v6152_v14 = vpop.permute.xlu1 %6151 }
 0x560   :  { %v8953_v10 = vpop.f32.mrf.mxu0 }
 0x561   :  { %v6081_v60 = vadd.f32 %v6065_v62, %v5976_v57  ;;  %v6005_v62 = vpop.permute.xlu0 %6004 }
 0x562   :  { %v6069_v30 = vadd.f32 %v6005_v62, %v12466_v49 }
 0x563   :  { %v6096_v56 = vmax.f32 %v6081_v60, 0.0  ;;  %v6142_v54 = vpop.permute.xlu1 %6141 }
 0x564   :  { %v6084_v17 = vmax.f32 %v6069_v30, 0.0 }
 0x565   :  { %8955 = vmatpush3.msra.mxu1 %v6096_v56  ;;  %v5995_v18 = vpop.permute.xlu0 %5994 }
 0x566   :  { %8956 = vmatprep.subr.mxu1 %v9075_v0  ;;  %v6067_v5 = vadd.f32 %v5995_v18, %v12460_v19  ;;  %v6098_v19 = vld [vmem:[%s12592_s5 + $0x8] sm:$0xff] }
 0x567   :  { %8957 = vmatpush3.msra.mxu1 %v6095_v24  ;;  %v6132_v45 = vpop.permute.xlu1 %6131 }
 0x568   :  { %8958 = vmatprep.subr.mxu1 %v9075_v0  ;;  %v6082_v49 = vmax.f32 %v6067_v5, 0.0 }
 0x569   :  { %8959 = vmatpush3.msra.mxu1 %v6094_v29  ;;  %v6167_v41 = vpop.permute.xlu0 %6166 }
 0x56a   :  { %8960 = vmatprep.subr.mxu1 %v9075_v0 }
 0x56b   :  { %8961 = vmatpush3.msra.mxu1 %v6093_v1 }
 0x56c   :  { %8962 = vmatprep.subr.mxu1 %v9075_v0 }
 0x56d   :  { %8963 = vmatpush3.msra.mxu1 %v6092_v50  ;;  %v6157_v1 = vpop.permute.xlu0 %6156 }
 0x56e   :  { %8964 = vmatprep.subr.mxu1 %v9075_v0 }
 0x56f   :  { %8965 = vmatpush3.msra.mxu1 %v6091_v43 }
 0x570   :  { %8966 = vmatprep.subr.mxu1 %v9075_v0 }
 0x571   :  { %8967 = vmatpush3.msra.mxu1 %v6090_v12  ;;  %v6147_v4 = vpop.permute.xlu0 %6146 }
 0x572   :  { %8968 = vmatprep.subr.mxu1 %v9075_v0 }
 0x573   :  { %8969 = vmatpush3.msra.mxu1 %v6089_v13 }
 0x574   :  { %8970 = vmatprep.subr.mxu1 %v9075_v0 }
 0x575   :  { %8971 = vmatpush3.msra.mxu1 %v6088_v2  ;;  %v6137_v62 = vpop.permute.xlu0 %6136 }
 0x576   :  { %8972 = vmatprep.subr.mxu1 %v9075_v0 }
 0x577   :  { %8973 = vmatpush3.msra.mxu1 %v6087_v39 }
 0x578   :  { %8974 = vmatprep.subr.mxu1 %v9075_v0 }
 0x579   :  { %8975 = vmatpush3.msra.mxu1 %v6086_v7  ;;  %v6127_v18 = vpop.permute.xlu0 %6126 }
 0x57a   :  { %8976 = vmatprep.subr.mxu1 %v9075_v0 }
 0x57b   :  { %8977 = vmatpush3.msra.mxu1 %v6085_v22 }
 0x57c   :  { %8978 = vmatprep.subr.mxu1 %v9075_v0 }
 0x57d   :  { %8979 = vmatpush3.msra.mxu1 %v6084_v17 }
 0x57e   :  { %8980 = vmatprep.subr.mxu1 %v9075_v0 }
 0x57f   :  { %8981 = vmatpush3.msra.mxu1 %v6083_v25  ;;  %v6122_v25 = vpop.permute.xlu1 %6121 }
 0x580   :  { %8982 = vmatprep.subr.mxu1 %v9075_v0 }
 0x581   :  { %8983 = vmatpush3.msra.mxu1 %v6082_v49 }
 0x582   :  { %8985 = vmatmul.mubr.msk.f32.vlgmr.msra.gmra.mxu1 %vm6174_vm4, %v6097_v55 }
 0x583   :  { %8987 = vmatprep.mubr.msk.f32.mxu1 %vm9077_vm2, %v9075_v0 }
 0x586   :  { %8988 = vmatmul.mubr.msk.f32.gmra.mxu1 %vm6174_vm4, %v6098_v19 }
 0x587   :  { %8990 = vmatprep.mubr.msk.f32.mxu1 %vm9077_vm2, %v9075_v0 }
 0x58a   :  { %8991 = vmatmul.mubr.msk.f32.gmra.mxu1 %vm6174_vm4, %v6099_v28 }
 0x58b   :  { %8993 = vmatprep.mubr.msk.f32.mxu1 %vm9077_vm2, %v9075_v0 }
 0x58e   :  { %8994 = vmatmul.mubr.msk.f32.gmra.mxu1 %vm6174_vm4, %v6100_v32  ;;  %v6340_v32 = vld [vmem:[%s12593_s7 + $0x8] sm:$0x3] }
 0x58f   :  { %8996 = vmatprep.mubr.msk.f32.mxu1 %vm9077_vm2, %v9075_v0 }
 0x592   :  { %8997 = vmatmul.mubr.msk.f32.gmra.mxu1 %vm6174_vm4, %v6101_v61  ;;  %v6351_v61 = vpop.permute.xlu1 %6350 }
 0x593   :  { %8999 = vmatprep.mubr.msk.f32.mxu1 %vm9077_vm2, %v9075_v0 }
 0x596   :  { %9000 = vmatmul.mubr.msk.f32.gmra.mxu1 %vm6174_vm4, %v6102_v42 }
 0x597   :  { %9002 = vmatprep.mubr.msk.f32.mxu1 %vm9077_vm2, %v9075_v0 }
 0x59a   :  { %9003 = vmatmul.mubr.msk.f32.gmra.mxu1 %vm6174_vm4, %v6103_v46 }
 0x59b   :  { %9005 = vmatprep.mubr.msk.f32.mxu1 %vm9077_vm2, %v9075_v0 }
 0x59e   :  { %9006 = vmatmul.mubr.msk.f32.gmra.mxu1 %vm6174_vm4, %v6104_v33  ;;  %v6346_v33 = vpop.permute.xlu0 %6345 }
 0x59f   :  { %9008 = vmatprep.mubr.msk.f32.mxu1 %vm9077_vm2, %v9075_v0 }
 0x5a2   :  { %9009 = vmatmul.mubr.msk.f32.gmra.mxu1 %vm6174_vm4, %v6105_v20 }
 0x5a3   :  { %9011 = vmatprep.mubr.msk.f32.mxu1 %vm9077_vm2, %v9075_v0 }
 0x5a6   :  { %9012 = vmatmul.mubr.msk.f32.gmra.mxu1 %vm6174_vm4, %v6106_v3 }
 0x5a7   :  { %9014 = vmatprep.mubr.msk.f32.mxu1 %vm9077_vm2, %v9075_v0 }
 0x5aa   :  { %9015 = vmatmul.mubr.msk.f32.gmra.mxu1 %vm6174_vm4, %v6107_v38 }
 0x5ab   :  { %9039 = vmatprep.mubr.msk.f32.mxu1 %vm6353_vm5, %v6339_v44 }
 0x642   :  { %v12572_v36 = vpop.f32.mrf.mxu1 }
 0x643   :  { %v6275_v49 = vadd.f32 %v12572_v36, %v6122_v25 }
 0x644   :  { %v8986_v21 = vpop.f32.mrf.mxu1 }
 0x645   :  { %v6328_v28 = vmax.f32 %v6275_v49, 0.0 }
 0x646   :  { %v6279_v57 = vpop.f32.mrf.mxu1 }
 0x647   :  { %v6280_v5 = vadd.f32 %v6279_v57, %v6127_v18 }
 0x648   :  { %v8989_v10 = vpop.f32.mrf.mxu1 }
 0x649   :  { %v6329_v19 = vmax.f32 %v6280_v5, 0.0 }
 0x64a   :  { %v6284_v51 = vpop.f32.mrf.mxu1 }
 0x64b   :  { %v6285_v27 = vadd.f32 %v6284_v51, %v6132_v45 }
 0x64c   :  { %v8992_v0 = vpop.f32.mrf.mxu1 }
 0x64d   :  { %v6330_v55 = vmax.f32 %v6285_v27, 0.0 }
 0x64e   :  { %v6289_v37 = vpop.f32.mrf.mxu1 }
 0x64f   :  { %v6290_v30 = vadd.f32 %v6289_v37, %v6137_v62 }
 0x650   :  { %v8995_v60 = vpop.f32.mrf.mxu1 }
 0x651   :  { %v6331_v17 = vmax.f32 %v6290_v30, 0.0 }
 0x652   :  { %v6294_v31 = vpop.f32.mrf.mxu1 }
 0x653   :  { %v6295_v26 = vadd.f32 %v6294_v31, %v6142_v54 }
 0x654   :  { %v8998_v58 = vpop.f32.mrf.mxu1 }
 0x655   :  { %v6332_v22 = vmax.f32 %v6295_v26, 0.0 }
 0x656   :  { %v6299_v8 = vpop.f32.mrf.mxu1 }
 0x657   :  { %v6300_v35 = vadd.f32 %v6299_v8, %v6147_v4 }
 0x658   :  { %v9001_v56 = vpop.f32.mrf.mxu1 }
 0x659   :  { %v6333_v7 = vmax.f32 %v6300_v35, 0.0 }
 0x65a   :  { %v6304_v59 = vpop.f32.mrf.mxu1 }
 0x65b   :  { %v6305_v16 = vadd.f32 %v6304_v59, %v6152_v14 }
 0x65c   :  { %v9004_v23 = vpop.f32.mrf.mxu1 }
 0x65d   :  { %v6334_v39 = vmax.f32 %v6305_v16, 0.0 }
 0x65e   :  { %v6309_v24 = vpop.f32.mrf.mxu1 }
 0x65f   :  { %v6310_v11 = vadd.f32 %v6309_v24, %v6157_v1 }
 0x660   :  { %v9007_v34 = vpop.f32.mrf.mxu1 }
 0x661   :  { %v6335_v2 = vmax.f32 %v6310_v11, 0.0 }
 0x662   :  { %v6314_v29 = vpop.f32.mrf.mxu1 }
 0x663   :  { %v6315_v43 = vadd.f32 %v6314_v29, %v6162_v40 }
 0x664   :  { %v9010_v9 = vpop.f32.mrf.mxu1 }
 0x665   :  { %v6336_v13 = vmax.f32 %v6315_v43, 0.0 }
 0x666   :  { %v6319_v63 = vpop.f32.mrf.mxu1 }
 0x667   :  { %v6320_v50 = vadd.f32 %v6319_v63, %v6167_v41 }
 0x668   :  { %v9013_v53 = vpop.f32.mrf.mxu1 }
 0x669   :  { %v6337_v12 = vmax.f32 %v6320_v50, 0.0 }
 0x66a   :  { %v6324_v15 = vpop.f32.mrf.mxu1 }
 0x66b   :  { %v6325_v52 = vadd.f32 %v6324_v15, %v6172_v48 }
 0x66c   :  { %v9016_v6 = vpop.f32.mrf.mxu1 }
 0x66d   :  { %v6338_v47 = vmax.f32 %v6325_v52, 0.0 }
 0x66f   :  { %9017 = vmatprep.subr.msk.mxu1 %vm6360_vm6, %v6338_v47 }
 0x670   :  { %9018 = vmatpush3.msk.msra.mxu1 %vm6360_vm6, %v6338_v47 }
 0x671   :  { %9019 = vmatprep.subr.mxu1 %v6337_v12 }
 0x672   :  { %9020 = vmatpush3.msra.mxu1 %v6337_v12 }
 0x673   :  { %9021 = vmatprep.subr.mxu1 %v6336_v13 }
 0x674   :  { %9022 = vmatpush3.msra.mxu1 %v6336_v13 }
 0x675   :  { %9023 = vmatprep.subr.mxu1 %v6335_v2 }
 0x676   :  { %9024 = vmatpush3.msra.mxu1 %v6335_v2 }
 0x677   :  { %9025 = vmatprep.subr.mxu1 %v6334_v39 }
 0x678   :  { %9026 = vmatpush3.msra.mxu1 %v6334_v39 }
 0x679   :  { %9027 = vmatprep.subr.mxu1 %v6333_v7 }
 0x67a   :  { %9028 = vmatpush3.msra.mxu1 %v6333_v7 }
 0x67b   :  { %9029 = vmatprep.subr.mxu1 %v6332_v22 }
 0x67c   :  { %9030 = vmatpush3.msra.mxu1 %v6332_v22 }
 0x67d   :  { %9031 = vmatprep.subr.mxu1 %v6331_v17 }
 0x67e   :  { %9032 = vmatpush3.msra.mxu1 %v6331_v17 }
 0x67f   :  { %9033 = vmatprep.subr.mxu1 %v6330_v55 }
 0x680   :  { %9034 = vmatpush3.msra.mxu1 %v6330_v55 }
 0x681   :  { %9035 = vmatprep.subr.mxu1 %v6329_v19 }
 0x682   :  { %9036 = vmatpush3.msra.mxu1 %v6329_v19 }
 0x683   :  { %9037 = vmatprep.subr.mxu1 %v6328_v28 }
 0x684   :  { %9038 = vmatpush3.msra.mxu1 %v6328_v28 }
 0x685   :  { %9040 = vmatmul.mubr.msk.f32.vlgmr.msra.gmra.mxu1 %vm6353_vm5, %v6340_v32 }
 0x745   :  { %v9041_v42 = vpop.f32.mrf.mxu1 }
 0x746   :  { %v6436_v46 = vadd.f32 %v9041_v42, %v6351_v61 }
 0x747   :  { %v6430_v20 = vpop.f32.mrf.mxu1 }
 0x748   :  { %6442 = vst.msk [vmem:[%s12594_s9 + $0x8] sm:$0x3] %vm6441_vm7, %v6436_v46  ;;  %v6431_v3 = vadd.f32 %v6430_v20, %v6346_v33 }
 0x74a   :  { %6440 = vst.msk [vmem:[%s12594_s9] sm:$0xff] %vm6439_vm8, %v6431_v3 }

</bundles_post_ra>
